<compile_context>
chip_gen: v7x
topology: tpu7x:2x2x1
jax: 0.10.0
libtpu: 0.0.40
codegen_flags: <defaults>
</compile_context>

<pallas_src>
import functools

import numpy as np
import jax
import jax.numpy as jnp
from jax import lax
from jax.experimental import pallas as pl
from jax.experimental.pallas import tpu as pltpu


_VMEM_LIMIT = 32 * 1024 * 1024  # safe on v5e/v6e (128 MiB) and v7x (64 MiB/TC)


# ----------------------------- Pallas kernels ------------------------------

def _pool_conv_relu_kernel(p_ref, x_ref, w_ref, b_ref, o_ref):
    """Fused AdaptiveAvgPool2d((4,4)) + 1x1 conv + bias + ReLU for B samples.

    p: (16, H*W) averaging matrix   x: (B, H*W, Cin)
    w: (Cin, 128)  b: (1, 128)      o: (B*16, 128)
    """
    P = p_ref[...]
    B = x_ref.shape[0]
    # pooling as matmuls on the MXU (block-diagonal over the batch)
    pooled = [jnp.dot(P, x_ref[i], preferred_element_type=jnp.float32)
              for i in range(B)]                                   # B x (16, Cin)
    pooled = pooled[0] if B == 1 else jnp.concatenate(pooled, axis=0)  # (B*16, Cin)
    y = jnp.dot(pooled, w_ref[...], preferred_element_type=jnp.float32)
    y = y + b_ref[...]
    o_ref[...] = jnp.maximum(y, 0.0)


def _fc_fused_kernel(x_ref, w1_ref, b1_ref, w2_ref, b2_ref, o_ref, acc_ref):
    """Fused fc1 (streamed over K) + ReLU + fc2 epilogue.

    Grid = (K_tiles,).  x: (M, tk) f32, w1: (tk, 1024) bf16, b1: (1, 1024) f32,
    w2: (1024, NP) bf16, b2: (1, NP) f32, o: (M, NP) f32, acc: (M, 1024) f32.
    """
    k = pl.program_id(0)

    @pl.when(k == 0)
    def _():
        acc_ref[...] = jnp.zeros_like(acc_ref)

    # bf16 weights are promoted to f32 in-kernel; accumulation stays f32.
    acc_ref[...] += jnp.dot(x_ref[...], w1_ref[...],
                            preferred_element_type=jnp.float32)

    @pl.when(k == pl.num_programs(0) - 1)
    def _():
        h = jnp.maximum(acc_ref[...] + b1_ref[...], 0.0)
        # TODO(synk): Dropout(0.7) training-mode masking not implemented (eval = identity)
        y = jnp.dot(h, w2_ref[...], preferred_element_type=jnp.float32)
        o_ref[...] = y + b2_ref[...]


# ------------------------------- wrappers -----------------------------------

def _pick_batch_block(N, HW, Cin, vmem_budget=8 * 1024 * 1024):
    """Largest divisor of N that is <= 8 and keeps the x block small."""
    per_sample = HW * Cin * 4
    pref = int(max(1, min(8, vmem_budget // max(per_sample, 1))))
    for b in range(min(N, pref), 0, -1):
        if N % b == 0:
            return b
    return 1


def _pool_conv_relu(x_flat, pool_mat, w, b):
    N, HW, Cin = x_flat.shape
    B = _pick_batch_block(N, HW, Cin)
    return pl.pallas_call(
        _pool_conv_relu_kernel,
        out_shape=jax.ShapeDtypeStruct((N * 16, 128), jnp.float32),
        grid_spec=pltpu.PrefetchScalarGridSpec(
            num_scalar_prefetch=0,
            grid=(N // B,),
            in_specs=[
                pl.BlockSpec((16, HW), lambda n: (0, 0)),
                pl.BlockSpec((B, HW, Cin), lambda n: (n, 0, 0)),
                pl.BlockSpec((Cin, 128), lambda n: (0, 0)),
                pl.BlockSpec((1, 128), lambda n: (0, 0)),
            ],
            out_specs=pl.BlockSpec((B * 16, 128), lambda n: (n, 0)),
        ),
        compiler_params=pltpu.CompilerParams(
            dimension_semantics=("parallel",),
            vmem_limit_bytes=_VMEM_LIMIT,
        ),
    )(pool_mat, x_flat, w, b)


def _fc1_fc2_fused(z, w1, b1, w2p, b2p):
    M, K = z.shape
    Kw, N1 = w1.shape
    assert K == Kw
    NP = w2p.shape[1]
    tk = 1024 if K % 1024 == 0 else K      # 2 K-steps for K=2048 (full-row tiles)
    return pl.pallas_call(
        _fc_fused_kernel,
        out_shape=jax.ShapeDtypeStruct((M, NP), jnp.float32),
        grid_spec=pltpu.PrefetchScalarGridSpec(
            num_scalar_prefetch=0,
            grid=(K // tk,),
            in_specs=[
                pl.BlockSpec((M, tk), lambda k: (0, k)),
                pl.BlockSpec((tk, N1), lambda k: (k, 0)),
                pl.BlockSpec((1, N1), lambda k: (0, 0)),
                pl.BlockSpec((N1, NP), lambda k: (0, 0)),
                pl.BlockSpec((1, NP), lambda k: (0, 0)),
            ],
            out_specs=pl.BlockSpec((M, NP), lambda k: (0, 0)),
            scratch_shapes=[pltpu.VMEM((M, N1), jnp.float32)],
        ),
        compiler_params=pltpu.CompilerParams(
            dimension_semantics=("arbitrary",),
            vmem_limit_bytes=_VMEM_LIMIT,
        ),
    )(z, w1, b1, w2p, b2p)


# ----------------------- one-time parameter preparation ----------------------

def _adaptive_pool_matrix(H, W, out_h=4, out_w=4):
    """(out_h*out_w, H*W) averaging matrix matching torch AdaptiveAvgPool2d bins."""
    P = np.zeros((out_h * out_w, H * W), np.float32)
    for oh in range(out_h):
        h0, h1 = (oh * H) // out_h, -(-((oh + 1) * H) // out_h)
        for ow in range(out_w):
            w0, w1 = (ow * W) // out_w, -(-((ow + 1) * W) // out_w)
            val = 1.0 / ((h1 - h0) * (w1 - w0))
            for h in range(h0, h1):
                P[oh * out_w + ow, h * W + w0:h * W + w1] = val
    return jnp.asarray(P)


def prepare_params(params, H, W):
    """Hoisted, one-time weight layout transforms (run outside the jitted fwd)."""
    Cin = params['conv_w'].shape[1]
    num_classes = params['fc2_w'].shape[0]

    conv_w = params['conv_w'].reshape(128, Cin).T.astype(jnp.float32)   # (Cin, 128)
    conv_b = params['conv_b'].reshape(1, 128).astype(jnp.float32)

    # permute fc1 columns from torch's flatten order (c, h, w) to ours (h, w, c)
    w1 = (params['fc1_w']
          .reshape(1024, 128, 4, 4)
          .transpose(0, 2, 3, 1)
          .reshape(1024, 2048).T).astype(jnp.bfloat16)                   # (2048, 1024)
    b1 = params['fc1_b'].reshape(1, 1024).astype(jnp.float32)

    # pad fc2 to a lane-dense 128-wide output; slice real classes in the wrapper
    ncls_pad = max(128, -(-num_classes // 128) * 128)
    w2 = jnp.zeros((1024, ncls_pad), jnp.float32)
    w2 = w2.at[:, :num_classes].set(params['fc2_w'].T).astype(jnp.bfloat16)
    b2 = jnp.zeros((1, ncls_pad), jnp.float32)
    b2 = b2.at[0, :num_classes].set(params['fc2_b'])

    pool_mat = _adaptive_pool_matrix(H, W)

    return {'pool_mat': pool_mat, 'conv_w': conv_w, 'conv_b': conv_b,
            'w1': w1, 'b1': b1, 'w2': w2, 'b2': b2}


# --------------------------------- forward -----------------------------------

def inception_aux(x_nchw, prepped, num_classes):
    """Forward pass of InceptionAux (inference mode)."""
    N, C, H, W = x_nchw.shape
    # NCHW -> NHWC, collapse spatial (free collapse after the transpose)
    x = jnp.transpose(x_nchw, (0, 2, 3, 1)).reshape(N, H * W, C)

    # fused adaptive-pool + 1x1 conv + bias + ReLU -> (N*16, 128), lane-dense
    y = _pool_conv_relu(x, prepped['pool_mat'], prepped['conv_w'], prepped['conv_b'])
    z = y.reshape(N, 16 * 128)                                           # free reshape

    # fused fc1 (streamed K) + ReLU + fc2 epilogue; dropout is identity in eval
    out_p = _fc1_fc2_fused(z, prepped['w1'], prepped['b1'],
                           prepped['w2'], prepped['b2'])
    return out_p[:, :num_classes]


# --------------------------- parameter creation ------------------------------

def init_params(key, in_channels, num_classes):
    ks = jax.random.split(key, 6)
    conv_w = jax.random.normal(ks[0], (128, in_channels, 1, 1),
                               jnp.float32) / np.sqrt(in_channels)
    conv_b = 0.05 * jax.random.normal(ks[1], (128,), jnp.float32)
    fc1_w = jax.random.normal(ks[2], (1024, 2048), jnp.float32) / np.sqrt(2048)
    fc1_b = 0.05 * jax.random.normal(ks[3], (1024,), jnp.float32)
    fc2_w = jax.random.normal(ks[4], (num_classes, 1024),
                              jnp.float32) / np.sqrt(1024)
    fc2_b = 0.05 * jax.random.normal(ks[5], (num_classes,), jnp.float32)
    return {'conv_w': conv_w, 'conv_b': conv_b,
            'fc1_w': fc1_w, 'fc1_b': fc1_b,
            'fc2_w': fc2_w, 'fc2_b': fc2_b}


# --------------------------- pure-JAX reference ------------------------------

def _ref_forward(x_nchw, params):
    N, C, H, W = x_nchw.shape
    hp = lax.Precision.HIGHEST
    # AdaptiveAvgPool2d((4,4)) with torch's bin boundaries
    rows = []
    for oh in range(4):
        h0, h1 = (oh * H) // 4, -(-((oh + 1) * H) // 4)
        cols = []
        for ow in range(4):
            w0, w1 = (ow * W) // 4, -(-((ow + 1) * W) // 4)
            cols.append(x_nchw[:, :, h0:h1, w0:w1].mean(axis=(2, 3)))   # (N, C)
        rows.append(jnp.stack(cols, axis=-1))                           # (N, C, 4)
    xp = jnp.stack(rows, axis=-2)                                       # (N, C, 4, 4)
    # 1x1 conv + bias + ReLU
    wc = params['conv_w'][:, :, 0, 0]                                   # (128, C)
    y = jnp.einsum('nchw,oc->nohw', xp, wc, precision=hp)
    y = jnp.maximum(y + params['conv_b'][None, :, None, None], 0.0)
    # torch flatten (C-major)
    z = y.reshape(N, 128 * 16)
    h1 = jnp.maximum(jnp.dot(z, params['fc1_w'].T, precision=hp)
                     + params['fc1_b'], 0.0)
    # dropout: identity in eval mode
    return jnp.dot(h1, params['fc2_w'].T, precision=hp) + params['fc2_b']


# ----------------------------------- main ------------------------------------

if __name__ == "__main__":
    key = jax.random.PRNGKey(0)
    k_x, k_p = jax.random.split(key)

    in_channels, num_classes = 32, 10
    N, H, W = 2, 16, 16

    x = jax.random.normal(k_x, (N, in_channels, H, W), jnp.float32)   # NCHW
    params = init_params(k_p, in_channels, num_classes)
    prepped = prepare_params(params, H, W)                            # one-time

    fwd = jax.jit(functools.partial(inception_aux, num_classes=num_classes))
    out = jax.block_until_ready(fwd(x, prepped))

    assert out.shape == (N, num_classes), out.shape
    ref = jax.block_until_ready(_ref_forward(x, params))
    np.testing.assert_allclose(np.asarray(out), np.asarray(ref),
                               atol=1e-2, rtol=1e-2)
    print("KERNEL_OK")
</pallas_src>

<mosaic_0001>
module attributes {stable_mosaic.version = 11 : i64} {
  func.func @_fc_fused_kernel(%arg0: i32, %arg1: memref<2x1024xf32, #tpu.memory_space<vmem>>, %arg2: memref<1024x1024xbf16, #tpu.memory_space<vmem>>, %arg3: memref<1x1024xf32, #tpu.memory_space<vmem>>, %arg4: memref<1024x128xbf16, #tpu.memory_space<vmem>>, %arg5: memref<1x128xf32, #tpu.memory_space<vmem>>, %arg6: memref<2x128xf32, #tpu.memory_space<vmem>>, %arg7: memref<2x1024xf32, #tpu.memory_space<vmem>>) attributes {dimension_semantics = [#tpu.dimension_semantics<arbitrary>], iteration_bounds = array<i64: 2>, scalar_prefetch = 0 : i64, scratch_operands = 1 : i64, tpu.core_type = #tpu.core_type<tc>, window_params = [{transform_indices = @transform_0, window_bounds = array<i64: 2, 1024>}, {transform_indices = @transform_1, window_bounds = array<i64: 1024, 1024>}, {pipeline_mode = #tpu.pipeline_mode<synchronous>, transform_indices = @transform_2, window_bounds = array<i64: 1, 1024>}, {pipeline_mode = #tpu.pipeline_mode<synchronous>, transform_indices = @transform_3, window_bounds = array<i64: 1024, 128>}, {pipeline_mode = #tpu.pipeline_mode<synchronous>, transform_indices = @transform_4, window_bounds = array<i64: 1, 128>}, {pipeline_mode = #tpu.pipeline_mode<synchronous>, transform_indices = @transform_5, window_bounds = array<i64: 2, 128>}]} {
    %c0_i32 = arith.constant 0 : i32
    %0 = arith.cmpi eq, %arg0, %c0_i32 : i32
    %1 = arith.extui %0 : i1 to i32
    %c0_i32_0 = arith.constant 0 : i32
    %2 = arith.cmpi ne, %1, %c0_i32_0 : i32
    scf.if %2 {
      %cst_9 = arith.constant 0.000000e+00 : f32
      %12 = vector.broadcast %cst_9 : f32 to vector<2x1024xf32>
      %c0_10 = arith.constant 0 : index
      %c0_11 = arith.constant 0 : index
      %13 = vector.load %arg7[%c0_10, %c0_11] : memref<2x1024xf32, #tpu.memory_space<vmem>>, vector<2x1024xf32>
      tpu.vector_store %arg7[%c0_10, %c0_11], %12 {strides = array<i32>} : memref<2x1024xf32, #tpu.memory_space<vmem>>, vector<2x1024xf32>,
    } else {
    }
    %c0 = arith.constant 0 : index
    %c0_1 = arith.constant 0 : index
    %3 = vector.load %arg7[%c0, %c0_1] : memref<2x1024xf32, #tpu.memory_space<vmem>>, vector<2x1024xf32>
    %c0_2 = arith.constant 0 : index
    %c0_3 = arith.constant 0 : index
    %4 = vector.load %arg1[%c0_2, %c0_3] : memref<2x1024xf32, #tpu.memory_space<vmem>>, vector<2x1024xf32>
    %c0_4 = arith.constant 0 : index
    %c0_5 = arith.constant 0 : index
    %5 = vector.load %arg2[%c0_4, %c0_5] : memref<1024x1024xbf16, #tpu.memory_space<vmem>>, vector<1024x1024xbf16>
    %cst = arith.constant dense<0.000000e+00> : vector<2x1024xf32>
    %6 = tpu.matmul %4, %5, %cst {dimension_numbers = #tpu.dot_dimension_numbers<[1], [0], [0], [1], [0, 0, 1, 1], [], []>} : vector<2x1024xf32>, vector<1024x1024xbf16>, vector<2x1024xf32> -> vector<2x1024xf32>
    %7 = arith.addf %3, %6 : vector<2x1024xf32>
    %c0_6 = arith.constant 0 : index
    %c0_7 = arith.constant 0 : index
    %8 = vector.load %arg7[%c0_6, %c0_7] : memref<2x1024xf32, #tpu.memory_space<vmem>>, vector<2x1024xf32>
    tpu.vector_store %arg7[%c0_6, %c0_7], %7 {strides = array<i32>} : memref<2x1024xf32, #tpu.memory_space<vmem>>, vector<2x1024xf32>,
    %c1_i32 = arith.constant 1 : i32
    %9 = arith.cmpi eq, %arg0, %c1_i32 : i32
    %10 = arith.extui %9 : i1 to i32
    %c0_i32_8 = arith.constant 0 : i32
    %11 = arith.cmpi ne, %10, %c0_i32_8 : i32
    scf.if %11 {
      %c0_9 = arith.constant 0 : index
      %c0_10 = arith.constant 0 : index
      %12 = vector.load %arg7[%c0_9, %c0_10] : memref<2x1024xf32, #tpu.memory_space<vmem>>, vector<2x1024xf32>
      %c0_11 = arith.constant 0 : index
      %c0_12 = arith.constant 0 : index
      %13 = vector.load %arg3[%c0_11, %c0_12] : memref<1x1024xf32, #tpu.memory_space<vmem>>, vector<1x1024xf32>
      %14 = vector.broadcast %13 : vector<1x1024xf32> to vector<2x1024xf32>
      %15 = arith.addf %12, %14 : vector<2x1024xf32>
      %cst_13 = arith.constant 0.000000e+00 : f32
      %16 = vector.broadcast %cst_13 : f32 to vector<2x1024xf32>
      %17 = arith.maximumf %15, %16 : vector<2x1024xf32>
      %c0_14 = arith.constant 0 : index
      %c0_15 = arith.constant 0 : index
      %18 = vector.load %arg4[%c0_14, %c0_15] : memref<1024x128xbf16, #tpu.memory_space<vmem>>, vector<1024x128xbf16>
      %cst_16 = arith.constant dense<0.000000e+00> : vector<2x128xf32>
      %19 = tpu.matmul %17, %18, %cst_16 {dimension_numbers = #tpu.dot_dimension_numbers<[1], [0], [0], [1], [0, 0, 1, 1], [], []>} : vector<2x1024xf32>, vector<1024x128xbf16>, vector<2x128xf32> -> vector<2x128xf32>
      %c0_17 = arith.constant 0 : index
      %c0_18 = arith.constant 0 : index
      %20 = vector.load %arg5[%c0_17, %c0_18] : memref<1x128xf32, #tpu.memory_space<vmem>>, vector<1x128xf32>
      %21 = vector.broadcast %20 : vector<1x128xf32> to vector<2x128xf32>
      %22 = arith.addf %19, %21 : vector<2x128xf32>
      %c0_19 = arith.constant 0 : index
      %c0_20 = arith.constant 0 : index
      %23 = vector.load %arg6[%c0_19, %c0_20] : memref<2x128xf32, #tpu.memory_space<vmem>>, vector<2x128xf32>
      tpu.vector_store %arg6[%c0_19, %c0_20], %22 {strides = array<i32>} : memref<2x128xf32, #tpu.memory_space<vmem>>, vector<2x128xf32>,
    } else {
    }
    return
  }
  func.func @transform_0(%arg0: i32) -> (i32, i32) {
    %c0_i32 = arith.constant 0 : i32
    %c0_i32_0 = arith.constant 0 : i32
    return %c0_i32, %arg0 : i32, i32
  }
  func.func @transform_1(%arg0: i32) -> (i32, i32) {
    %c0_i32 = arith.constant 0 : i32
    %c0_i32_0 = arith.constant 0 : i32
    return %arg0, %c0_i32 : i32, i32
  }
  func.func @transform_2(%arg0: i32) -> (i32, i32) {
    %c0_i32 = arith.constant 0 : i32
    %c0_i32_0 = arith.constant 0 : i32
    %c0_i32_1 = arith.constant 0 : i32
    return %c0_i32, %c0_i32_0 : i32, i32
  }
  func.func @transform_3(%arg0: i32) -> (i32, i32) {
    %c0_i32 = arith.constant 0 : i32
    %c0_i32_0 = arith.constant 0 : i32
    %c0_i32_1 = arith.constant 0 : i32
    return %c0_i32, %c0_i32_0 : i32, i32
  }
  func.func @transform_4(%arg0: i32) -> (i32, i32) {
    %c0_i32 = arith.constant 0 : i32
    %c0_i32_0 = arith.constant 0 : i32
    %c0_i32_1 = arith.constant 0 : i32
    return %c0_i32, %c0_i32_0 : i32, i32
  }
  func.func @transform_5(%arg0: i32) -> (i32, i32) {
    %c0_i32 = arith.constant 0 : i32
    %c0_i32_0 = arith.constant 0 : i32
    %c0_i32_1 = arith.constant 0 : i32
    return %c0_i32, %c0_i32_0 : i32, i32
  }
}

module attributes {stable_mosaic.version = 11 : i64} {
  func.func @_pool_conv_relu_kernel(%arg0: i32, %arg1: memref<16x256xf32, #tpu.memory_space<vmem>>, %arg2: memref<2x256x32xf32, #tpu.memory_space<vmem>>, %arg3: memref<32x128xf32, #tpu.memory_space<vmem>>, %arg4: memref<1x128xf32, #tpu.memory_space<vmem>>, %arg5: memref<32x128xf32, #tpu.memory_space<vmem>>) attributes {dimension_semantics = [#tpu.dimension_semantics<parallel>], iteration_bounds = array<i64: 1>, scalar_prefetch = 0 : i64, scratch_operands = 0 : i64, tpu.core_type = #tpu.core_type<tc>, window_params = [{pipeline_mode = #tpu.pipeline_mode<synchronous>, transform_indices = @transform_0, window_bounds = array<i64: 16, 256>}, {transform_indices = @transform_1, window_bounds = array<i64: 2, 256, 32>}, {pipeline_mode = #tpu.pipeline_mode<synchronous>, transform_indices = @transform_2, window_bounds = array<i64: 32, 128>}, {pipeline_mode = #tpu.pipeline_mode<synchronous>, transform_indices = @transform_3, window_bounds = array<i64: 1, 128>}, {transform_indices = @transform_4, window_bounds = array<i64: 32, 128>}]} {
    %c0 = arith.constant 0 : index
    %c0_0 = arith.constant 0 : index
    %0 = vector.load %arg1[%c0, %c0_0] : memref<16x256xf32, #tpu.memory_space<vmem>>, vector<16x256xf32>
    %c0_1 = arith.constant 0 : index
    %c0_2 = arith.constant 0 : index
    %c0_3 = arith.constant 0 : index
    %1 = vector.load %arg2[%c0_1, %c0_2, %c0_3] : memref<2x256x32xf32, #tpu.memory_space<vmem>>, vector<1x256x32xf32>
    %2 = vector.shape_cast %1 : vector<1x256x32xf32> to vector<256x32xf32>
    %cst = arith.constant dense<0.000000e+00> : vector<16x32xf32>
    %3 = tpu.matmul %0, %2, %cst {dimension_numbers = #tpu.dot_dimension_numbers<[1], [0], [0], [1], [0, 0, 1, 1], [], []>} : vector<16x256xf32>, vector<256x32xf32>, vector<16x32xf32> -> vector<16x32xf32>
    %c1 = arith.constant 1 : index
    %c0_4 = arith.constant 0 : index
    %c0_5 = arith.constant 0 : index
    %4 = vector.load %arg2[%c1, %c0_4, %c0_5] : memref<2x256x32xf32, #tpu.memory_space<vmem>>, vector<1x256x32xf32>
    %5 = vector.shape_cast %4 : vector<1x256x32xf32> to vector<256x32xf32>
    %cst_6 = arith.constant dense<0.000000e+00> : vector<16x32xf32>
    %6 = tpu.matmul %0, %5, %cst_6 {dimension_numbers = #tpu.dot_dimension_numbers<[1], [0], [0], [1], [0, 0, 1, 1], [], []>} : vector<16x256xf32>, vector<256x32xf32>, vector<16x32xf32> -> vector<16x32xf32>
    %7 = tpu.concatenate %3, %6 in 0 : vector<16x32xf32>, vector<16x32xf32> -> vector<32x32xf32>
    %c0_7 = arith.constant 0 : index
    %c0_8 = arith.constant 0 : index
    %8 = vector.load %arg3[%c0_7, %c0_8] : memref<32x128xf32, #tpu.memory_space<vmem>>, vector<32x128xf32>
    %cst_9 = arith.constant dense<0.000000e+00> : vector<32x128xf32>
    %9 = tpu.matmul %7, %8, %cst_9 {dimension_numbers = #tpu.dot_dimension_numbers<[1], [0], [0], [1], [0, 0, 1, 1], [], []>} : vector<32x32xf32>, vector<32x128xf32>, vector<32x128xf32> -> vector<32x128xf32>
    %c0_10 = arith.constant 0 : index
    %c0_11 = arith.constant 0 : index
    %10 = vector.load %arg4[%c0_10, %c0_11] : memref<1x128xf32, #tpu.memory_space<vmem>>, vector<1x128xf32>
    %11 = vector.broadcast %10 : vector<1x128xf32> to vector<32x128xf32>
    %12 = arith.addf %9, %11 : vector<32x128xf32>
    %cst_12 = arith.constant 0.000000e+00 : f32
    %13 = vector.broadcast %cst_12 : f32 to vector<32x128xf32>
    %14 = arith.maximumf %12, %13 : vector<32x128xf32>
    %c0_13 = arith.constant 0 : index
    %c0_14 = arith.constant 0 : index
    %15 = vector.load %arg5[%c0_13, %c0_14] : memref<32x128xf32, #tpu.memory_space<vmem>>, vector<32x128xf32>
    tpu.vector_store %arg5[%c0_13, %c0_14], %14 {strides = array<i32>} : memref<32x128xf32, #tpu.memory_space<vmem>>, vector<32x128xf32>,
    return
  }
  func.func @transform_0(%arg0: i32) -> (i32, i32) {
    %c0_i32 = arith.constant 0 : i32
    %c0_i32_0 = arith.constant 0 : i32
    %c0_i32_1 = arith.constant 0 : i32
    return %c0_i32, %c0_i32_0 : i32, i32
  }
  func.func @transform_1(%arg0: i32) -> (i32, i32, i32) {
    %c0_i32 = arith.constant 0 : i32
    %c0_i32_0 = arith.constant 0 : i32
    %c0_i32_1 = arith.constant 0 : i32
    return %arg0, %c0_i32, %c0_i32_0 : i32, i32, i32
  }
  func.func @transform_2(%arg0: i32) -> (i32, i32) {
    %c0_i32 = arith.constant 0 : i32
    %c0_i32_0 = arith.constant 0 : i32
    %c0_i32_1 = arith.constant 0 : i32
    return %c0_i32, %c0_i32_0 : i32, i32
  }
  func.func @transform_3(%arg0: i32) -> (i32, i32) {
    %c0_i32 = arith.constant 0 : i32
    %c0_i32_0 = arith.constant 0 : i32
    %c0_i32_1 = arith.constant 0 : i32
    return %c0_i32, %c0_i32_0 : i32, i32
  }
  func.func @transform_4(%arg0: i32) -> (i32, i32) {
    %c0_i32 = arith.constant 0 : i32
    %c0_i32_0 = arith.constant 0 : i32
    return %arg0, %c0_i32 : i32, i32
  }
}

</mosaic_0001>

<bundles_post_ra>
// kernel: inception_aux.2
= control target key start
LH: loop header
LB: loop body
LE: loop exit
PB: predicated region body
PF: predicated region fallthrough
CT: control target
= control target key end

     0   :  { %9 = vsyncpa [#allocation3], 0  ;;  %s793_s0 = inlined_call_operand.hbm [shape: f32[16,256], index: 0, kind: input, shape index: {}]   ;;  %s794_s1 = inlined_call_operand.hbm [shape: f32[2,256,32], index: 1, kind: input, shape index: {}]   ;;  %s795_s2 = inlined_call_operand.hbm [shape: f32[32,128], index: 2, kind: input, shape index: {}]   ;;  %s796_s3 = inlined_call_operand.hbm [shape: f32[1,128], index: 3, kind: input, shape index: {}]   ;;  %s797_s4 = inlined_call_operand.vmem [shape: f32[32,128], index: 4, kind: output, shape index: {}]  }
   0x1   :  { %10 = vsyncpa [#allocation5], 0 }
   0x2   :  { %11 = vsyncpa [#allocation8], 0  ;;  %s694_s15 = smov [#allocation4]   ;;  %s600_s19 = scalar_lea.hbm %s794_s1, 8192 }
   0x3   :  { %s29_s16 = sshll.u32 %s694_s15, 4  ;;  %p601_p0 = scmp.ne.s32.totalorder %s794_s1, %s600_s19  ;;  %s30_s16 = int_to_ptr.vmem [resolvable:$true] %s29_s16 }
   0x4   :  { %p604_p1 = scmp.lt.u32.totalorder %s600_s19, %s794_s1 }
   0x6   :  { %p606_p2 = pnand %p604_p1, %p601_p0 }
   0x8   :  { %609 = shalt.err (!%p606_p2)
}
   0x9   :  { %s610_s24 = scalar_lea.vmem %s30_s16, 8192  ;;  %p615_p4 = scmp.lt.s32.totalorder %s30_s16, %s30_s16 }
   0xa   :  { %p611_p3 = scmp.ne.s32.totalorder %s30_s16, %s610_s24  ;;  %p616_p5 = scmp.lt.s32.totalorder %s610_s24, %s610_s24 }
   0xc   :  { %p617_p6 = por %p616_p5, %p615_p4 }
   0xe   :  { %p618_p7 = pnand %p617_p6, %p611_p3 }
  0x10   :  { %621 = shalt.err (!%p618_p7)
}
  0x11   :  { %s695_s25 = smov 128   ;;  %s696_s26 = smov 8  }
  0x12   :  { %35 = dma.hbm_to_vmem [thread:$0]  %s794_s1, 8192, %s30_s16, [#allocation5], %s695_s25, %s695_s25, %s696_s26  }
  0x13   :  { %s697_s29 = smov [#allocation2]   ;;  %s622_s7 = scalar_lea.hbm %s793_s0, 512 }
  0x14   :  { %s17_s30 = sshll.u32 %s697_s29, 4  ;;  %p623_p8 = scmp.ne.s32.totalorder %s793_s0, %s622_s7  ;;  %s18_s30 = int_to_ptr.vmem [resolvable:$true] %s17_s30 }
  0x15   :  { %p626_p9 = scmp.lt.u32.totalorder %s622_s7, %s793_s0 }
  0x17   :  { %p628_p10 = pnand %p626_p9, %p623_p8 }
  0x19   :  { %631 = shalt.err (!%p628_p10)
}
  0x1a   :  { %s632_s12 = scalar_lea.vmem %s18_s30, 512  ;;  %p637_p12 = scmp.lt.s32.totalorder %s18_s30, %s18_s30 }
  0x1b   :  { %p633_p11 = scmp.ne.s32.totalorder %s18_s30, %s632_s12  ;;  %p638_p13 = scmp.lt.s32.totalorder %s632_s12, %s632_s12 }
  0x1d   :  { %p639_p0 = por %p638_p13, %p637_p12 }
  0x1f   :  { %p640_p1 = pnand %p639_p0, %p633_p11 }
  0x21   :  { %643 = shalt.err (!%p640_p1)
}
  0x22   :  { %s698_s1 = smov 256   ;;  %s699_s13 = smov 16  }
  0x23   :  { %23 = dma.hbm_to_vmem [thread:$0]  %s793_s0, 512, %s18_s30, [#allocation3], %s698_s1, %s698_s1, %s699_s13  }
  0x24   :  { %s700_s16 = smov [#allocation6]   ;;  %s701_s18 = smov [#allocation7]  }
  0x25   :  { %s41_s17 = sshll.u32 %s700_s16, 4  ;;  %s54_s19 = sshll.u32 %s701_s18, 4  ;;  %s42_s17 = int_to_ptr.vmem [resolvable:$true] %s41_s17  ;;  %s55_s19 = int_to_ptr.vmem [resolvable:$true] %s54_s19 }
  0x26   :  { %s644_s22 = scalar_lea.hbm %s795_s2, 512 }
  0x27   :  { %p645_p2 = scmp.ne.s32.totalorder %s795_s2, %s644_s22  ;;  %p648_p3 = scmp.lt.u32.totalorder %s644_s22, %s795_s2 }
  0x29   :  { %p650_p4 = pnand %p648_p3, %p645_p2 }
  0x2b   :  { %653 = shalt.err (!%p650_p4)
}
  0x2c   :  { %s654_s0 = scalar_lea.vmem %s42_s17, 512  ;;  %p659_p6 = scmp.lt.s32.totalorder %s42_s17, %s42_s17 }
  0x2d   :  { %p655_p5 = scmp.ne.s32.totalorder %s42_s17, %s654_s0  ;;  %p660_p7 = scmp.lt.s32.totalorder %s654_s0, %s654_s0 }
  0x2f   :  { %p661_p8 = por %p660_p7, %p659_p6 }
  0x31   :  { %p662_p9 = pnand %p661_p8, %p655_p5 }
  0x33   :  { %665 = shalt.err (!%p662_p9)
}
  0x34   :  { %47 = dma.hbm_to_vmem [thread:$0]  %s795_s2, 512, %s42_s17, [#allocation5], %s695_s25, %s695_s25, %s696_s26  }
  0x35   :  { %s666_s7 = scalar_lea.hbm %s796_s3, 16 }
  0x36   :  { %p667_p10 = scmp.ne.s32.totalorder %s796_s3, %s666_s7  ;;  %p670_p11 = scmp.lt.u32.totalorder %s666_s7, %s796_s3 }
  0x38   :  { %p672_p12 = pnand %p670_p11, %p667_p10 }
  0x3a   :  { %675 = shalt.err (!%p672_p12)
}
  0x3b   :  { %s676_s12 = scalar_lea.vmem %s55_s19, 16  ;;  %s680_s1 = scalar_lea.vmem %s55_s19, 32 }
  0x3c   :  { %p677_p13 = scmp.ne.s32.totalorder %s55_s19, %s676_s12  ;;  %p681_p0 = scmp.lt.s32.totalorder %s55_s19, %s55_s19 }
  0x3d   :  { %p682_p1 = scmp.lt.s32.totalorder %s680_s1, %s676_s12 }
  0x3f   :  { %p683_p2 = por %p682_p1, %p681_p0 }
  0x41   :  { %p684_p3 = pnand %p683_p2, %p677_p13 }
  0x43   :  { %687 = shalt.err (!%p684_p3)
}
  0x44   :  { %57 = dma.hbm_to_vmem [thread:$0]  %s796_s3, 16, %s55_s19, [#allocation8]  }
  0x45   :  { %688 = dma.done.wait [#allocation3], 512  }
  0x46   :  { %689 = vsyncadd [#allocation3], 4294966784 }
  0x47   :  { %690 = dma.done.wait [#allocation5], 8704  }
  0x48   :  { %691 = vsyncadd [#allocation5], 4294958592 }
  0x49   :  { %692 = dma.done.wait [#allocation8], 16  }
  0x4a   :  { %693 = vsyncadd [#allocation8], 4294967280  ;;  %v90_v0 = vld [vmem:[#allocation4 + $0x80] sm:$0xff]  ;;  %v91_v1 = vld [vmem:[#allocation4 + $0x88] sm:$0xff]  ;;  %vm300_vm0 = vcmask 261120  }
  0x4b   :  { %v198_v2 = vld [vmem:[#allocation4 + $0x180] sm:$0xff]  ;;  %v516_v3 = vpack.c.bf16 %v91_v1, %v90_v0  ;;  %v199_v4 = vld [vmem:[#allocation4 + $0x188] sm:$0xff]  ;;  %v92_v11 = vld [vmem:[#allocation4 + $0x90] sm:$0xff] }
  0x4c   :  { %v74_v5 = vld [vmem:[#allocation4] sm:$0xff]  ;;  %v75_v6 = vld [vmem:[#allocation4 + $0x8] sm:$0xff]  ;;  %v548_v7 = vpack.c.bf16 %v199_v4, %v198_v2  ;;  %v93_v13 = vld [vmem:[#allocation4 + $0x98] sm:$0xff] }
  0x4d   :  { %v518_v8 = vpack.c.bf16 %v75_v6, %v74_v5  ;;  %v182_v9 = vld [vmem:[#allocation4 + $0x100] sm:$0xff]  ;;  %v183_v10 = vld [vmem:[#allocation4 + $0x108] sm:$0xff]  ;;  %517 = vmatprep.subr.bf16.mxu0 %v516_v3  ;;  %v200_v14 = vld [vmem:[#allocation4 + $0x190] sm:$0xff]  ;;  %v520_v16 = vpack.c.bf16 %v93_v13, %v92_v11 }
  0x4e   :  { %v550_v12 = vpack.c.bf16 %v183_v10, %v182_v9  ;;  %v201_v15 = vld [vmem:[#allocation4 + $0x198] sm:$0xff]  ;;  %549 = vmatprep.subr.bf16.mxu1 %v548_v7  ;;  %v76_v18 = vld [vmem:[#allocation4 + $0x10] sm:$0xff]  ;;  %v94_v23 = vld [vmem:[#allocation4 + $0xa0] sm:$0xff] }
  0x4f   :  { %519 = vmatpush3.bf16.msra.mxu0 %v518_v8  ;;  %v552_v17 = vpack.c.bf16 %v201_v15, %v200_v14  ;;  %v77_v19 = vld [vmem:[#allocation4 + $0x18] sm:$0xff]  ;;  %v184_v20 = vld [vmem:[#allocation4 + $0x110] sm:$0xff]  ;;  %v95_v24 = vld [vmem:[#allocation4 + $0xa8] sm:$0xff] }
  0x50   :  { %551 = vmatpush3.bf16.msra.mxu1 %v550_v12  ;;  %v522_v21 = vpack.c.bf16 %v77_v19, %v76_v18  ;;  %v185_v22 = vld [vmem:[#allocation4 + $0x118] sm:$0xff]  ;;  %521 = vmatprep.subr.bf16.mxu0 %v520_v16  ;;  %v524_v26 = vpack.c.bf16 %v95_v24, %v94_v23  ;;  %v202_v27 = vld [vmem:[#allocation4 + $0x1a0] sm:$0xff]  ;;  %v203_v28 = vld [vmem:[#allocation4 + $0x1a8] sm:$0xff] }
  0x51   :  { %553 = vmatprep.subr.bf16.mxu1 %v552_v17  ;;  %v554_v25 = vpack.c.bf16 %v185_v22, %v184_v20  ;;  %v78_v29 = vld [vmem:[#allocation4 + $0x20] sm:$0xff]  ;;  %v556_v30 = vpack.c.bf16 %v203_v28, %v202_v27  ;;  %v79_v31 = vld [vmem:[#allocation4 + $0x28] sm:$0xff]  ;;  %v96_v35 = vld [vmem:[#allocation4 + $0xb0] sm:$0xff] }
  0x52   :  { %v186_v32 = vld [vmem:[#allocation4 + $0x120] sm:$0xff]  ;;  %v187_v33 = vld [vmem:[#allocation4 + $0x128] sm:$0xff]  ;;  %v526_v34 = vpack.c.bf16 %v79_v31, %v78_v29  ;;  %v97_v36 = vld [vmem:[#allocation4 + $0xb8] sm:$0xff] }
  0x53   :  { %523 = vmatpush3.bf16.msra.mxu0 %v522_v21  ;;  %v204_v37 = vld [vmem:[#allocation4 + $0x1b0] sm:$0xff]  ;;  %v558_v38 = vpack.c.bf16 %v187_v33, %v186_v32  ;;  %v528_v39 = vpack.c.bf16 %v97_v36, %v96_v35  ;;  %v205_v40 = vld [vmem:[#allocation4 + $0x1b8] sm:$0xff]  ;;  %v98_v46 = vld [vmem:[#allocation4 + $0xc0] sm:$0xff] }
  0x54   :  { %555 = vmatpush3.bf16.msra.mxu1 %v554_v25  ;;  %525 = vmatprep.subr.bf16.mxu0 %v524_v26  ;;  %v80_v41 = vld [vmem:[#allocation4 + $0x30] sm:$0xff]  ;;  %v81_v42 = vld [vmem:[#allocation4 + $0x38] sm:$0xff]  ;;  %v560_v43 = vpack.c.bf16 %v205_v40, %v204_v37  ;;  %v99_v47 = vld [vmem:[#allocation4 + $0xc8] sm:$0xff] }
  0x55   :  { %557 = vmatprep.subr.bf16.mxu1 %v556_v30  ;;  %v188_v44 = vld [vmem:[#allocation4 + $0x130] sm:$0xff]  ;;  %v189_v45 = vld [vmem:[#allocation4 + $0x138] sm:$0xff]  ;;  %v206_v48 = vld [vmem:[#allocation4 + $0x1c0] sm:$0xff]  ;;  %v530_v50 = vpack.c.bf16 %v81_v42, %v80_v41  ;;  %v532_v52 = vpack.c.bf16 %v99_v47, %v98_v46 }
  0x56   :  { %v207_v49 = vld [vmem:[#allocation4 + $0x1c8] sm:$0xff]  ;;  %v562_v51 = vpack.c.bf16 %v189_v45, %v188_v44  ;;  %v82_v53 = vld [vmem:[#allocation4 + $0x40] sm:$0xff]  ;;  %v100_v58 = vld [vmem:[#allocation4 + $0xd0] sm:$0xff] }
  0x57   :  { %527 = vmatpush3.bf16.msra.mxu0 %v526_v34  ;;  %v83_v54 = vld [vmem:[#allocation4 + $0x48] sm:$0xff]  ;;  %v190_v55 = vld [vmem:[#allocation4 + $0x140] sm:$0xff]  ;;  %v564_v56 = vpack.c.bf16 %v207_v49, %v206_v48  ;;  %v101_v59 = vld [vmem:[#allocation4 + $0xd8] sm:$0xff] }
  0x58   :  { %559 = vmatpush3.bf16.msra.mxu1 %v558_v38  ;;  %529 = vmatprep.subr.bf16.mxu0 %v528_v39  ;;  %v191_v57 = vld [vmem:[#allocation4 + $0x148] sm:$0xff]  ;;  %v208_v60 = vld [vmem:[#allocation4 + $0x1d0] sm:$0xff]  ;;  %v209_v61 = vld [vmem:[#allocation4 + $0x1d8] sm:$0xff]  ;;  %v534_v62 = vpack.c.bf16 %v83_v54, %v82_v53  ;;  %v536_v0 = vpack.c.bf16 %v101_v59, %v100_v58 }
  0x59   :  { %561 = vmatprep.subr.bf16.mxu1 %v560_v43  ;;  %v566_v63 = vpack.c.bf16 %v191_v57, %v190_v55  ;;  %v84_v1 = vld [vmem:[#allocation4 + $0x50] sm:$0xff]  ;;  %v85_v2 = vld [vmem:[#allocation4 + $0x58] sm:$0xff]  ;;  %v568_v4 = vpack.c.bf16 %v209_v61, %v208_v60  ;;  %v102_v6 = vld [vmem:[#allocation4 + $0xe0] sm:$0xff] }
  0x5a   :  { %v192_v3 = vld [vmem:[#allocation4 + $0x150] sm:$0xff]  ;;  %v193_v5 = vld [vmem:[#allocation4 + $0x158] sm:$0xff]  ;;  %v103_v7 = vld [vmem:[#allocation4 + $0xe8] sm:$0xff]  ;;  %v538_v10 = vpack.c.bf16 %v85_v2, %v84_v1 }
  0x5b   :  { %531 = vmatpush3.bf16.msra.mxu0 %v530_v50  ;;  %v210_v8 = vld [vmem:[#allocation4 + $0x1e0] sm:$0xff]  ;;  %v211_v9 = vld [vmem:[#allocation4 + $0x1e8] sm:$0xff]  ;;  %v570_v12 = vpack.c.bf16 %v193_v5, %v192_v3  ;;  %v540_v13 = vpack.c.bf16 %v103_v7, %v102_v6  ;;  %v104_v19 = vld [vmem:[#allocation4 + $0xf0] sm:$0xff] }
  0x5c   :  { %563 = vmatpush3.bf16.msra.mxu1 %v562_v51  ;;  %533 = vmatprep.subr.bf16.mxu0 %v532_v52  ;;  %v86_v11 = vld [vmem:[#allocation4 + $0x60] sm:$0xff]  ;;  %v87_v14 = vld [vmem:[#allocation4 + $0x68] sm:$0xff]  ;;  %v572_v17 = vpack.c.bf16 %v211_v9, %v210_v8  ;;  %v105_v20 = vld [vmem:[#allocation4 + $0xf8] sm:$0xff] }
  0x5d   :  { %565 = vmatprep.subr.bf16.mxu1 %v564_v56  ;;  %v194_v15 = vld [vmem:[#allocation4 + $0x160] sm:$0xff]  ;;  %v71_v16 = vld [vmem:[#allocation2 + $0x8] sm:$0xff]  ;;  %v212_v21 = vld [vmem:[#allocation4 + $0x1f0] sm:$0xff]  ;;  %v542_v23 = vpack.c.bf16 %v87_v14, %v86_v11  ;;  %v544_v25 = vpack.c.bf16 %v105_v20, %v104_v19 }
  0x5e   :  { %v195_v18 = vld [vmem:[#allocation4 + $0x168] sm:$0xff]  ;;  %170 = vmatprep.mubr.f32.mxu0 %v71_v16  ;;  %v213_v22 = vld [vmem:[#allocation4 + $0x1f8] sm:$0xff]  ;;  %278 = vmatprep.mubr.f32.mxu1 %v71_v16  ;;  %v88_v26 = vld [vmem:[#allocation4 + $0x70] sm:$0xff] }
  0x5f   :  { %535 = vmatpush3.bf16.msra.mxu0 %v534_v62  ;;  %v574_v24 = vpack.c.bf16 %v195_v18, %v194_v15  ;;  %v89_v27 = vld [vmem:[#allocation4 + $0x78] sm:$0xff]  ;;  %v196_v28 = vld [vmem:[#allocation4 + $0x170] sm:$0xff]  ;;  %v576_v29 = vpack.c.bf16 %v213_v22, %v212_v21  ;;  %v289_v31 = vld [vmem:[#allocation6] sm:$0xff] }
  0x60   :  { %567 = vmatpush3.bf16.msra.mxu1 %v566_v63  ;;  %537 = vmatprep.subr.bf16.mxu0 %v536_v0  ;;  %v197_v30 = vld [vmem:[#allocation4 + $0x178] sm:$0xff]  ;;  %v290_v32 = vld [vmem:[#allocation6 + $0x8] sm:$0xff]  ;;  %v546_v33 = vpack.c.bf16 %v89_v27, %v88_v26  ;;  %v70_v36 = vld [vmem:[#allocation2] sm:$0xff] }
  0x61   :  { %569 = vmatprep.subr.bf16.mxu1 %v568_v4  ;;  %v578_v34 = vpack.c.bf16 %v197_v30, %v196_v28  ;;  %v580_v35 = vpack.c.bf16 %v290_v32, %v289_v31  ;;  %v73_v37 = vld [vmem:[#allocation2 + $0x18] sm:$0xff]  ;;  %v72_v38 = vld [vmem:[#allocation2 + $0x10] sm:$0xff]  ;;  %v413_v54 = vld [vmem:[#allocation7] ss:$0 sm:$0xff] }
  0x62   :  { %v291_v39 = vld [vmem:[#allocation6 + $0x10] sm:$0xff]  ;;  %v292_v40 = vld [vmem:[#allocation6 + $0x18] sm:$0xff] }
  0x63   :  { %539 = vmatpush3.bf16.msra.mxu0 %v538_v10  ;;  %v584_v41 = vpack.c.bf16 %v292_v40, %v291_v39 }
  0x64   :  { %571 = vmatpush3.bf16.msra.mxu1 %v570_v12  ;;  %541 = vmatprep.subr.bf16.mxu0 %v540_v13 }
  0x65   :  { %573 = vmatprep.subr.bf16.mxu1 %v572_v17 }
  0x67   :  { %543 = vmatpush3.bf16.msra.mxu0 %v542_v23 }
  0x68   :  { %575 = vmatpush3.bf16.msra.mxu1 %v574_v24  ;;  %545 = vmatprep.subr.bf16.mxu0 %v544_v25 }
  0x69   :  { %577 = vmatprep.subr.bf16.mxu1 %v576_v29 }
  0x6b   :  { %547 = vmatpush3.bf16.msra.mxu0 %v546_v33 }
  0x6c   :  { %579 = vmatpush3.bf16.msra.mxu1 %v578_v34  ;;  %581 = vmatprep.subr.bf16.mxu0 %v580_v35 }
  0x6d   :  { %588 = vmatprep.subr.bf16.mxu1 %v580_v35 }
  0x6e   :  { %171 = vmatmul.mubr.f32.vlgmr.msra.gmra.mrb[0].mxu0 %v70_v36 }
  0x6f   :  { %279 = vmatmul.mubr.f32.vlgmr.msra.gmra.mrb[0].mxu1 %v70_v36  ;;  %175 = vmatprep.mubr.f32.mxu0 %v73_v37 }
  0x70   :  { %283 = vmatprep.mubr.f32.mxu1 %v73_v37  ;;  %583 = vmatpush3.bf16.msra.mxu0 %v580_v35 }
  0x71   :  { %590 = vmatpush3.bf16.msra.mxu1 %v580_v35  ;;  %585 = vmatprep.subr.bf16.mxu0 %v584_v41 }
  0x72   :  { %176 = vmatmul.mubr.f32.gmra.mrb[2].mxu0 %v72_v38  ;;  %589 = vmatprep.subr.bf16.mxu1 %v584_v41 }
  0x73   :  { %284 = vmatmul.mubr.f32.gmra.mrb[2].mxu1 %v72_v38 }
  0x74   :  { %587 = vmatpush3.bf16.msra.mxu0 %v584_v41 }
  0x75   :  { %591 = vmatpush3.bf16.msra.mxu1 %v584_v41 }
 0x141   :  { %v450_v42 = vpop.f32.mrb[0].mxu0 }
 0x142   :  { %v488_v43 = vpop.f32.mrb[0].mxu1  ;;  %v451_v44 = vpop.f32.mrb[1].mxu0 }
 0x143   :  { %v452_v45 = vadd.f32 %v451_v44, %v450_v42  ;;  %v489_v46 = vpop.f32.mrb[1].mxu1 }
 0x144   :  { %v490_v47 = vadd.f32 %v489_v46, %v488_v43 }
 0x145   :  { %v453_v48 = vpop.f32.mrb[2].mxu0  ;;  %510 = vmatprep.mubr.msk.f32.mxu0 %vm300_vm0, %v452_v45 }
 0x146   :  { %v491_v49 = vpop.f32.mrb[2].mxu1  ;;  %513 = vmatprep.mubr.msk.f32.mxu1 %vm300_vm0, %v490_v47  ;;  %v454_v50 = vpop.f32.mrb[3].mxu0 }
 0x147   :  { %v455_v51 = vadd.f32 %v454_v50, %v453_v48  ;;  %v492_v52 = vpop.f32.mrb[3].mxu1 }
 0x148   :  { %v493_v53 = vadd.f32 %v492_v52, %v491_v49 }
 0x149   :  { %511 = vmatmul.mubr.msk.f32.vlgmr.msra.gmra.mrb[4].mxu0 %vm300_vm0, %v455_v51 }
 0x14a   :  { %514 = vmatmul.mubr.msk.f32.vlgmr.msra.gmra.mrb[4].mxu1 %vm300_vm0, %v493_v53 }
 0x21c   :  { %v512_v55 = vpop.f32.mrb[4].mxu0 }
 0x21d   :  { %v385_v56 = vadd.f32 %v512_v55, %v413_v54  ;;  %v515_v57 = vpop.f32.mrb[4].mxu1  ;;  %v379_v58 = vpop.f32.mrb[5].mxu0 }
 0x21e   :  { %v395_v59 = vadd.f32 %v515_v57, %v413_v54  ;;  %v380_v60 = vadd.f32 %v413_v54, %v379_v58  ;;  %v389_v61 = vpop.f32.mrb[5].mxu1 }
 0x21f   :  { %v399_v62 = vmax.f32 %v385_v56, 0.0  ;;  %v390_v63 = vadd.f32 %v413_v54, %v389_v61 }
 0x220   :  { %v401_v0 = vmax.f32 %v395_v59, 0.0  ;;  %v398_v1 = vmax.f32 %v380_v60, 0.0 }
 0x221   :  { %403 = vst [vmem:[%s797_s4 + $0x8] sm:$0xff] %v399_v62  ;;  %v400_v2 = vmax.f32 %v390_v63, 0.0 }
 0x222   :  { %405 = vst [vmem:[%s797_s4 + $0x18] sm:$0xff] %v401_v0  ;;  %402 = vst [vmem:[%s797_s4] sm:$0xff] %v398_v1 }
 0x223   :  { %404 = vst [vmem:[%s797_s4 + $0x10] sm:$0xff] %v400_v2 }
 0x224   :  { %410 = vsyncpa [#allocation3], 1 }
 0x225   :  { %411 = vsyncpa [#allocation5], 1 }
 0x226   :  { %412 = vsyncpa [#allocation8], 1 }

// kernel: inception_aux.3
= control target key start
LH: loop header
LB: loop body
LE: loop exit
PB: predicated region body
PF: predicated region fallthrough
CT: control target
= control target key end

     0   :  { %10 = vsyncpa [#allocation4], 0  ;;  %s6907_s0 = inlined_call_operand.vmem [shape: f32[2,2048], index: 0, kind: input, shape index: {}]   ;;  %s6908_s1 = inlined_call_operand.hbm [shape: bf16[2048,1024], index: 1, kind: input, shape index: {}]   ;;  %s6909_s2 = inlined_call_operand.hbm [shape: f32[1,1024], index: 2, kind: input, shape index: {}]   ;;  %s6910_s3 = inlined_call_operand.hbm [shape: bf16[1024,128], index: 3, kind: input, shape index: {}]   ;;  %s6911_s4 = inlined_call_operand.hbm [shape: f32[1,128], index: 4, kind: input, shape index: {}]   ;;  %s6912_s5 = inlined_call_operand.hbm [shape: f32[2,128], index: 5, kind: output, shape index: {}]  }
   0x1   :  { %12 = vsyncpa [#allocation4 + $0x1], 0 }
   0x2   :  { %13 = vsyncpa [#allocation7], 0 }
   0x3   :  { %14 = vsyncpa [#allocation10], 0 }
   0x4   :  { %15 = vsyncpa [#allocation5], 0  ;;  %s6068_s18 = smov 0   ;;  %s6070_s19 = smov 0  }
   0x5   :  { %s6072_s20 = smov 0   ;;  %s6074_s21 = smov 0  }
   0x6 LB: > { %s6087_s22 = sadd.s32 4294967295, %s6025_s21   ;;  %p67_p0 = scmp.ne.s32.totalorder %s6017_s19, %s6013_s18  ;;  %s6025_s21 = sphi %s6074_s21, %s6931_s21   ;;  %s6021_s20 = sphi %s6072_s20, %s6930_s20   ;;  %s6017_s19 = sphi %s6070_s19, %s6929_s19   ;;  %s6013_s18 = sphi %s6068_s18, %s6928_s18  }
   0x7   : > { %p6913_p1 = scmp.eq.s32.totalorder %s6087_s22, 0  ;;  %p4989_p2 = scmp.ge.s32.totalorder %s6025_s21, 1 }
   0x8   : > { %p162_p3 = scmp.lt.s32.totalorder %s6025_s21, 3  ;;  %s6027_s25 = smov [#allocation6]  }
   0x9   : > { %p6096_p5 = por %p6913_p1, %p67_p0  ;;  %s175_s26 = sshll.u32 %s6027_s25, 4  ;;  %s176_s26 = int_to_ptr.vmem [resolvable:$true] %s175_s26 }
   0xa   : > { %p6100_p6 = pnand %p4989_p2, %p162_p3  ;;  %s6028_s27 = smov [#allocation8]  }
   0xb   : > { %s6916_s23 = scalar_select %p6096_p5, 1, 0 }
   0xc   : > { %s6917_s24 = scalar_select %p6100_p6, 1, 0 }
   0xd   : > { %p5708_p7 = pneg %p6100_p6  ;;  %s185_s28 = sshll.u32 %s6028_s27, 4  ;;  %s6112_s28 = int_to_ptr.vmem [resolvable:$true] %s185_s28 }
   0xe   : > { %s6029_s30 = smov [#allocation9]   ;;  %s5839_s9 = scalar_lea.hbm %s6909_s2, 128 }
   0xf   : > { %p6108_p8 = pnand %p5708_p7, %p6913_p1  ;;  %s6114_s6 = sshll.u32 %s6029_s30, 4  ;;  %s200_s6 = int_to_ptr.vmem [resolvable:$true] %s6114_s6 }
  0x10   : > { %p5840_p9 = scmp.ne.s32.totalorder %s6909_s2, %s5839_s9  ;;  %p5846_p13 = scmp.lt.u32.totalorder %s5839_s9, %s6909_s2 }
  0x11   : > { %p6124_p10 = pneg %p6108_p8 }
  0x13   : > { %p5842_p11 = pnand %p6124_p10, %p5840_p9 }
  0x15   : > { %p5843_p12 = pneg %p5842_p11 }
  0x17   : > { %p5848_p0 = pnand %p5846_p13, %p5843_p12 }
  0x19   : > { %5851 = shalt.err (!%p5848_p0)
}
  0x1a   : > { %s5852_s15 = scalar_lea.vmem %s176_s26, 128  ;;  %p5860_p4 = scmp.lt.s32.totalorder %s176_s26, %s176_s26 }
  0x1b   : > { %p5853_p2 = scmp.ne.s32.totalorder %s176_s26, %s5852_s15  ;;  %p5861_p1 = scmp.lt.s32.totalorder %s5852_s15, %s5852_s15 }
  0x1d   : > { %p5855_p3 = pnand %p5853_p2, %p6124_p10  ;;  %p5862_p5 = por %p5861_p1, %p5860_p4 }
  0x1f   : > { %p5856_p7 = pneg %p5855_p3 }
  0x21   : > { %p5863_p6 = pnand %p5862_p5, %p5856_p7 }
  0x23   : > { %5866 = shalt.err (!%p5863_p6)
}
  0x24   : > { %5711 = dma.hbm_to_vmem [thread:$0]  (!%p6108_p8), %s6909_s2, 128, %s176_s26, [#allocation7]  }
  0x25   : > { %s5867_s27 = scalar_lea.hbm %s6910_s3, 8192 }
  0x26   : > { %p5868_p9 = scmp.ne.s32.totalorder %s6910_s3, %s5867_s27  ;;  %p5874_p4 = scmp.lt.u32.totalorder %s5867_s27, %s6910_s3 }
  0x28   : > { %p5870_p11 = pnand %p5868_p9, %p6124_p10 }
  0x2a   : > { %p5871_p1 = pneg %p5870_p11 }
  0x2c   : > { %p5876_p5 = pnand %p5874_p4, %p5871_p1 }
  0x2e   : > { %5879 = shalt.err (!%p5876_p5)
}
  0x2f   : > { %s5880_s26 = scalar_lea.vmem %s6112_s28, 8192  ;;  %p5888_p0 = scmp.lt.s32.totalorder %s6112_s28, %s6112_s28 }
  0x30   : > { %p5881_p6 = scmp.ne.s32.totalorder %s6112_s28, %s5880_s26  ;;  %p5889_p2 = scmp.lt.s32.totalorder %s5880_s26, %s5880_s26 }
  0x32   : > { %p5883_p12 = pnand %p5881_p6, %p6124_p10  ;;  %p5890_p3 = por %p5889_p2, %p5888_p0 }
  0x34   : > { %p5884_p13 = pneg %p5883_p12 }
  0x36   : > { %p5891_p7 = pnand %p5890_p3, %p5884_p13 }
  0x38   : > { %5894 = shalt.err (!%p5891_p7)
}
  0x39   : > { %s6030_s10 = smov 64   ;;  %s6031_s11 = smov 4  }
  0x3a   : > { %5714 = dma.hbm_to_vmem [thread:$0]  (!%p6108_p8), %s6910_s3, 8192, %s6112_s28, [#allocation7], %s6030_s10, %s6030_s10, %s6031_s11  }
  0x3b   : > { %s5895_s17 = scalar_lea.hbm %s6911_s4, 16 }
  0x3c   : > { %p5896_p9 = scmp.ne.s32.totalorder %s6911_s4, %s5895_s17  ;;  %p5902_p4 = scmp.lt.u32.totalorder %s5895_s17, %s6911_s4 }
  0x3e   : > { %p5898_p11 = pnand %p5896_p9, %p6124_p10 }
  0x40   : > { %p5899_p1 = pneg %p5898_p11 }
  0x42   : > { %p5904_p5 = pnand %p5902_p4, %p5899_p1 }
  0x44   : > { %5907 = shalt.err (!%p5904_p5)
}
  0x45   : > { %s5908_s7 = scalar_lea.vmem %s200_s6, 16  ;;  %s5915_s28 = scalar_lea.vmem %s200_s6, 32 }
  0x46   : > { %p5909_p6 = scmp.ne.s32.totalorder %s200_s6, %s5908_s7  ;;  %p5916_p0 = scmp.lt.s32.totalorder %s200_s6, %s200_s6 }
  0x47   : > { %p5917_p2 = scmp.lt.s32.totalorder %s5915_s28, %s5908_s7 }
  0x48   : > { %p5911_p12 = pnand %p5909_p6, %p6124_p10 }
  0x49   : > { %p5918_p3 = por %p5917_p2, %p5916_p0 }
  0x4a   : > { %p5912_p13 = pneg %p5911_p12 }
  0x4c   : > { %p5919_p7 = pnand %p5918_p3, %p5912_p13 }
  0x4e   : > { %5922 = shalt.err (!%p5919_p7)
}
  0x4f   : > { %5717 = dma.hbm_to_vmem [thread:$0]  (!%p6108_p8), %s6911_s4, 16, %s200_s6, [#allocation10]  }
  0x50   : > { %s6183_s12 = sadd.s32 1, %s6025_s21   ;;  %s54_s10 = sadd.s32 1, %s6021_s20 }
  0x51   : > { %s51_s26 = ssub.s32 %s6025_s21, %s6183_s12  ;;  %p61_p9 = scmp.ne.s32.totalorder %s6021_s20, %s6017_s19 }
  0x52   : > { %p52_p10 = scmp.eq.s32.totalorder %s51_s26, 0  ;;  %p62_p11 = scmp.eq.s32.totalorder %s6025_s21, 0 }
  0x53   : > { %p5725_p1 = scmp.lt.s32.totalorder %s6025_s21, 2  ;;  %s219_s11 = sand.u32 1, %s6021_s20  }
  0x54   : > { %s6193_s29 = scalar_select %p52_p10, %s6021_s20, %s54_s10  }
  0x55   : > { %p63_p4 = por %p62_p11, %p61_p9  ;;  %s4994_s13 = sshll.u32 %s219_s11, 12 }
  0x56   : > { %s5589_s14 = sshll.u32 %s6025_s21, 16  ;;  %s223_s6 = scalar_lea.vmem [#allocation3], %s4994_s13 }
  0x57   : > { %s6200_s17 = scalar_lea.hbm %s6908_s1, %s5589_s14  ;;  %s231_s18 = sshll.u32 %s223_s6, 4  ;;  %s6202_s18 = int_to_ptr.vmem [resolvable:$true] %s231_s18 }
  0x58   : > { %p6204_p8 = pnand %p5725_p1, %p63_p4  ;;  %s6208_s21 = scalar_lea.sflag [#allocation4], %s219_s11 }
  0x59   : > { %s5923_s27 = scalar_lea.hbm %s6200_s17, 65536  ;;  %s5928_s28 = scalar_lea.hbm %s6908_s1, 131072 }
  0x5a   : > { %p5924_p5 = scmp.ne.s32.totalorder %s6200_s17, %s5923_s27  ;;  %p5925_p6 = pneg %p6204_p8 }
  0x5b   : > { %p5929_p0 = scmp.lt.u32.totalorder %s6200_s17, %s6908_s1  ;;  %p5930_p2 = scmp.lt.u32.totalorder %s5928_s28, %s5923_s27 }
  0x5c   : > { %p5926_p12 = pnand %p5925_p6, %p5924_p5  ;;  %p5932_p7 = scmp.lt.u32.totalorder %s5923_s27, %s6200_s17 }
  0x5d   : > { %p5931_p3 = por %p5930_p2, %p5929_p0 }
  0x5e   : > { %p5927_p13 = pneg %p5926_p12 }
  0x5f   : > { %p5933_p10 = por %p5932_p7, %p5931_p3 }
  0x61   : > { %p5934_p9 = pnand %p5933_p10, %p5927_p13 }
  0x63   : > { %5937 = shalt.err (!%p5934_p9)
}
  0x64   : > { %s5938_s26 = scalar_lea.vmem %s6202_s18, 65536  ;;  %s6032_s10 = smov [#allocation3]  }
  0x65   : > { %p5939_p11 = scmp.ne.s32.totalorder %s6202_s18, %s5938_s26  ;;  %s5943_s11 = sshll.u32 %s6032_s10, 4  ;;  %s5944_s11 = int_to_ptr.vmem [resolvable:$false] %s5943_s11 }
  0x66   : > { %s5945_s13 = scalar_lea.vmem %s5944_s11, 131072  ;;  %p5946_p5 = scmp.lt.s32.totalorder %s6202_s18, %s5944_s11 }
  0x67   : > { %p5941_p1 = pnand %p5939_p11, %p5925_p6  ;;  %p5947_p12 = scmp.lt.s32.totalorder %s5945_s13, %s5938_s26 }
  0x69   : > { %p5942_p4 = pneg %p5941_p1  ;;  %p5948_p0 = por %p5947_p12, %p5946_p5 }
  0x6b   : > { %p5949_p2 = pnand %p5948_p0, %p5942_p4 }
  0x6d   : > { %5952 = shalt.err (!%p5949_p2)
}
  0x6e   : > { %s6033_s14 = smov 512   ;;  %s6034_s15 = smov 32  }
  0x6f   : > { %5721 = dma.hbm_to_vmem [thread:$0]  (!%p6204_p8), %s6200_s17, 65536, %s6202_s18, %s6208_s21, %s6033_s14, %s6033_s14, %s6034_s15  }
  0x70   : > { %p6921_p6 = scmp.ne.s32.totalorder %s6917_s24, 0 }
  0x71   : > { %s245_s16 = sand.u32 (!%p6921_p6), 1, %s6017_s19   ;;  %p6922_p13 = scmp.ne.s32.totalorder (!%p6921_p6), %s6916_s23, 0 }
  0x72   : > { %243 = sbr.rel (%p6921_p6) target bundleno = 1150 (0x47e), region = 40  ;;  %s4999_s6 = sshll.u32 (!%p6921_p6), %s245_s16, 12 }
  0x73   : > { %s246_s27 = scalar_lea.sflag (!%p6921_p6), [#allocation4], %s245_s16  ;;  %s6239_s30 = scalar_lea.vmem (!%p6921_p6), [#allocation3], %s4999_s6 }
  0x79   : > { %5996 = dma.done.wait (%p6922_p13), %s246_s27, 65536  }
  0x7a   : > { %5998 = vsyncadd (%p6922_p13), %s246_s27, 4294901760  ;;  %p6923_p3 = scmp.eq.s32.totalorder %s6087_s22, 0 }
  0x7c   : > { %6000 = dma.done.wait (%p6923_p3), [#allocation7], 8320   ;;  %p6924_p8 = pmov %p6923_p3 }
  0x7d   : > { %p6925_p7 = pmov %p6923_p3 }
  0x7e   : > { %6002 = vsyncadd (%p6924_p8), [#allocation7], 4294958976 }
  0x7f   : > { %6004 = dma.done.wait (%p6925_p7), [#allocation10], 16   ;;  %p6926_p10 = pmov %p6923_p3 }
  0x80   : > { %s5003_s24 = sshll.u32 %s6087_s22, 3  ;;  %p6927_p11 = scmp.ne.s32.totalorder %s6087_s22, 0 }
  0x81   : > { %6006 = vsyncadd (%p6926_p10), [#allocation10], 4294967280  ;;  %p289_p9 = scmp.lt.s32.totalorder %s5003_s24, 15  ;;  %v6035_v0 = vmov (!%p6927_p11), 0.0  }
  0x82   : > { %299 = sbr.rel (%p6927_p11) target bundleno = 137 (0x89), region = 60  ;;  %300 = vst [vmem:[#allocation2] sm:$0xff] (!%p6927_p11), %v6035_v0  ;;  %301 = vst [vmem:[#allocation2 + $0x8] sm:$0xff] (!%p6927_p11), %v6035_v0 }
  0x83   : > { %s6933_s24 = smov (!%p289_p9, %s5003_s24), 15 }
  0x84   : > { %s5004_s17 = sshll.u32 %s6933_s24, 1 }
  0x85   : > { %s6257_s25 = scalar_lea.vmem %s6907_s0, %s5004_s17 }
  0x89 PF: > { %v306_v1 = vld [vmem:[%s6239_s30] sm:$0xff]  ;;  %v307_v3 = vld [vmem:[%s6239_s30 + $0x8] sm:$0xff]  ;;  %v6036_v33 = vmov 1983009808   ;;  %v824_v35 = vlaneseq  ;;  %v6295_v60 = vld [vmem:[%s6257_s25] sm:$0xff]  ;;  %p5518_p1 = scmp.ne.s32.totalorder %s6087_s22, 1 }
  0x8a   : > { %v310_v2 = vld [vmem:[%s6239_s30 + $0x20] sm:$0xff]  ;;  %v311_v5 = vld [vmem:[%s6239_s30 + $0x28] sm:$0xff]  ;;  %v822_v34 = vunpack.c.l.s4 %v6036_v33 }
  0x8b   : > { %v5007_v4 = vcombine.high %v306_v1, %v310_v2  ;;  %v5006_v6 = vcombine.low %v306_v1, %v310_v2  ;;  %v314_v7 = vld [vmem:[%s6239_s30 + $0x40] sm:$0xff]  ;;  %v5009_v9 = vcombine.high %v307_v3, %v311_v5  ;;  %v5008_v10 = vcombine.low %v307_v3, %v311_v5  ;;  %v315_v12 = vld [vmem:[%s6239_s30 + $0x48] sm:$0xff] }
  0x8c   : > { %v318_v8 = vld [vmem:[%s6239_s30 + $0x60] sm:$0xff]  ;;  %v319_v13 = vld [vmem:[%s6239_s30 + $0x68] sm:$0xff]  ;;  %v823_v44 = vunpack.c.0.s8 %v822_v34  ;;  %v6283_v45 = vshrl.u32 %v824_v35, 7 }
  0x8d   : > { %v5015_v11 = vcombine.high %v314_v7, %v318_v8  ;;  %v322_v14 = vld [vmem:[%s6239_s30 + $0x80] sm:$0xff]  ;;  %3422 = vmatprep.subr.bf16.mxu0 %v5007_v4  ;;  %v5017_v15 = vcombine.high %v315_v12, %v319_v13  ;;  %v323_v17 = vld [vmem:[%s6239_s30 + $0x88] sm:$0xff]  ;;  %3578 = vmatprep.subr.bf16.mxu1 %v5009_v9  ;;  %v5014_v19 = vcombine.low %v314_v7, %v318_v8 }
  0x8e   : > { %v326_v16 = vld [vmem:[%s6239_s30 + $0xa0] sm:$0xff]  ;;  %v327_v18 = vld [vmem:[%s6239_s30 + $0xa8] sm:$0xff]  ;;  %3423 = vmatpush1.bf16.msra.mxu0 %v5006_v6  ;;  %3579 = vmatpush1.bf16.msra.mxu1 %v5008_v10  ;;  %v5016_v20 = vcombine.low %v315_v12, %v319_v13  ;;  %v6290_v54 = vsub.s32 %v823_v44, %v6283_v45 }
  0x8f   : > { %3424 = vmatprep.subr.bf16.mxu0 %v5015_v11  ;;  %v5023_v21 = vcombine.high %v322_v14, %v326_v16  ;;  %3580 = vmatprep.subr.bf16.mxu1 %v5017_v15  ;;  %v5025_v22 = vcombine.high %v323_v17, %v327_v18  ;;  %v330_v23 = vld [vmem:[%s6239_s30 + $0xc0] sm:$0xff]  ;;  %v331_v25 = vld [vmem:[%s6239_s30 + $0xc8] sm:$0xff]  ;;  %v5022_v27 = vcombine.low %v322_v14, %v326_v16 }
  0x90   : > { %v334_v24 = vld [vmem:[%s6239_s30 + $0xe0] sm:$0xff]  ;;  %v335_v26 = vld [vmem:[%s6239_s30 + $0xe8] sm:$0xff]  ;;  %v5024_v28 = vcombine.low %v323_v17, %v327_v18  ;;  %v6301_v0 = vrot.slane %v6295_v60, %v6290_v54 }
  0x91   : > { %v5031_v29 = vcombine.high %v330_v23, %v334_v24  ;;  %v5033_v30 = vcombine.high %v331_v25, %v335_v26  ;;  %v338_v31 = vld [vmem:[%s6239_s30 + $0x100] sm:$0xff]  ;;  %v339_v36 = vld [vmem:[%s6239_s30 + $0x108] sm:$0xff]  ;;  %v5030_v38 = vcombine.low %v330_v23, %v334_v24  ;;  %v5032_v39 = vcombine.low %v331_v25, %v335_v26 }
  0x92   : > { %3425 = vmatpush1.bf16.msra.mxu0 %v5014_v19  ;;  %3581 = vmatpush1.bf16.msra.mxu1 %v5016_v20  ;;  %v342_v32 = vld [vmem:[%s6239_s30 + $0x120] sm:$0xff]  ;;  %v343_v37 = vld [vmem:[%s6239_s30 + $0x128] sm:$0xff]  ;;  %v6307_v4 = vcombine.high %v6301_v0, %v6301_v0 }
  0x93   : > { %3426 = vmatprep.subr.bf16.mxu0 %v5023_v21  ;;  %3582 = vmatprep.subr.bf16.mxu1 %v5025_v22  ;;  %v5039_v40 = vcombine.high %v338_v31, %v342_v32  ;;  %v5041_v41 = vcombine.high %v339_v36, %v343_v37  ;;  %v346_v42 = vld [vmem:[%s6239_s30 + $0x140] sm:$0xff]  ;;  %v347_v46 = vld [vmem:[%s6239_s30 + $0x148] sm:$0xff]  ;;  %v5038_v48 = vcombine.low %v338_v31, %v342_v32 }
  0x94   : > { %v350_v43 = vld [vmem:[%s6239_s30 + $0x160] sm:$0xff]  ;;  %v351_v47 = vld [vmem:[%s6239_s30 + $0x168] sm:$0xff]  ;;  %v5040_v49 = vcombine.low %v339_v36, %v343_v37  ;;  %3454 = vmatprep.mubr.f32.mxu0 %v6307_v4  ;;  %3610 = vmatprep.mubr.f32.mxu1 %v6307_v4 }
  0x95   : > { %v5047_v50 = vcombine.high %v346_v42, %v350_v43  ;;  %v5049_v51 = vcombine.high %v347_v46, %v351_v47  ;;  %v354_v52 = vld [vmem:[%s6239_s30 + $0x180] sm:$0xff]  ;;  %v355_v55 = vld [vmem:[%s6239_s30 + $0x188] sm:$0xff]  ;;  %v5046_v57 = vcombine.low %v346_v42, %v350_v43  ;;  %v5048_v58 = vcombine.low %v347_v46, %v351_v47 }
  0x96   : > { %3427 = vmatpush1.bf16.msra.mxu0 %v5022_v27  ;;  %3583 = vmatpush1.bf16.msra.mxu1 %v5024_v28  ;;  %v358_v53 = vld [vmem:[%s6239_s30 + $0x1a0] sm:$0xff]  ;;  %v359_v56 = vld [vmem:[%s6239_s30 + $0x1a8] sm:$0xff] }
  0x97   : > { %3428 = vmatprep.subr.bf16.mxu0 %v5031_v29  ;;  %3584 = vmatprep.subr.bf16.mxu1 %v5033_v30  ;;  %v5055_v59 = vcombine.high %v354_v52, %v358_v53  ;;  %v5057_v61 = vcombine.high %v355_v55, %v359_v56  ;;  %v362_v62 = vld [vmem:[%s6239_s30 + $0x1c0] sm:$0xff]  ;;  %v363_v1 = vld [vmem:[%s6239_s30 + $0x1c8] sm:$0xff]  ;;  %v5054_v3 = vcombine.low %v354_v52, %v358_v53 }
  0x98   : > { %v366_v63 = vld [vmem:[%s6239_s30 + $0x1e0] sm:$0xff]  ;;  %v367_v2 = vld [vmem:[%s6239_s30 + $0x1e8] sm:$0xff]  ;;  %v5056_v5 = vcombine.low %v355_v55, %v359_v56 }
  0x99   : > { %v5063_v6 = vcombine.high %v362_v62, %v366_v63  ;;  %v5065_v7 = vcombine.high %v363_v1, %v367_v2  ;;  %v370_v8 = vld [vmem:[%s6239_s30 + $0x200] sm:$0xff]  ;;  %v371_v10 = vld [vmem:[%s6239_s30 + $0x208] sm:$0xff]  ;;  %v5062_v12 = vcombine.low %v362_v62, %v366_v63  ;;  %v5064_v13 = vcombine.low %v363_v1, %v367_v2 }
  0x9a   : > { %3429 = vmatpush1.bf16.msra.mxu0 %v5030_v38  ;;  %3585 = vmatpush1.bf16.msra.mxu1 %v5032_v39  ;;  %v374_v9 = vld [vmem:[%s6239_s30 + $0x220] sm:$0xff]  ;;  %v375_v11 = vld [vmem:[%s6239_s30 + $0x228] sm:$0xff] }
  0x9b   : > { %3430 = vmatprep.subr.bf16.mxu0 %v5039_v40  ;;  %3586 = vmatprep.subr.bf16.mxu1 %v5041_v41  ;;  %v5071_v14 = vcombine.high %v370_v8, %v374_v9  ;;  %v5073_v15 = vcombine.high %v371_v10, %v375_v11  ;;  %v378_v16 = vld [vmem:[%s6239_s30 + $0x240] sm:$0xff]  ;;  %v379_v18 = vld [vmem:[%s6239_s30 + $0x248] sm:$0xff]  ;;  %v5070_v20 = vcombine.low %v370_v8, %v374_v9 }
  0x9c   : > { %v382_v17 = vld [vmem:[%s6239_s30 + $0x260] sm:$0xff]  ;;  %v383_v19 = vld [vmem:[%s6239_s30 + $0x268] sm:$0xff]  ;;  %v5072_v21 = vcombine.low %v371_v10, %v375_v11 }
  0x9d   : > { %v5079_v22 = vcombine.high %v378_v16, %v382_v17  ;;  %v5081_v23 = vcombine.high %v379_v18, %v383_v19  ;;  %v386_v24 = vld [vmem:[%s6239_s30 + $0x280] sm:$0xff]  ;;  %v387_v26 = vld [vmem:[%s6239_s30 + $0x288] sm:$0xff]  ;;  %v5078_v28 = vcombine.low %v378_v16, %v382_v17  ;;  %v5080_v29 = vcombine.low %v379_v18, %v383_v19 }
  0x9e   : > { %3431 = vmatpush1.bf16.msra.mxu0 %v5038_v48  ;;  %3587 = vmatpush1.bf16.msra.mxu1 %v5040_v49  ;;  %v390_v25 = vld [vmem:[%s6239_s30 + $0x2a0] sm:$0xff]  ;;  %v391_v27 = vld [vmem:[%s6239_s30 + $0x2a8] sm:$0xff] }
  0x9f   : > { %3432 = vmatprep.subr.bf16.mxu0 %v5047_v50  ;;  %3588 = vmatprep.subr.bf16.mxu1 %v5049_v51  ;;  %v5087_v30 = vcombine.high %v386_v24, %v390_v25  ;;  %v5089_v31 = vcombine.high %v387_v26, %v391_v27  ;;  %v394_v32 = vld [vmem:[%s6239_s30 + $0x2c0] sm:$0xff]  ;;  %v395_v34 = vld [vmem:[%s6239_s30 + $0x2c8] sm:$0xff]  ;;  %v5086_v36 = vcombine.low %v386_v24, %v390_v25 }
  0xa0   : > { %v398_v33 = vld [vmem:[%s6239_s30 + $0x2e0] sm:$0xff]  ;;  %v399_v35 = vld [vmem:[%s6239_s30 + $0x2e8] sm:$0xff]  ;;  %v5088_v37 = vcombine.low %v387_v26, %v391_v27 }
  0xa1   : > { %v5095_v38 = vcombine.high %v394_v32, %v398_v33  ;;  %v5097_v39 = vcombine.high %v395_v34, %v399_v35  ;;  %v402_v40 = vld [vmem:[%s6239_s30 + $0x300] sm:$0xff]  ;;  %v403_v42 = vld [vmem:[%s6239_s30 + $0x308] sm:$0xff]  ;;  %v5094_v44 = vcombine.low %v394_v32, %v398_v33  ;;  %v5096_v46 = vcombine.low %v395_v34, %v399_v35 }
  0xa2   : > { %3433 = vmatpush1.bf16.msra.mxu0 %v5046_v57  ;;  %3589 = vmatpush1.bf16.msra.mxu1 %v5048_v58  ;;  %v406_v41 = vld [vmem:[%s6239_s30 + $0x320] sm:$0xff]  ;;  %v407_v43 = vld [vmem:[%s6239_s30 + $0x328] sm:$0xff] }
  0xa3   : > { %3434 = vmatprep.subr.bf16.mxu0 %v5055_v59  ;;  %3590 = vmatprep.subr.bf16.mxu1 %v5057_v61  ;;  %v5103_v47 = vcombine.high %v402_v40, %v406_v41  ;;  %v5105_v48 = vcombine.high %v403_v42, %v407_v43  ;;  %v410_v49 = vld [vmem:[%s6239_s30 + $0x340] sm:$0xff]  ;;  %v411_v51 = vld [vmem:[%s6239_s30 + $0x348] sm:$0xff]  ;;  %v5102_v53 = vcombine.low %v402_v40, %v406_v41 }
  0xa4   : > { %v414_v50 = vld [vmem:[%s6239_s30 + $0x360] sm:$0xff]  ;;  %v415_v52 = vld [vmem:[%s6239_s30 + $0x368] sm:$0xff]  ;;  %v5104_v55 = vcombine.low %v403_v42, %v407_v43 }
  0xa5   : > { %v5111_v56 = vcombine.high %v410_v49, %v414_v50  ;;  %v5113_v57 = vcombine.high %v411_v51, %v415_v52  ;;  %v418_v58 = vld [vmem:[%s6239_s30 + $0x380] sm:$0xff]  ;;  %v419_v61 = vld [vmem:[%s6239_s30 + $0x388] sm:$0xff]  ;;  %v5110_v63 = vcombine.low %v410_v49, %v414_v50  ;;  %v5112_v1 = vcombine.low %v411_v51, %v415_v52 }
  0xa6   : > { %3435 = vmatpush1.bf16.msra.mxu0 %v5054_v3  ;;  %3591 = vmatpush1.bf16.msra.mxu1 %v5056_v5  ;;  %v422_v59 = vld [vmem:[%s6239_s30 + $0x3a0] sm:$0xff]  ;;  %v423_v62 = vld [vmem:[%s6239_s30 + $0x3a8] sm:$0xff] }
  0xa7   : > { %3436 = vmatprep.subr.bf16.mxu0 %v5063_v6  ;;  %3592 = vmatprep.subr.bf16.mxu1 %v5065_v7  ;;  %v5119_v2 = vcombine.high %v418_v58, %v422_v59  ;;  %v5121_v3 = vcombine.high %v419_v61, %v423_v62  ;;  %v426_v5 = vld [vmem:[%s6239_s30 + $0x3c0] sm:$0xff]  ;;  %v427_v7 = vld [vmem:[%s6239_s30 + $0x3c8] sm:$0xff]  ;;  %v5118_v9 = vcombine.low %v418_v58, %v422_v59 }
  0xa8   : > { %v430_v6 = vld [vmem:[%s6239_s30 + $0x3e0] sm:$0xff]  ;;  %v431_v8 = vld [vmem:[%s6239_s30 + $0x3e8] sm:$0xff]  ;;  %v5120_v10 = vcombine.low %v419_v61, %v423_v62 }
  0xa9   : > { %v5127_v11 = vcombine.high %v426_v5, %v430_v6  ;;  %v435_v16 = vld [vmem:[%s6239_s30 + $0x408] sm:$0xff]  ;;  %v5126_v18 = vcombine.low %v426_v5, %v430_v6  ;;  %v5128_v19 = vcombine.low %v427_v7, %v431_v8  ;;  %v462_v40 = vld [vmem:[%s6239_s30 + $0x4e0] sm:$0xff] }
  0xaa   : > { %3437 = vmatpush1.bf16.msra.mxu0 %v5062_v12  ;;  %3593 = vmatpush1.bf16.msra.mxu1 %v5064_v13  ;;  %v5129_v12 = vcombine.high %v427_v7, %v431_v8  ;;  %v434_v13 = vld [vmem:[%s6239_s30 + $0x400] sm:$0xff]  ;;  %v439_v17 = vld [vmem:[%s6239_s30 + $0x428] sm:$0xff] }
  0xab   : > { %3438 = vmatprep.subr.bf16.mxu0 %v5071_v14  ;;  %3594 = vmatprep.subr.bf16.mxu1 %v5073_v15  ;;  %v438_v14 = vld [vmem:[%s6239_s30 + $0x420] sm:$0xff]  ;;  %v820_v15 = vcombine.high %v6295_v60, %v6295_v60  ;;  %v443_v60 = vld [vmem:[%s6239_s30 + $0x448] sm:$0xff]  ;;  %v5136_v27 = vcombine.low %v435_v16, %v439_v17 }
  0xac   : > { %v447_v25 = vld [vmem:[%s6239_s30 + $0x468] sm:$0xff]  ;;  %v5134_v26 = vcombine.low %v434_v13, %v438_v14  ;;  %v470_v49 = vld [vmem:[%s6239_s30 + $0x520] sm:$0xff] }
  0xad   : > { %v6352_v24 = vrot.slane %v820_v15, %v6290_v54  ;;  %v451_v33 = vld [vmem:[%s6239_s30 + $0x488] sm:$0xff]  ;;  %v478_v58 = vld [vmem:[%s6239_s30 + $0x560] sm:$0xff] }
  0xae   : > { %3439 = vmatpush1.bf16.msra.mxu0 %v5070_v20  ;;  %3595 = vmatpush1.bf16.msra.mxu1 %v5072_v21  ;;  %v5135_v20 = vcombine.high %v434_v13, %v438_v14  ;;  %v5137_v21 = vcombine.high %v435_v16, %v439_v17  ;;  %v455_v34 = vld [vmem:[%s6239_s30 + $0x4a8] sm:$0xff]  ;;  %v486_v5 = vld [vmem:[%s6239_s30 + $0x5a0] sm:$0xff] }
  0xaf   : > { %3440 = vmatprep.subr.bf16.mxu0 %v5079_v22  ;;  %3596 = vmatprep.subr.bf16.mxu1 %v5081_v23  ;;  %v442_v22 = vld [vmem:[%s6239_s30 + $0x440] sm:$0xff]  ;;  %v6360_v32 = vcombine.high %v6352_v24, %v6352_v24  ;;  %v459_v41 = vld [vmem:[%s6239_s30 + $0x4c8] sm:$0xff] }
  0xb0   : > { %v446_v23 = vld [vmem:[%s6239_s30 + $0x460] sm:$0xff]  ;;  %v463_v42 = vld [vmem:[%s6239_s30 + $0x4e8] sm:$0xff] }
  0xb1   : > { %v5142_v35 = vcombine.low %v442_v22, %v446_v23  ;;  %v467_v50 = vld [vmem:[%s6239_s30 + $0x508] sm:$0xff]  ;;  %v494_v13 = vld [vmem:[%s6239_s30 + $0x5e0] sm:$0xff] }
  0xb2   : > { %3441 = vmatpush1.bf16.msra.mxu0 %v5078_v28  ;;  %3597 = vmatpush1.bf16.msra.mxu1 %v5080_v29  ;;  %v5143_v28 = vcombine.high %v442_v22, %v446_v23  ;;  %v5145_v29 = vcombine.high %v443_v60, %v447_v25  ;;  %v471_v51 = vld [vmem:[%s6239_s30 + $0x528] sm:$0xff] }
  0xb3   : > { %3442 = vmatprep.subr.bf16.mxu0 %v5087_v30  ;;  %3598 = vmatprep.subr.bf16.mxu1 %v5089_v31  ;;  %v450_v30 = vld [vmem:[%s6239_s30 + $0x480] sm:$0xff]  ;;  %v475_v59 = vld [vmem:[%s6239_s30 + $0x548] sm:$0xff] }
  0xb4   : > { %v454_v31 = vld [vmem:[%s6239_s30 + $0x4a0] sm:$0xff]  ;;  %v479_v61 = vld [vmem:[%s6239_s30 + $0x568] sm:$0xff] }
  0xb5   : > { %v5150_v43 = vcombine.low %v450_v30, %v454_v31  ;;  %v483_v6 = vld [vmem:[%s6239_s30 + $0x588] sm:$0xff] }
  0xb6   : > { %3443 = vmatpush1.bf16.msra.mxu0 %v5086_v36  ;;  %3599 = vmatpush1.bf16.msra.mxu1 %v5088_v37  ;;  %v5144_v36 = vcombine.low %v443_v60, %v447_v25  ;;  %v5151_v37 = vcombine.high %v450_v30, %v454_v31  ;;  %v487_v7 = vld [vmem:[%s6239_s30 + $0x5a8] sm:$0xff] }
  0xb7   : > { %3444 = vmatprep.subr.bf16.mxu0 %v5095_v38  ;;  %3600 = vmatprep.subr.bf16.mxu1 %v5097_v39  ;;  %v5153_v38 = vcombine.high %v451_v33, %v455_v34  ;;  %v458_v39 = vld [vmem:[%s6239_s30 + $0x4c0] sm:$0xff]  ;;  %v491_v14 = vld [vmem:[%s6239_s30 + $0x5c8] sm:$0xff]  ;;  %v5184_v17 = vcombine.low %v483_v6, %v487_v7 }
  0xb8   : > { %v5158_v52 = vcombine.low %v458_v39, %v462_v40  ;;  %v495_v15 = vld [vmem:[%s6239_s30 + $0x5e8] sm:$0xff] }
  0xb9   : > { %v499_v22 = vld [vmem:[%s6239_s30 + $0x608] sm:$0xff]  ;;  %v5192_v25 = vcombine.low %v491_v14, %v495_v15 }
  0xba   : > { %3445 = vmatpush1.bf16.msra.mxu0 %v5094_v44  ;;  %3601 = vmatpush1.bf16.msra.mxu1 %v5096_v46  ;;  %v5152_v44 = vcombine.low %v451_v33, %v455_v34  ;;  %v5159_v46 = vcombine.high %v458_v39, %v462_v40  ;;  %v503_v23 = vld [vmem:[%s6239_s30 + $0x628] sm:$0xff] }
  0xbb   : > { %3446 = vmatprep.subr.bf16.mxu0 %v5103_v47  ;;  %3602 = vmatprep.subr.bf16.mxu1 %v5105_v48  ;;  %v5161_v47 = vcombine.high %v459_v41, %v463_v42  ;;  %v466_v48 = vld [vmem:[%s6239_s30 + $0x500] sm:$0xff]  ;;  %v507_v30 = vld [vmem:[%s6239_s30 + $0x648] sm:$0xff]  ;;  %v5200_v34 = vcombine.low %v499_v22, %v503_v23 }
  0xbc   : > { %v5166_v62 = vcombine.low %v466_v48, %v470_v49  ;;  %v511_v31 = vld [vmem:[%s6239_s30 + $0x668] sm:$0xff] }
  0xbd   : > { %v515_v39 = vld [vmem:[%s6239_s30 + $0x688] sm:$0xff] }
  0xbe   : > { %3447 = vmatpush1.bf16.msra.mxu0 %v5102_v53  ;;  %3603 = vmatpush1.bf16.msra.mxu1 %v5104_v55  ;;  %v5160_v53 = vcombine.low %v459_v41, %v463_v42  ;;  %v5167_v55 = vcombine.high %v466_v48, %v470_v49  ;;  %v519_v40 = vld [vmem:[%s6239_s30 + $0x6a8] sm:$0xff]  ;;  %v5208_v42 = vcombine.low %v507_v30, %v511_v31 }
  0xbf   : > { %3448 = vmatprep.subr.bf16.mxu0 %v5111_v56  ;;  %3604 = vmatprep.subr.bf16.mxu1 %v5113_v57  ;;  %v5169_v56 = vcombine.high %v467_v50, %v471_v51  ;;  %v474_v57 = vld [vmem:[%s6239_s30 + $0x540] sm:$0xff]  ;;  %v523_v48 = vld [vmem:[%s6239_s30 + $0x6c8] sm:$0xff] }
  0xc0   : > { %v5174_v8 = vcombine.low %v474_v57, %v478_v58  ;;  %v527_v49 = vld [vmem:[%s6239_s30 + $0x6e8] sm:$0xff] }
  0xc2   : > { %3449 = vmatpush1.bf16.msra.mxu0 %v5110_v63  ;;  %3605 = vmatpush1.bf16.msra.mxu1 %v5112_v1  ;;  %v5168_v63 = vcombine.low %v467_v50, %v471_v51  ;;  %v5175_v1 = vcombine.high %v474_v57, %v478_v58  ;;  %v5216_v51 = vcombine.low %v515_v39, %v519_v40  ;;  %v531_v57 = vld [vmem:[%s6239_s30 + $0x708] sm:$0xff] }
  0xc3   : > { %3450 = vmatprep.subr.bf16.mxu0 %v5119_v2  ;;  %3606 = vmatprep.subr.bf16.mxu1 %v5121_v3  ;;  %v5177_v2 = vcombine.high %v475_v59, %v479_v61  ;;  %v482_v3 = vld [vmem:[%s6239_s30 + $0x580] sm:$0xff]  ;;  %v535_v58 = vld [vmem:[%s6239_s30 + $0x728] sm:$0xff] }
  0xc4   : > { %v5182_v16 = vcombine.low %v482_v3, %v486_v5 }
  0xc6   : > { %3451 = vmatpush1.bf16.msra.mxu0 %v5118_v9  ;;  %3607 = vmatpush1.bf16.msra.mxu1 %v5120_v10  ;;  %v5176_v9 = vcombine.low %v475_v59, %v479_v61  ;;  %v5183_v10 = vcombine.high %v482_v3, %v486_v5  ;;  %v5224_v61 = vcombine.low %v523_v48, %v527_v49  ;;  %v539_v3 = vld [vmem:[%s6239_s30 + $0x748] sm:$0xff] }
  0xc7   : > { %3452 = vmatprep.subr.bf16.mxu0 %v5127_v11  ;;  %3608 = vmatprep.subr.bf16.mxu1 %v5129_v12  ;;  %v5185_v11 = vcombine.high %v483_v6, %v487_v7  ;;  %v490_v12 = vld [vmem:[%s6239_s30 + $0x5c0] sm:$0xff]  ;;  %v543_v5 = vld [vmem:[%s6239_s30 + $0x768] sm:$0xff]  ;;  %v5232_v7 = vcombine.low %v531_v57, %v535_v58 }
  0xc8   : > { %v5190_v60 = vcombine.low %v490_v12, %v494_v13 }
  0xca   : > { %3453 = vmatpush1.bf16.msra.mxu0 %v5126_v18  ;;  %3609 = vmatpush1.bf16.msra.mxu1 %v5128_v19  ;;  %v5191_v18 = vcombine.high %v490_v12, %v494_v13  ;;  %v5193_v19 = vcombine.high %v491_v14, %v495_v15  ;;  %v547_v12 = vld [vmem:[%s6239_s30 + $0x788] sm:$0xff]  ;;  %v5240_v15 = vcombine.low %v539_v3, %v543_v5 }
  0xcb   : > { %3461 = vmatprep.subr.bf16.mxu0 %v5135_v20  ;;  %3617 = vmatprep.subr.bf16.mxu1 %v5137_v21  ;;  %v498_v20 = vld [vmem:[%s6239_s30 + $0x600] sm:$0xff]  ;;  %v551_v13 = vld [vmem:[%s6239_s30 + $0x7a8] sm:$0xff] }
  0xcc   : > { %v502_v21 = vld [vmem:[%s6239_s30 + $0x620] sm:$0xff] }
  0xcd   : > { %3455 = vmatmul.mubr.f32.vlgmr.msra.gmra.mrb[0].mxu0 %v6301_v0  ;;  %3611 = vmatmul.mubr.f32.vlgmr.msra.gmra.mrb[0].mxu1 %v6301_v0  ;;  %v5198_v33 = vcombine.low %v498_v20, %v502_v21 }
  0xce   : > { %3462 = vmatpush1.bf16.msra.mxu0 %v5134_v26  ;;  %3618 = vmatpush1.bf16.msra.mxu1 %v5136_v27  ;;  %v5199_v26 = vcombine.high %v498_v20, %v502_v21  ;;  %v5201_v27 = vcombine.high %v499_v22, %v503_v23  ;;  %v555_v20 = vld [vmem:[%s6239_s30 + $0x7c8] sm:$0xff]  ;;  %v5248_v23 = vcombine.low %v547_v12, %v551_v13 }
  0xcf   : > { %3463 = vmatprep.subr.bf16.mxu0 %v5143_v28  ;;  %3619 = vmatprep.subr.bf16.mxu1 %v5145_v29  ;;  %v506_v28 = vld [vmem:[%s6239_s30 + $0x640] sm:$0xff]  ;;  %v559_v21 = vld [vmem:[%s6239_s30 + $0x7e8] sm:$0xff] }
  0xd0   : > { %3493 = vmatprep.mubr.f32.mxu0 %v6360_v32  ;;  %3649 = vmatprep.mubr.f32.mxu1 %v6360_v32  ;;  %v510_v29 = vld [vmem:[%s6239_s30 + $0x660] sm:$0xff] }
  0xd1   : > { %v5206_v41 = vcombine.low %v506_v28, %v510_v29 }
  0xd2   : > { %3464 = vmatpush1.bf16.msra.mxu0 %v5142_v35  ;;  %3620 = vmatpush1.bf16.msra.mxu1 %v5144_v36  ;;  %v5207_v35 = vcombine.high %v506_v28, %v510_v29  ;;  %v5209_v36 = vcombine.high %v507_v30, %v511_v31  ;;  %v563_v28 = vld [vmem:[%s6239_s30 + $0x808] sm:$0xff]  ;;  %v6425_v30 = vld [vmem:[%s6257_s25 + $0x8] sm:$0xff] }
  0xd3   : > { %3465 = vmatprep.subr.bf16.mxu0 %v5151_v37  ;;  %3621 = vmatprep.subr.bf16.mxu1 %v5153_v38  ;;  %v514_v37 = vld [vmem:[%s6239_s30 + $0x680] sm:$0xff]  ;;  %v567_v29 = vld [vmem:[%s6239_s30 + $0x828] sm:$0xff] }
  0xd4   : > { %v518_v38 = vld [vmem:[%s6239_s30 + $0x6a0] sm:$0xff] }
  0xd5   : > { %v5214_v50 = vcombine.low %v514_v37, %v518_v38 }
  0xd6   : > { %3466 = vmatpush1.bf16.msra.mxu0 %v5150_v43  ;;  %3622 = vmatpush1.bf16.msra.mxu1 %v5152_v44  ;;  %v5215_v43 = vcombine.high %v514_v37, %v518_v38  ;;  %v5217_v44 = vcombine.high %v515_v39, %v519_v40  ;;  %v574_v37 = vld [vmem:[%s6239_s30 + $0x860] sm:$0xff]  ;;  %v6431_v38 = vrot.slane %v6425_v30, %v6290_v54  ;;  %v571_v39 = vld [vmem:[%s6239_s30 + $0x848] sm:$0xff] }
  0xd7   : > { %3467 = vmatprep.subr.bf16.mxu0 %v5159_v46  ;;  %3623 = vmatprep.subr.bf16.mxu1 %v5161_v47  ;;  %v522_v46 = vld [vmem:[%s6239_s30 + $0x6c0] sm:$0xff]  ;;  %v575_v40 = vld [vmem:[%s6239_s30 + $0x868] sm:$0xff] }
  0xd8   : > { %v526_v47 = vld [vmem:[%s6239_s30 + $0x6e0] sm:$0xff] }
  0xd9   : > { %v5222_v59 = vcombine.low %v522_v46, %v526_v47 }
  0xda   : > { %3468 = vmatpush1.bf16.msra.mxu0 %v5158_v52  ;;  %3624 = vmatpush1.bf16.msra.mxu1 %v5160_v53  ;;  %v5223_v52 = vcombine.high %v522_v46, %v526_v47  ;;  %v5225_v53 = vcombine.high %v523_v48, %v527_v49  ;;  %v578_v46 = vld [vmem:[%s6239_s30 + $0x880] sm:$0xff]  ;;  %v6439_v48 = vcombine.high %v6431_v38, %v6431_v38  ;;  %v579_v49 = vld [vmem:[%s6239_s30 + $0x888] sm:$0xff] }
  0xdb   : > { %3469 = vmatprep.subr.bf16.mxu0 %v5167_v55  ;;  %3625 = vmatprep.subr.bf16.mxu1 %v5169_v56  ;;  %v530_v55 = vld [vmem:[%s6239_s30 + $0x700] sm:$0xff] }
  0xdc   : > { %v534_v56 = vld [vmem:[%s6239_s30 + $0x720] sm:$0xff] }
  0xdd   : > { %v5230_v6 = vcombine.low %v530_v55, %v534_v56  ;;  %v582_v47 = vld [vmem:[%s6239_s30 + $0x8a0] sm:$0xff] }
  0xde   : > { %3470 = vmatpush1.bf16.msra.mxu0 %v5166_v62  ;;  %3626 = vmatpush1.bf16.msra.mxu1 %v5168_v63  ;;  %v5231_v62 = vcombine.high %v530_v55, %v534_v56  ;;  %v5233_v63 = vcombine.high %v531_v57, %v535_v58  ;;  %v586_v56 = vld [vmem:[%s6239_s30 + $0x8c0] sm:$0xff]  ;;  %v587_v58 = vld [vmem:[%s6239_s30 + $0x8c8] sm:$0xff] }
  0xdf   : > { %3471 = vmatprep.subr.bf16.mxu0 %v5175_v1  ;;  %3627 = vmatprep.subr.bf16.mxu1 %v5177_v2  ;;  %v538_v1 = vld [vmem:[%s6239_s30 + $0x740] sm:$0xff] }
  0xe0   : > { %v542_v2 = vld [vmem:[%s6239_s30 + $0x760] sm:$0xff] }
  0xe1   : > { %v5238_v14 = vcombine.low %v538_v1, %v542_v2  ;;  %v590_v57 = vld [vmem:[%s6239_s30 + $0x8e0] sm:$0xff] }
  0xe2   : > { %3472 = vmatpush1.bf16.msra.mxu0 %v5174_v8  ;;  %3628 = vmatpush1.bf16.msra.mxu1 %v5176_v9  ;;  %v5239_v8 = vcombine.high %v538_v1, %v542_v2  ;;  %v5241_v9 = vcombine.high %v539_v3, %v543_v5  ;;  %v594_v2 = vld [vmem:[%s6239_s30 + $0x900] sm:$0xff]  ;;  %v595_v5 = vld [vmem:[%s6239_s30 + $0x908] sm:$0xff] }
  0xe3   : > { %3473 = vmatprep.subr.bf16.mxu0 %v5183_v10  ;;  %3629 = vmatprep.subr.bf16.mxu1 %v5185_v11  ;;  %v546_v10 = vld [vmem:[%s6239_s30 + $0x780] sm:$0xff] }
  0xe4   : > { %v550_v11 = vld [vmem:[%s6239_s30 + $0x7a0] sm:$0xff] }
  0xe5   : > { %v5246_v22 = vcombine.low %v546_v10, %v550_v11  ;;  %v598_v3 = vld [vmem:[%s6239_s30 + $0x920] sm:$0xff] }
  0xe6   : > { %3474 = vmatpush1.bf16.msra.mxu0 %v5182_v16  ;;  %3630 = vmatpush1.bf16.msra.mxu1 %v5184_v17  ;;  %v5247_v16 = vcombine.high %v546_v10, %v550_v11  ;;  %v5249_v17 = vcombine.high %v547_v12, %v551_v13  ;;  %v602_v11 = vld [vmem:[%s6239_s30 + $0x940] sm:$0xff]  ;;  %v603_v13 = vld [vmem:[%s6239_s30 + $0x948] sm:$0xff] }
  0xe7   : > { %3475 = vmatprep.subr.bf16.mxu0 %v5191_v18  ;;  %3631 = vmatprep.subr.bf16.mxu1 %v5193_v19  ;;  %v554_v18 = vld [vmem:[%s6239_s30 + $0x7c0] sm:$0xff] }
  0xe8   : > { %v558_v19 = vld [vmem:[%s6239_s30 + $0x7e0] sm:$0xff] }
  0xe9   : > { %v5254_v31 = vcombine.low %v554_v18, %v558_v19  ;;  %v606_v12 = vld [vmem:[%s6239_s30 + $0x960] sm:$0xff] }
  0xea   : > { %3476 = vmatpush1.bf16.msra.mxu0 %v5190_v60  ;;  %3632 = vmatpush1.bf16.msra.mxu1 %v5192_v25  ;;  %v5255_v60 = vcombine.high %v554_v18, %v558_v19  ;;  %v5257_v25 = vcombine.high %v555_v20, %v559_v21  ;;  %v610_v19 = vld [vmem:[%s6239_s30 + $0x980] sm:$0xff] }
  0xeb   : > { %3477 = vmatprep.subr.bf16.mxu0 %v5199_v26  ;;  %3633 = vmatprep.subr.bf16.mxu1 %v5201_v27  ;;  %v562_v26 = vld [vmem:[%s6239_s30 + $0x800] sm:$0xff] }
  0xec   : > { %v566_v27 = vld [vmem:[%s6239_s30 + $0x820] sm:$0xff] }
  0xee   : > { %3478 = vmatpush1.bf16.msra.mxu0 %v5198_v33  ;;  %3634 = vmatpush1.bf16.msra.mxu1 %v5200_v34  ;;  %v5256_v33 = vcombine.low %v555_v20, %v559_v21  ;;  %v5263_v34 = vcombine.high %v562_v26, %v566_v27  ;;  %v614_v20 = vld [vmem:[%s6239_s30 + $0x9a0] sm:$0xff]  ;;  %v611_v21 = vld [vmem:[%s6239_s30 + $0x988] sm:$0xff] }
  0xef   : > { %3479 = vmatprep.subr.bf16.mxu0 %v5207_v35  ;;  %3635 = vmatprep.subr.bf16.mxu1 %v5209_v36  ;;  %v5265_v35 = vcombine.high %v563_v28, %v567_v29  ;;  %v570_v36 = vld [vmem:[%s6239_s30 + $0x840] sm:$0xff] }
  0xf2   : > { %3480 = vmatpush1.bf16.msra.mxu0 %v5206_v41  ;;  %3636 = vmatpush1.bf16.msra.mxu1 %v5208_v42  ;;  %v5262_v41 = vcombine.low %v562_v26, %v566_v27  ;;  %v5264_v42 = vcombine.low %v563_v28, %v567_v29  ;;  %v618_v27 = vld [vmem:[%s6239_s30 + $0x9c0] sm:$0xff]  ;;  %v619_v29 = vld [vmem:[%s6239_s30 + $0x9c8] sm:$0xff] }
  0xf3   : > { %3481 = vmatprep.subr.bf16.mxu0 %v5215_v43  ;;  %3637 = vmatprep.subr.bf16.mxu1 %v5217_v44  ;;  %v5271_v43 = vcombine.high %v570_v36, %v574_v37  ;;  %v5273_v44 = vcombine.high %v571_v39, %v575_v40  ;;  %v622_v28 = vld [vmem:[%s6239_s30 + $0x9e0] sm:$0xff] }
  0xf6   : > { %3482 = vmatpush1.bf16.msra.mxu0 %v5214_v50  ;;  %3638 = vmatpush1.bf16.msra.mxu1 %v5216_v51  ;;  %v583_v50 = vld [vmem:[%s6239_s30 + $0x8a8] sm:$0xff]  ;;  %v5270_v51 = vcombine.low %v570_v36, %v574_v37  ;;  %v626_v37 = vld [vmem:[%s6239_s30 + $0xa00] sm:$0xff] }
  0xf7   : > { %3483 = vmatprep.subr.bf16.mxu0 %v5223_v52  ;;  %3639 = vmatprep.subr.bf16.mxu1 %v5225_v53  ;;  %v5272_v52 = vcombine.low %v571_v39, %v575_v40  ;;  %v5279_v53 = vcombine.high %v578_v46, %v582_v47  ;;  %v5281_v55 = vcombine.high %v579_v49, %v583_v50  ;;  %v630_v39 = vld [vmem:[%s6239_s30 + $0xa20] sm:$0xff]  ;;  %v627_v40 = vld [vmem:[%s6239_s30 + $0xa08] sm:$0xff] }
  0xfa   : > { %3484 = vmatpush1.bf16.msra.mxu0 %v5222_v59  ;;  %3640 = vmatpush1.bf16.msra.mxu1 %v5224_v61  ;;  %v591_v59 = vld [vmem:[%s6239_s30 + $0x8e8] sm:$0xff]  ;;  %v5278_v61 = vcombine.low %v578_v46, %v582_v47  ;;  %v634_v47 = vld [vmem:[%s6239_s30 + $0xa40] sm:$0xff] }
  0xfb   : > { %3485 = vmatprep.subr.bf16.mxu0 %v5231_v62  ;;  %3641 = vmatprep.subr.bf16.mxu1 %v5233_v63  ;;  %v5280_v62 = vcombine.low %v579_v49, %v583_v50  ;;  %v5287_v63 = vcombine.high %v586_v56, %v590_v57  ;;  %v5289_v1 = vcombine.high %v587_v58, %v591_v59  ;;  %v638_v49 = vld [vmem:[%s6239_s30 + $0xa60] sm:$0xff]  ;;  %v635_v50 = vld [vmem:[%s6239_s30 + $0xa48] sm:$0xff] }
  0xfe   : > { %3486 = vmatpush1.bf16.msra.mxu0 %v5230_v6  ;;  %3642 = vmatpush1.bf16.msra.mxu1 %v5232_v7  ;;  %v599_v6 = vld [vmem:[%s6239_s30 + $0x928] sm:$0xff]  ;;  %v5286_v7 = vcombine.low %v586_v56, %v590_v57  ;;  %v642_v57 = vld [vmem:[%s6239_s30 + $0xa80] sm:$0xff] }
  0xff   : > { %3487 = vmatprep.subr.bf16.mxu0 %v5239_v8  ;;  %3643 = vmatprep.subr.bf16.mxu1 %v5241_v9  ;;  %v5288_v8 = vcombine.low %v587_v58, %v591_v59  ;;  %v5295_v9 = vcombine.high %v594_v2, %v598_v3  ;;  %v5297_v10 = vcombine.high %v595_v5, %v599_v6  ;;  %v646_v58 = vld [vmem:[%s6239_s30 + $0xaa0] sm:$0xff]  ;;  %v643_v59 = vld [vmem:[%s6239_s30 + $0xa88] sm:$0xff] }
 0x102   : > { %3488 = vmatpush1.bf16.msra.mxu0 %v5238_v14  ;;  %3644 = vmatpush1.bf16.msra.mxu1 %v5240_v15  ;;  %v607_v14 = vld [vmem:[%s6239_s30 + $0x968] sm:$0xff]  ;;  %v5294_v15 = vcombine.low %v594_v2, %v598_v3  ;;  %v650_v3 = vld [vmem:[%s6239_s30 + $0xac0] sm:$0xff] }
 0x103   : > { %3489 = vmatprep.subr.bf16.mxu0 %v5247_v16  ;;  %3645 = vmatprep.subr.bf16.mxu1 %v5249_v17  ;;  %v5296_v16 = vcombine.low %v595_v5, %v599_v6  ;;  %v5303_v17 = vcombine.high %v602_v11, %v606_v12  ;;  %v5305_v18 = vcombine.high %v603_v13, %v607_v14  ;;  %v654_v5 = vld [vmem:[%s6239_s30 + $0xae0] sm:$0xff]  ;;  %v651_v6 = vld [vmem:[%s6239_s30 + $0xac8] sm:$0xff] }
 0x106   : > { %3490 = vmatpush1.bf16.msra.mxu0 %v5246_v22  ;;  %3646 = vmatpush1.bf16.msra.mxu1 %v5248_v23  ;;  %v615_v22 = vld [vmem:[%s6239_s30 + $0x9a8] sm:$0xff]  ;;  %v5302_v23 = vcombine.low %v602_v11, %v606_v12  ;;  %v658_v12 = vld [vmem:[%s6239_s30 + $0xb00] sm:$0xff] }
 0x107   : > { %3491 = vmatprep.subr.bf16.mxu0 %v5255_v60  ;;  %3647 = vmatprep.subr.bf16.mxu1 %v5257_v25  ;;  %v5304_v60 = vcombine.low %v603_v13, %v607_v14  ;;  %v5311_v25 = vcombine.high %v610_v19, %v614_v20  ;;  %v5313_v26 = vcombine.high %v611_v21, %v615_v22  ;;  %v662_v13 = vld [vmem:[%s6239_s30 + $0xb20] sm:$0xff]  ;;  %v659_v14 = vld [vmem:[%s6239_s30 + $0xb08] sm:$0xff] }
 0x10a   : > { %3492 = vmatpush1.bf16.msra.mxu0 %v5254_v31  ;;  %3648 = vmatpush1.bf16.msra.mxu1 %v5256_v33  ;;  %v623_v31 = vld [vmem:[%s6239_s30 + $0x9e8] sm:$0xff]  ;;  %v5310_v33 = vcombine.low %v610_v19, %v614_v20  ;;  %v666_v20 = vld [vmem:[%s6239_s30 + $0xb40] sm:$0xff] }
 0x10b   : > { %3500 = vmatprep.subr.bf16.mxu0 %v5263_v34  ;;  %3656 = vmatprep.subr.bf16.mxu1 %v5265_v35  ;;  %v5312_v34 = vcombine.low %v611_v21, %v615_v22  ;;  %v5319_v35 = vcombine.high %v618_v27, %v622_v28  ;;  %v5321_v36 = vcombine.high %v619_v29, %v623_v31  ;;  %v670_v21 = vld [vmem:[%s6239_s30 + $0xb60] sm:$0xff]  ;;  %v667_v22 = vld [vmem:[%s6239_s30 + $0xb48] sm:$0xff] }
 0x10d   : > { %3494 = vmatmul.mubr.f32.vlgmr.msra.gmra.mrb[0].mxu0 %v6352_v24  ;;  %3650 = vmatmul.mubr.f32.vlgmr.msra.gmra.mrb[0].mxu1 %v6352_v24 }
 0x10e   : > { %3501 = vmatpush1.bf16.msra.mxu0 %v5262_v41  ;;  %3657 = vmatpush1.bf16.msra.mxu1 %v5264_v42  ;;  %v631_v41 = vld [vmem:[%s6239_s30 + $0xa28] sm:$0xff]  ;;  %v5318_v42 = vcombine.low %v618_v27, %v622_v28  ;;  %v674_v28 = vld [vmem:[%s6239_s30 + $0xb80] sm:$0xff] }
 0x10f   : > { %3502 = vmatprep.subr.bf16.mxu0 %v5271_v43  ;;  %3658 = vmatprep.subr.bf16.mxu1 %v5273_v44  ;;  %v5320_v43 = vcombine.low %v619_v29, %v623_v31  ;;  %v5327_v44 = vcombine.high %v626_v37, %v630_v39  ;;  %v5329_v46 = vcombine.high %v627_v40, %v631_v41  ;;  %v678_v29 = vld [vmem:[%s6239_s30 + $0xba0] sm:$0xff]  ;;  %v675_v31 = vld [vmem:[%s6239_s30 + $0xb88] sm:$0xff] }
 0x110   : > { %3532 = vmatprep.mubr.f32.mxu0 %v6439_v48  ;;  %3688 = vmatprep.mubr.f32.mxu1 %v6439_v48 }
 0x112   : > { %3503 = vmatpush1.bf16.msra.mxu0 %v5270_v51  ;;  %3659 = vmatpush1.bf16.msra.mxu1 %v5272_v52  ;;  %v639_v51 = vld [vmem:[%s6239_s30 + $0xa68] sm:$0xff]  ;;  %v5326_v52 = vcombine.low %v626_v37, %v630_v39  ;;  %v682_v39 = vld [vmem:[%s6239_s30 + $0xbc0] sm:$0xff] }
 0x113   : > { %3504 = vmatprep.subr.bf16.mxu0 %v5279_v53  ;;  %3660 = vmatprep.subr.bf16.mxu1 %v5281_v55  ;;  %v5328_v53 = vcombine.low %v627_v40, %v631_v41  ;;  %v5335_v55 = vcombine.high %v634_v47, %v638_v49  ;;  %v5337_v56 = vcombine.high %v635_v50, %v639_v51  ;;  %v686_v40 = vld [vmem:[%s6239_s30 + $0xbe0] sm:$0xff]  ;;  %v683_v41 = vld [vmem:[%s6239_s30 + $0xbc8] sm:$0xff] }
 0x116   : > { %3505 = vmatpush1.bf16.msra.mxu0 %v5278_v61  ;;  %3661 = vmatpush1.bf16.msra.mxu1 %v5280_v62  ;;  %v647_v61 = vld [vmem:[%s6239_s30 + $0xaa8] sm:$0xff]  ;;  %v5334_v62 = vcombine.low %v634_v47, %v638_v49  ;;  %v690_v49 = vld [vmem:[%s6239_s30 + $0xc00] sm:$0xff] }
 0x117   : > { %3506 = vmatprep.subr.bf16.mxu0 %v5287_v63  ;;  %3662 = vmatprep.subr.bf16.mxu1 %v5289_v1  ;;  %v5336_v63 = vcombine.low %v635_v50, %v639_v51  ;;  %v5343_v1 = vcombine.high %v642_v57, %v646_v58  ;;  %v5345_v2 = vcombine.high %v643_v59, %v647_v61  ;;  %v694_v50 = vld [vmem:[%s6239_s30 + $0xc20] sm:$0xff] }
 0x118   : > { %v837_v51 = vcombine.high %v6425_v30, %v6425_v30  ;;  %v699_v30 = vld [vmem:[%s6239_s30 + $0xc48] sm:$0xff] }
 0x11a   : > { %3507 = vmatpush1.bf16.msra.mxu0 %v5286_v7  ;;  %3663 = vmatpush1.bf16.msra.mxu1 %v5288_v8  ;;  %v655_v7 = vld [vmem:[%s6239_s30 + $0xae8] sm:$0xff]  ;;  %v5342_v8 = vcombine.low %v642_v57, %v646_v58  ;;  %v5391_v57 = vcombine.high %v690_v49, %v694_v50 }
 0x11b   : > { %3508 = vmatprep.subr.bf16.mxu0 %v5295_v9  ;;  %3664 = vmatprep.subr.bf16.mxu1 %v5297_v10  ;;  %v5344_v9 = vcombine.low %v643_v59, %v647_v61  ;;  %v5351_v10 = vcombine.high %v650_v3, %v654_v5  ;;  %v5353_v11 = vcombine.high %v651_v6, %v655_v7  ;;  %v698_v59 = vld [vmem:[%s6239_s30 + $0xc40] sm:$0xff] }
 0x11c   : > { %v702_v61 = vld [vmem:[%s6239_s30 + $0xc60] sm:$0xff] }
 0x11e   : > { %3509 = vmatpush1.bf16.msra.mxu0 %v5294_v15  ;;  %3665 = vmatpush1.bf16.msra.mxu1 %v5296_v16  ;;  %v663_v15 = vld [vmem:[%s6239_s30 + $0xb28] sm:$0xff]  ;;  %v5350_v16 = vcombine.low %v650_v3, %v654_v5  ;;  %v5399_v3 = vcombine.high %v698_v59, %v702_v61 }
 0x11f   : > { %3510 = vmatprep.subr.bf16.mxu0 %v5303_v17  ;;  %3666 = vmatprep.subr.bf16.mxu1 %v5305_v18  ;;  %v5352_v17 = vcombine.low %v651_v6, %v655_v7  ;;  %v5359_v18 = vcombine.high %v658_v12, %v662_v13  ;;  %v5361_v19 = vcombine.high %v659_v14, %v663_v15  ;;  %v706_v6 = vld [vmem:[%s6239_s30 + $0xc80] sm:$0xff] }
 0x120   : > { %v710_v7 = vld [vmem:[%s6239_s30 + $0xca0] sm:$0xff] }
 0x122   : > { %3511 = vmatpush1.bf16.msra.mxu0 %v5302_v23  ;;  %3667 = vmatpush1.bf16.msra.mxu1 %v5304_v60  ;;  %v671_v23 = vld [vmem:[%s6239_s30 + $0xb68] sm:$0xff]  ;;  %v5358_v60 = vcombine.low %v658_v12, %v662_v13  ;;  %v5407_v13 = vcombine.high %v706_v6, %v710_v7 }
 0x123   : > { %3512 = vmatprep.subr.bf16.mxu0 %v5311_v25  ;;  %3668 = vmatprep.subr.bf16.mxu1 %v5313_v26  ;;  %v5360_v25 = vcombine.low %v659_v14, %v663_v15  ;;  %v5367_v26 = vcombine.high %v666_v20, %v670_v21  ;;  %v5369_v27 = vcombine.high %v667_v22, %v671_v23  ;;  %v714_v15 = vld [vmem:[%s6239_s30 + $0xcc0] sm:$0xff] }
 0x126   : > { %3513 = vmatpush1.bf16.msra.mxu0 %v5310_v33  ;;  %3669 = vmatpush1.bf16.msra.mxu1 %v5312_v34  ;;  %v679_v33 = vld [vmem:[%s6239_s30 + $0xba8] sm:$0xff]  ;;  %v5366_v34 = vcombine.low %v666_v20, %v670_v21 }
 0x127   : > { %3514 = vmatprep.subr.bf16.mxu0 %v5319_v35  ;;  %3670 = vmatprep.subr.bf16.mxu1 %v5321_v36  ;;  %v5368_v35 = vcombine.low %v667_v22, %v671_v23  ;;  %v5375_v36 = vcombine.high %v674_v28, %v678_v29  ;;  %v5377_v37 = vcombine.high %v675_v31, %v679_v33  ;;  %v722_v23 = vld [vmem:[%s6239_s30 + $0xd00] sm:$0xff] }
 0x12a   : > { %3515 = vmatpush1.bf16.msra.mxu0 %v5318_v42  ;;  %3671 = vmatpush1.bf16.msra.mxu1 %v5320_v43  ;;  %v687_v42 = vld [vmem:[%s6239_s30 + $0xbe8] sm:$0xff]  ;;  %v5374_v43 = vcombine.low %v674_v28, %v678_v29 }
 0x12b   : > { %3516 = vmatprep.subr.bf16.mxu0 %v5327_v44  ;;  %3672 = vmatprep.subr.bf16.mxu1 %v5329_v46  ;;  %v5376_v44 = vcombine.low %v675_v31, %v679_v33  ;;  %v5383_v46 = vcombine.high %v682_v39, %v686_v40  ;;  %v5385_v47 = vcombine.high %v683_v41, %v687_v42  ;;  %v730_v33 = vld [vmem:[%s6239_s30 + $0xd40] sm:$0xff] }
 0x12e   : > { %3517 = vmatpush1.bf16.msra.mxu0 %v5326_v52  ;;  %3673 = vmatpush1.bf16.msra.mxu1 %v5328_v53  ;;  %v691_v52 = vld [vmem:[%s6239_s30 + $0xc08] sm:$0xff] }
 0x12f   : > { %3518 = vmatprep.subr.bf16.mxu0 %v5335_v55  ;;  %3674 = vmatprep.subr.bf16.mxu1 %v5337_v56  ;;  %v695_v53 = vld [vmem:[%s6239_s30 + $0xc28] sm:$0xff]  ;;  %v5382_v55 = vcombine.low %v682_v39, %v686_v40  ;;  %v5384_v56 = vcombine.low %v683_v41, %v687_v42  ;;  %v738_v42 = vld [vmem:[%s6239_s30 + $0xd80] sm:$0xff] }
 0x130   : > { %v5393_v58 = vcombine.high %v691_v52, %v695_v53 }
 0x132   : > { %3519 = vmatpush1.bf16.msra.mxu0 %v5334_v62  ;;  %3675 = vmatpush1.bf16.msra.mxu1 %v5336_v63  ;;  %v6508_v62 = vrot.slane %v837_v51, %v6290_v54  ;;  %v703_v63 = vld [vmem:[%s6239_s30 + $0xc68] sm:$0xff] }
 0x133   : > { %3520 = vmatprep.subr.bf16.mxu0 %v5343_v1  ;;  %3676 = vmatprep.subr.bf16.mxu1 %v5345_v2  ;;  %v5390_v1 = vcombine.low %v690_v49, %v694_v50  ;;  %v5392_v2 = vcombine.low %v691_v52, %v695_v53  ;;  %v5401_v5 = vcombine.high %v699_v30, %v703_v63  ;;  %v746_v52 = vld [vmem:[%s6239_s30 + $0xdc0] sm:$0xff] }
 0x134   : > { %v5400_v12 = vcombine.low %v699_v30, %v703_v63  ;;  %v750_v53 = vld [vmem:[%s6239_s30 + $0xde0] sm:$0xff] }
 0x135   : > { %v754_v30 = vld [vmem:[%s6239_s30 + $0xe00] sm:$0xff] }
 0x136   : > { %3521 = vmatpush1.bf16.msra.mxu0 %v5342_v8  ;;  %3677 = vmatpush1.bf16.msra.mxu1 %v5344_v9  ;;  %v6516_v8 = vcombine.high %v6508_v62, %v6508_v62  ;;  %v707_v9 = vld [vmem:[%s6239_s30 + $0xc88] sm:$0xff]  ;;  %v758_v63 = vld [vmem:[%s6239_s30 + $0xe20] sm:$0xff] }
 0x137   : > { %3522 = vmatprep.subr.bf16.mxu0 %v5351_v10  ;;  %3678 = vmatprep.subr.bf16.mxu1 %v5353_v11  ;;  %v711_v10 = vld [vmem:[%s6239_s30 + $0xca8] sm:$0xff]  ;;  %v5398_v11 = vcombine.low %v698_v59, %v702_v61  ;;  %v5447_v59 = vcombine.high %v746_v52, %v750_v53 }
 0x138   : > { %v5409_v14 = vcombine.high %v707_v9, %v711_v10  ;;  %v5408_v20 = vcombine.low %v707_v9, %v711_v10  ;;  %v762_v9 = vld [vmem:[%s6239_s30 + $0xe40] sm:$0xff] }
 0x139   : > { %v766_v10 = vld [vmem:[%s6239_s30 + $0xe60] sm:$0xff] }
 0x13a   : > { %3523 = vmatpush1.bf16.msra.mxu0 %v5350_v16  ;;  %3679 = vmatpush1.bf16.msra.mxu1 %v5352_v17  ;;  %v718_v16 = vld [vmem:[%s6239_s30 + $0xce0] sm:$0xff]  ;;  %v715_v17 = vld [vmem:[%s6239_s30 + $0xcc8] sm:$0xff] }
 0x13b   : > { %3524 = vmatprep.subr.bf16.mxu0 %v5359_v18  ;;  %3680 = vmatprep.subr.bf16.mxu1 %v5361_v19  ;;  %v719_v18 = vld [vmem:[%s6239_s30 + $0xce8] sm:$0xff]  ;;  %v5406_v19 = vcombine.low %v706_v6, %v710_v7  ;;  %v5415_v21 = vcombine.high %v714_v15, %v718_v16  ;;  %v5455_v6 = vcombine.high %v754_v30, %v758_v63 }
 0x13c   : > { %v5417_v22 = vcombine.high %v715_v17, %v719_v18  ;;  %v5416_v28 = vcombine.low %v715_v17, %v719_v18  ;;  %v770_v17 = vld [vmem:[%s6239_s30 + $0xe80] sm:$0xff] }
 0x13d   : > { %v774_v18 = vld [vmem:[%s6239_s30 + $0xea0] sm:$0xff] }
 0x13e   : > { %3525 = vmatpush1.bf16.msra.mxu0 %v5358_v60  ;;  %3681 = vmatpush1.bf16.msra.mxu1 %v5360_v25  ;;  %v726_v60 = vld [vmem:[%s6239_s30 + $0xd20] sm:$0xff]  ;;  %v723_v25 = vld [vmem:[%s6239_s30 + $0xd08] sm:$0xff] }
 0x13f   : > { %3526 = vmatprep.subr.bf16.mxu0 %v5367_v26  ;;  %3682 = vmatprep.subr.bf16.mxu1 %v5369_v27  ;;  %v727_v26 = vld [vmem:[%s6239_s30 + $0xd28] sm:$0xff]  ;;  %v5414_v27 = vcombine.low %v714_v15, %v718_v16  ;;  %v5423_v29 = vcombine.high %v722_v23, %v726_v60  ;;  %v5463_v15 = vcombine.high %v762_v9, %v766_v10 }
 0x140   : > { %v5425_v31 = vcombine.high %v723_v25, %v727_v26  ;;  %v5424_v39 = vcombine.low %v723_v25, %v727_v26  ;;  %v778_v25 = vld [vmem:[%s6239_s30 + $0xec0] sm:$0xff] }
 0x141   : > { %v782_v26 = vld [vmem:[%s6239_s30 + $0xee0] sm:$0xff] }
 0x142   : > { %3527 = vmatpush1.bf16.msra.mxu0 %v5366_v34  ;;  %3683 = vmatpush1.bf16.msra.mxu1 %v5368_v35  ;;  %v734_v34 = vld [vmem:[%s6239_s30 + $0xd60] sm:$0xff]  ;;  %v731_v35 = vld [vmem:[%s6239_s30 + $0xd48] sm:$0xff] }
 0x143   : > { %3528 = vmatprep.subr.bf16.mxu0 %v5375_v36  ;;  %3684 = vmatprep.subr.bf16.mxu1 %v5377_v37  ;;  %v735_v36 = vld [vmem:[%s6239_s30 + $0xd68] sm:$0xff]  ;;  %v5422_v37 = vcombine.low %v722_v23, %v726_v60  ;;  %v5431_v40 = vcombine.high %v730_v33, %v734_v34  ;;  %v5471_v23 = vcombine.high %v770_v17, %v774_v18 }
 0x144   : > { %v5433_v41 = vcombine.high %v731_v35, %v735_v36  ;;  %v5432_v49 = vcombine.low %v731_v35, %v735_v36  ;;  %v786_v35 = vld [vmem:[%s6239_s30 + $0xf00] sm:$0xff] }
 0x145   : > { %v790_v36 = vld [vmem:[%s6239_s30 + $0xf20] sm:$0xff] }
 0x146   : > { %3529 = vmatpush1.bf16.msra.mxu0 %v5374_v43  ;;  %3685 = vmatpush1.bf16.msra.mxu1 %v5376_v44  ;;  %v742_v43 = vld [vmem:[%s6239_s30 + $0xda0] sm:$0xff]  ;;  %v739_v44 = vld [vmem:[%s6239_s30 + $0xd88] sm:$0xff] }
 0x147   : > { %3530 = vmatprep.subr.bf16.mxu0 %v5383_v46  ;;  %3686 = vmatprep.subr.bf16.mxu1 %v5385_v47  ;;  %v743_v46 = vld [vmem:[%s6239_s30 + $0xda8] sm:$0xff]  ;;  %v5430_v47 = vcombine.low %v730_v33, %v734_v34  ;;  %v5439_v50 = vcombine.high %v738_v42, %v742_v43  ;;  %v5479_v33 = vcombine.high %v778_v25, %v782_v26 }
 0x148   : > { %v5441_v51 = vcombine.high %v739_v44, %v743_v46 }
 0x14a   : > { %3531 = vmatpush1.bf16.msra.mxu0 %v5382_v55  ;;  %3687 = vmatpush1.bf16.msra.mxu1 %v5384_v56  ;;  %v747_v55 = vld [vmem:[%s6239_s30 + $0xdc8] sm:$0xff] }
 0x14b   : > { %3539 = vmatprep.subr.bf16.mxu0 %v5391_v57  ;;  %3695 = vmatprep.subr.bf16.mxu1 %v5393_v58  ;;  %v751_v56 = vld [vmem:[%s6239_s30 + $0xde8] sm:$0xff]  ;;  %v5438_v57 = vcombine.low %v738_v42, %v742_v43  ;;  %v5440_v58 = vcombine.low %v739_v44, %v743_v46  ;;  %v5487_v42 = vcombine.high %v786_v35, %v790_v36  ;;  %v794_v44 = vld [vmem:[%s6239_s30 + $0xf40] sm:$0xff] }
 0x14c   : > { %v5449_v61 = vcombine.high %v747_v55, %v751_v56  ;;  %v798_v46 = vld [vmem:[%s6239_s30 + $0xf60] sm:$0xff] }
 0x14d   : > { %3533 = vmatmul.mubr.f32.vlgmr.msra.gmra.mrb[0].mxu0 %v6431_v38  ;;  %3689 = vmatmul.mubr.f32.vlgmr.msra.gmra.mrb[0].mxu1 %v6431_v38 }
 0x14e   : > { %3540 = vmatpush1.bf16.msra.mxu0 %v5390_v1  ;;  %3696 = vmatpush1.bf16.msra.mxu1 %v5392_v2  ;;  %v755_v1 = vld [vmem:[%s6239_s30 + $0xe08] sm:$0xff] }
 0x14f   : > { %3541 = vmatprep.subr.bf16.mxu0 %v5399_v3  ;;  %3697 = vmatprep.subr.bf16.mxu1 %v5401_v5  ;;  %v759_v2 = vld [vmem:[%s6239_s30 + $0xe28] sm:$0xff]  ;;  %v5446_v3 = vcombine.low %v746_v52, %v750_v53  ;;  %v5448_v5 = vcombine.low %v747_v55, %v751_v56  ;;  %v5495_v52 = vcombine.high %v794_v44, %v798_v46  ;;  %v802_v55 = vld [vmem:[%s6239_s30 + $0xf80] sm:$0xff] }
 0x150   : > { %3571 = vmatprep.mubr.f32.mxu0 %v6516_v8  ;;  %3727 = vmatprep.mubr.f32.mxu1 %v6516_v8  ;;  %v5457_v7 = vcombine.high %v755_v1, %v759_v2  ;;  %v806_v56 = vld [vmem:[%s6239_s30 + $0xfa0] sm:$0xff] }
 0x152   : > { %3542 = vmatpush1.bf16.msra.mxu0 %v5398_v11  ;;  %3698 = vmatpush1.bf16.msra.mxu1 %v5400_v12  ;;  %v763_v11 = vld [vmem:[%s6239_s30 + $0xe48] sm:$0xff] }
 0x153   : > { %3543 = vmatprep.subr.bf16.mxu0 %v5407_v13  ;;  %3699 = vmatprep.subr.bf16.mxu1 %v5409_v14  ;;  %v767_v12 = vld [vmem:[%s6239_s30 + $0xe68] sm:$0xff]  ;;  %v5454_v13 = vcombine.low %v754_v30, %v758_v63  ;;  %v5456_v14 = vcombine.low %v755_v1, %v759_v2  ;;  %v5503_v30 = vcombine.high %v802_v55, %v806_v56  ;;  %v810_v1 = vld [vmem:[%s6239_s30 + $0xfc0] sm:$0xff] }
 0x154   : > { %v5465_v16 = vcombine.high %v763_v11, %v767_v12  ;;  %v814_v2 = vld [vmem:[%s6239_s30 + $0xfe0] sm:$0xff] }
 0x156   : > { %3544 = vmatpush1.bf16.msra.mxu0 %v5406_v19  ;;  %3700 = vmatpush1.bf16.msra.mxu1 %v5408_v20  ;;  %v771_v19 = vld [vmem:[%s6239_s30 + $0xe88] sm:$0xff] }
 0x157   : > { %3545 = vmatprep.subr.bf16.mxu0 %v5415_v21  ;;  %3701 = vmatprep.subr.bf16.mxu1 %v5417_v22  ;;  %v775_v20 = vld [vmem:[%s6239_s30 + $0xea8] sm:$0xff]  ;;  %v5462_v21 = vcombine.low %v762_v9, %v766_v10  ;;  %v5464_v22 = vcombine.low %v763_v11, %v767_v12  ;;  %v5511_v9 = vcombine.high %v810_v1, %v814_v2  ;;  %v308_v11 = vld [vmem:[%s6239_s30 + $0x10] sm:$0xff] }
 0x158   : > { %v5473_v60 = vcombine.high %v771_v19, %v775_v20  ;;  %v312_v12 = vld [vmem:[%s6239_s30 + $0x30] sm:$0xff] }
 0x15a   : > { %3546 = vmatpush1.bf16.msra.mxu0 %v5414_v27  ;;  %3702 = vmatpush1.bf16.msra.mxu1 %v5416_v28  ;;  %v779_v27 = vld [vmem:[%s6239_s30 + $0xec8] sm:$0xff] }
 0x15b   : > { %3547 = vmatprep.subr.bf16.mxu0 %v5423_v29  ;;  %3703 = vmatprep.subr.bf16.mxu1 %v5425_v31  ;;  %v783_v28 = vld [vmem:[%s6239_s30 + $0xee8] sm:$0xff]  ;;  %v5470_v29 = vcombine.low %v770_v17, %v774_v18  ;;  %v5472_v31 = vcombine.low %v771_v19, %v775_v20  ;;  %v5011_v17 = vcombine.high %v308_v11, %v312_v12  ;;  %v316_v19 = vld [vmem:[%s6239_s30 + $0x50] sm:$0xff] }
 0x15c   : > { %v5481_v34 = vcombine.high %v779_v27, %v783_v28  ;;  %v320_v20 = vld [vmem:[%s6239_s30 + $0x70] sm:$0xff] }
 0x15e   : > { %3548 = vmatpush1.bf16.msra.mxu0 %v5422_v37  ;;  %3704 = vmatpush1.bf16.msra.mxu1 %v5424_v39  ;;  %v787_v37 = vld [vmem:[%s6239_s30 + $0xf08] sm:$0xff] }
 0x15f   : > { %3549 = vmatprep.subr.bf16.mxu0 %v5431_v40  ;;  %3705 = vmatprep.subr.bf16.mxu1 %v5433_v41  ;;  %v791_v39 = vld [vmem:[%s6239_s30 + $0xf28] sm:$0xff]  ;;  %v5478_v40 = vcombine.low %v778_v25, %v782_v26  ;;  %v5480_v41 = vcombine.low %v779_v27, %v783_v28  ;;  %v5019_v25 = vcombine.high %v316_v19, %v320_v20  ;;  %v324_v27 = vld [vmem:[%s6239_s30 + $0x90] sm:$0xff] }
 0x160   : > { %v5489_v43 = vcombine.high %v787_v37, %v791_v39  ;;  %v328_v28 = vld [vmem:[%s6239_s30 + $0xb0] sm:$0xff] }
 0x162   : > { %3550 = vmatpush1.bf16.msra.mxu0 %v5430_v47  ;;  %3706 = vmatpush1.bf16.msra.mxu1 %v5432_v49  ;;  %v795_v47 = vld [vmem:[%s6239_s30 + $0xf48] sm:$0xff] }
 0x163   : > { %3551 = vmatprep.subr.bf16.mxu0 %v5439_v50  ;;  %3707 = vmatprep.subr.bf16.mxu1 %v5441_v51  ;;  %v799_v49 = vld [vmem:[%s6239_s30 + $0xf68] sm:$0xff]  ;;  %v5486_v50 = vcombine.low %v786_v35, %v790_v36  ;;  %v5488_v51 = vcombine.low %v787_v37, %v791_v39  ;;  %v5027_v35 = vcombine.high %v324_v27, %v328_v28  ;;  %v332_v37 = vld [vmem:[%s6239_s30 + $0xd0] sm:$0xff] }
 0x164   : > { %v5497_v53 = vcombine.high %v795_v47, %v799_v49  ;;  %v336_v39 = vld [vmem:[%s6239_s30 + $0xf0] sm:$0xff] }
 0x166   : > { %3552 = vmatpush1.bf16.msra.mxu0 %v5438_v57  ;;  %3708 = vmatpush1.bf16.msra.mxu1 %v5440_v58  ;;  %v803_v57 = vld [vmem:[%s6239_s30 + $0xf88] sm:$0xff] }
 0x167   : > { %3553 = vmatprep.subr.bf16.mxu0 %v5447_v59  ;;  %3709 = vmatprep.subr.bf16.mxu1 %v5449_v61  ;;  %v807_v58 = vld [vmem:[%s6239_s30 + $0xfa8] sm:$0xff]  ;;  %v5494_v59 = vcombine.low %v794_v44, %v798_v46  ;;  %v5496_v61 = vcombine.low %v795_v47, %v799_v49  ;;  %v5035_v44 = vcombine.high %v332_v37, %v336_v39  ;;  %v340_v47 = vld [vmem:[%s6239_s30 + $0x110] sm:$0xff] }
 0x168   : > { %v5505_v63 = vcombine.high %v803_v57, %v807_v58  ;;  %v344_v49 = vld [vmem:[%s6239_s30 + $0x130] sm:$0xff] }
 0x16a   : > { %3554 = vmatpush1.bf16.msra.mxu0 %v5446_v3  ;;  %3710 = vmatpush1.bf16.msra.mxu1 %v5448_v5  ;;  %v811_v3 = vld [vmem:[%s6239_s30 + $0xfc8] sm:$0xff] }
 0x16b   : > { %3555 = vmatprep.subr.bf16.mxu0 %v5455_v6  ;;  %3711 = vmatprep.subr.bf16.mxu1 %v5457_v7  ;;  %v815_v5 = vld [vmem:[%s6239_s30 + $0xfe8] sm:$0xff]  ;;  %v5502_v6 = vcombine.low %v802_v55, %v806_v56  ;;  %v5504_v7 = vcombine.low %v803_v57, %v807_v58  ;;  %v348_v56 = vld [vmem:[%s6239_s30 + $0x150] sm:$0xff]  ;;  %v349_v58 = vld [vmem:[%s6239_s30 + $0x158] sm:$0xff] }
 0x16c   : > { %v5513_v10 = vcombine.high %v811_v3, %v815_v5  ;;  %v352_v57 = vld [vmem:[%s6239_s30 + $0x170] sm:$0xff] }
 0x16e   : > { %3556 = vmatpush1.bf16.msra.mxu0 %v5454_v13  ;;  %3712 = vmatpush1.bf16.msra.mxu1 %v5456_v14  ;;  %v309_v13 = vld [vmem:[%s6239_s30 + $0x18] sm:$0xff] }
 0x16f   : > { %3557 = vmatprep.subr.bf16.mxu0 %v5463_v15  ;;  %3713 = vmatprep.subr.bf16.mxu1 %v5465_v16  ;;  %v313_v14 = vld [vmem:[%s6239_s30 + $0x38] sm:$0xff]  ;;  %v5510_v15 = vcombine.low %v810_v1, %v814_v2  ;;  %v5512_v16 = vcombine.low %v811_v3, %v815_v5  ;;  %v356_v2 = vld [vmem:[%s6239_s30 + $0x190] sm:$0xff] }
 0x170   : > { %v5013_v18 = vcombine.high %v309_v13, %v313_v14  ;;  %v360_v3 = vld [vmem:[%s6239_s30 + $0x1b0] sm:$0xff]  ;;  %v357_v5 = vld [vmem:[%s6239_s30 + $0x198] sm:$0xff] }
 0x172   : > { %3558 = vmatpush1.bf16.msra.mxu0 %v5462_v21  ;;  %3714 = vmatpush1.bf16.msra.mxu1 %v5464_v22  ;;  %v317_v21 = vld [vmem:[%s6239_s30 + $0x58] sm:$0xff] }
 0x173   : > { %3559 = vmatprep.subr.bf16.mxu0 %v5471_v23  ;;  %3715 = vmatprep.subr.bf16.mxu1 %v5473_v60  ;;  %v321_v22 = vld [vmem:[%s6239_s30 + $0x78] sm:$0xff]  ;;  %v5010_v23 = vcombine.low %v308_v11, %v312_v12  ;;  %v5012_v60 = vcombine.low %v309_v13, %v313_v14  ;;  %v364_v12 = vld [vmem:[%s6239_s30 + $0x1d0] sm:$0xff] }
 0x174   : > { %v5021_v26 = vcombine.high %v317_v21, %v321_v22  ;;  %v368_v13 = vld [vmem:[%s6239_s30 + $0x1f0] sm:$0xff]  ;;  %v365_v14 = vld [vmem:[%s6239_s30 + $0x1d8] sm:$0xff] }
 0x176   : > { %3560 = vmatpush1.bf16.msra.mxu0 %v5470_v29  ;;  %3716 = vmatpush1.bf16.msra.mxu1 %v5472_v31  ;;  %v325_v29 = vld [vmem:[%s6239_s30 + $0x98] sm:$0xff] }
 0x177   : > { %3561 = vmatprep.subr.bf16.mxu0 %v5479_v33  ;;  %3717 = vmatprep.subr.bf16.mxu1 %v5481_v34  ;;  %v329_v31 = vld [vmem:[%s6239_s30 + $0xb8] sm:$0xff]  ;;  %v5018_v33 = vcombine.low %v316_v19, %v320_v20  ;;  %v5020_v34 = vcombine.low %v317_v21, %v321_v22  ;;  %v372_v20 = vld [vmem:[%s6239_s30 + $0x210] sm:$0xff] }
 0x178   : > { %v5029_v36 = vcombine.high %v325_v29, %v329_v31  ;;  %v376_v21 = vld [vmem:[%s6239_s30 + $0x230] sm:$0xff]  ;;  %v373_v22 = vld [vmem:[%s6239_s30 + $0x218] sm:$0xff] }
 0x17a   : > { %3562 = vmatpush1.bf16.msra.mxu0 %v5478_v40  ;;  %3718 = vmatpush1.bf16.msra.mxu1 %v5480_v41  ;;  %v333_v40 = vld [vmem:[%s6239_s30 + $0xd8] sm:$0xff] }
 0x17b   : > { %3563 = vmatprep.subr.bf16.mxu0 %v5487_v42  ;;  %3719 = vmatprep.subr.bf16.mxu1 %v5489_v43  ;;  %v337_v41 = vld [vmem:[%s6239_s30 + $0xf8] sm:$0xff]  ;;  %v5026_v42 = vcombine.low %v324_v27, %v328_v28  ;;  %v5028_v43 = vcombine.low %v325_v29, %v329_v31  ;;  %v380_v28 = vld [vmem:[%s6239_s30 + $0x250] sm:$0xff] }
 0x17c   : > { %v5037_v46 = vcombine.high %v333_v40, %v337_v41  ;;  %v384_v29 = vld [vmem:[%s6239_s30 + $0x270] sm:$0xff]  ;;  %v381_v31 = vld [vmem:[%s6239_s30 + $0x258] sm:$0xff] }
 0x17e   : > { %3564 = vmatpush1.bf16.msra.mxu0 %v5486_v50  ;;  %3720 = vmatpush1.bf16.msra.mxu1 %v5488_v51  ;;  %v341_v50 = vld [vmem:[%s6239_s30 + $0x118] sm:$0xff] }
 0x17f   : > { %3565 = vmatprep.subr.bf16.mxu0 %v5495_v52  ;;  %3721 = vmatprep.subr.bf16.mxu1 %v5497_v53  ;;  %v345_v51 = vld [vmem:[%s6239_s30 + $0x138] sm:$0xff]  ;;  %v5034_v52 = vcombine.low %v332_v37, %v336_v39  ;;  %v5043_v53 = vcombine.high %v340_v47, %v344_v49  ;;  %v388_v39 = vld [vmem:[%s6239_s30 + $0x290] sm:$0xff] }
 0x180   : > { %v5045_v55 = vcombine.high %v341_v50, %v345_v51 }
 0x182   : > { %3566 = vmatpush1.bf16.msra.mxu0 %v5494_v59  ;;  %3722 = vmatpush1.bf16.msra.mxu1 %v5496_v61  ;;  %v353_v59 = vld [vmem:[%s6239_s30 + $0x178] sm:$0xff]  ;;  %v5042_v61 = vcombine.low %v340_v47, %v344_v49  ;;  %v396_v49 = vld [vmem:[%s6239_s30 + $0x2d0] sm:$0xff] }
 0x183   : > { %3567 = vmatprep.subr.bf16.mxu0 %v5503_v30  ;;  %3723 = vmatprep.subr.bf16.mxu1 %v5505_v63  ;;  %v5044_v30 = vcombine.low %v341_v50, %v345_v51  ;;  %v5051_v63 = vcombine.high %v348_v56, %v352_v57  ;;  %v5053_v1 = vcombine.high %v349_v58, %v353_v59  ;;  %v400_v50 = vld [vmem:[%s6239_s30 + $0x2f0] sm:$0xff]  ;;  %v397_v51 = vld [vmem:[%s6239_s30 + $0x2d8] sm:$0xff] }
 0x186   : > { %3568 = vmatpush1.bf16.msra.mxu0 %v5502_v6  ;;  %3724 = vmatpush1.bf16.msra.mxu1 %v5504_v7  ;;  %v361_v6 = vld [vmem:[%s6239_s30 + $0x1b8] sm:$0xff]  ;;  %v5050_v7 = vcombine.low %v348_v56, %v352_v57  ;;  %v404_v57 = vld [vmem:[%s6239_s30 + $0x310] sm:$0xff] }
 0x187   : > { %3569 = vmatprep.subr.bf16.mxu0 %v5511_v9  ;;  %3725 = vmatprep.subr.bf16.mxu1 %v5513_v10  ;;  %v5052_v9 = vcombine.low %v349_v58, %v353_v59  ;;  %v5059_v10 = vcombine.high %v356_v2, %v360_v3  ;;  %v5061_v11 = vcombine.high %v357_v5, %v361_v6  ;;  %v408_v58 = vld [vmem:[%s6239_s30 + $0x330] sm:$0xff]  ;;  %v405_v59 = vld [vmem:[%s6239_s30 + $0x318] sm:$0xff] }
 0x18a   : > { %3570 = vmatpush1.bf16.msra.mxu0 %v5510_v15  ;;  %3726 = vmatpush1.bf16.msra.mxu1 %v5512_v16  ;;  %v369_v15 = vld [vmem:[%s6239_s30 + $0x1f8] sm:$0xff]  ;;  %v5058_v16 = vcombine.low %v356_v2, %v360_v3  ;;  %v412_v3 = vld [vmem:[%s6239_s30 + $0x350] sm:$0xff] }
 0x18b   : > { %3734 = vmatprep.subr.bf16.mxu0 %v5011_v17  ;;  %3890 = vmatprep.subr.bf16.mxu1 %v5013_v18  ;;  %v5060_v17 = vcombine.low %v357_v5, %v361_v6  ;;  %v5067_v18 = vcombine.high %v364_v12, %v368_v13  ;;  %v5069_v19 = vcombine.high %v365_v14, %v369_v15  ;;  %v416_v5 = vld [vmem:[%s6239_s30 + $0x370] sm:$0xff]  ;;  %v413_v6 = vld [vmem:[%s6239_s30 + $0x358] sm:$0xff] }
 0x18d   : > { %3572 = vmatmul.mubr.f32.vlgmr.msra.gmra.mrb[0].mxu0 %v6508_v62  ;;  %3728 = vmatmul.mubr.f32.vlgmr.msra.gmra.mrb[0].mxu1 %v6508_v62 }
 0x18e   : > { %3735 = vmatpush1.bf16.msra.mxu0 %v5010_v23  ;;  %3891 = vmatpush1.bf16.msra.mxu1 %v5012_v60  ;;  %v377_v23 = vld [vmem:[%s6239_s30 + $0x238] sm:$0xff]  ;;  %v5066_v60 = vcombine.low %v364_v12, %v368_v13  ;;  %v420_v13 = vld [vmem:[%s6239_s30 + $0x390] sm:$0xff] }
 0x18f   : > { %3736 = vmatprep.subr.bf16.mxu0 %v5019_v25  ;;  %3892 = vmatprep.subr.bf16.mxu1 %v5021_v26  ;;  %v5068_v25 = vcombine.low %v365_v14, %v369_v15  ;;  %v5075_v26 = vcombine.high %v372_v20, %v376_v21  ;;  %v5077_v27 = vcombine.high %v373_v22, %v377_v23  ;;  %v424_v14 = vld [vmem:[%s6239_s30 + $0x3b0] sm:$0xff]  ;;  %v421_v15 = vld [vmem:[%s6239_s30 + $0x398] sm:$0xff] }
 0x190   : > { %3766 = vmatprep.mubr.f32.mxu0 %v6307_v4  ;;  %3922 = vmatprep.mubr.f32.mxu1 %v6307_v4  ;;  %v5036_v4 = vcombine.low %v333_v40, %v337_v41  ;;  %v392_v40 = vld [vmem:[%s6239_s30 + $0x2b0] sm:$0xff]  ;;  %v389_v41 = vld [vmem:[%s6239_s30 + $0x298] sm:$0xff] }
 0x192   : > { %3737 = vmatpush1.bf16.msra.mxu0 %v5018_v33  ;;  %3893 = vmatpush1.bf16.msra.mxu1 %v5020_v34  ;;  %v385_v33 = vld [vmem:[%s6239_s30 + $0x278] sm:$0xff]  ;;  %v5074_v34 = vcombine.low %v372_v20, %v376_v21  ;;  %v428_v21 = vld [vmem:[%s6239_s30 + $0x3d0] sm:$0xff] }
 0x193   : > { %3738 = vmatprep.subr.bf16.mxu0 %v5027_v35  ;;  %3894 = vmatprep.subr.bf16.mxu1 %v5029_v36  ;;  %v5076_v35 = vcombine.low %v373_v22, %v377_v23  ;;  %v5083_v36 = vcombine.high %v380_v28, %v384_v29  ;;  %v5085_v37 = vcombine.high %v381_v31, %v385_v33  ;;  %v432_v22 = vld [vmem:[%s6239_s30 + $0x3f0] sm:$0xff]  ;;  %v429_v23 = vld [vmem:[%s6239_s30 + $0x3d8] sm:$0xff] }
 0x196   : > { %3739 = vmatpush1.bf16.msra.mxu0 %v5026_v42  ;;  %3895 = vmatpush1.bf16.msra.mxu1 %v5028_v43  ;;  %v393_v42 = vld [vmem:[%s6239_s30 + $0x2b8] sm:$0xff]  ;;  %v5082_v43 = vcombine.low %v380_v28, %v384_v29  ;;  %v436_v29 = vld [vmem:[%s6239_s30 + $0x410] sm:$0xff] }
 0x197   : > { %3740 = vmatprep.subr.bf16.mxu0 %v5035_v44  ;;  %3896 = vmatprep.subr.bf16.mxu1 %v5037_v46  ;;  %v5084_v44 = vcombine.low %v381_v31, %v385_v33  ;;  %v5091_v46 = vcombine.high %v388_v39, %v392_v40  ;;  %v5093_v47 = vcombine.high %v389_v41, %v393_v42  ;;  %v440_v31 = vld [vmem:[%s6239_s30 + $0x430] sm:$0xff]  ;;  %v437_v33 = vld [vmem:[%s6239_s30 + $0x418] sm:$0xff] }
 0x19a   : > { %3741 = vmatpush1.bf16.msra.mxu0 %v5034_v52  ;;  %3897 = vmatpush1.bf16.msra.mxu1 %v5036_v4  ;;  %v401_v52 = vld [vmem:[%s6239_s30 + $0x2f8] sm:$0xff]  ;;  %v5090_v4 = vcombine.low %v388_v39, %v392_v40  ;;  %v444_v40 = vld [vmem:[%s6239_s30 + $0x450] sm:$0xff] }
 0x19b   : > { %3742 = vmatprep.subr.bf16.mxu0 %v5043_v53  ;;  %3898 = vmatprep.subr.bf16.mxu1 %v5045_v55  ;;  %v5092_v53 = vcombine.low %v389_v41, %v393_v42  ;;  %v5099_v55 = vcombine.high %v396_v49, %v400_v50  ;;  %v5101_v56 = vcombine.high %v397_v51, %v401_v52  ;;  %v448_v41 = vld [vmem:[%s6239_s30 + $0x470] sm:$0xff]  ;;  %v445_v42 = vld [vmem:[%s6239_s30 + $0x458] sm:$0xff] }
 0x19e   : > { %3743 = vmatpush1.bf16.msra.mxu0 %v5042_v61  ;;  %3899 = vmatpush1.bf16.msra.mxu1 %v5044_v30  ;;  %v409_v61 = vld [vmem:[%s6239_s30 + $0x338] sm:$0xff]  ;;  %v5098_v30 = vcombine.low %v396_v49, %v400_v50  ;;  %v452_v50 = vld [vmem:[%s6239_s30 + $0x490] sm:$0xff] }
 0x19f   : > { %3744 = vmatprep.subr.bf16.mxu0 %v5051_v63  ;;  %3900 = vmatprep.subr.bf16.mxu1 %v5053_v1  ;;  %v5100_v63 = vcombine.low %v397_v51, %v401_v52  ;;  %v5107_v1 = vcombine.high %v404_v57, %v408_v58  ;;  %v5109_v2 = vcombine.high %v405_v59, %v409_v61  ;;  %v456_v51 = vld [vmem:[%s6239_s30 + $0x4b0] sm:$0xff]  ;;  %v453_v52 = vld [vmem:[%s6239_s30 + $0x498] sm:$0xff] }
 0x1a2   : > { %3745 = vmatpush1.bf16.msra.mxu0 %v5050_v7  ;;  %3901 = vmatpush1.bf16.msra.mxu1 %v5052_v9  ;;  %v417_v7 = vld [vmem:[%s6239_s30 + $0x378] sm:$0xff]  ;;  %v5106_v9 = vcombine.low %v404_v57, %v408_v58  ;;  %v460_v58 = vld [vmem:[%s6239_s30 + $0x4d0] sm:$0xff] }
 0x1a3   : > { %3746 = vmatprep.subr.bf16.mxu0 %v5059_v10  ;;  %3902 = vmatprep.subr.bf16.mxu1 %v5061_v11  ;;  %v5108_v10 = vcombine.low %v405_v59, %v409_v61  ;;  %v5115_v11 = vcombine.high %v412_v3, %v416_v5  ;;  %v5117_v12 = vcombine.high %v413_v6, %v417_v7  ;;  %v464_v59 = vld [vmem:[%s6239_s30 + $0x4f0] sm:$0xff]  ;;  %v461_v61 = vld [vmem:[%s6239_s30 + $0x4d8] sm:$0xff] }
 0x1a6   : > { %3747 = vmatpush1.bf16.msra.mxu0 %v5058_v16  ;;  %3903 = vmatpush1.bf16.msra.mxu1 %v5060_v17  ;;  %v425_v16 = vld [vmem:[%s6239_s30 + $0x3b8] sm:$0xff]  ;;  %v5114_v17 = vcombine.low %v412_v3, %v416_v5  ;;  %v468_v3 = vld [vmem:[%s6239_s30 + $0x510] sm:$0xff] }
 0x1a7   : > { %3748 = vmatprep.subr.bf16.mxu0 %v5067_v18  ;;  %3904 = vmatprep.subr.bf16.mxu1 %v5069_v19  ;;  %v5116_v18 = vcombine.low %v413_v6, %v417_v7  ;;  %v5123_v19 = vcombine.high %v420_v13, %v424_v14  ;;  %v5125_v20 = vcombine.high %v421_v15, %v425_v16  ;;  %v472_v5 = vld [vmem:[%s6239_s30 + $0x530] sm:$0xff]  ;;  %v469_v6 = vld [vmem:[%s6239_s30 + $0x518] sm:$0xff] }
 0x1a8   : > { %v473_v7 = vld [vmem:[%s6239_s30 + $0x538] sm:$0xff] }
 0x1aa   : > { %3749 = vmatpush1.bf16.msra.mxu0 %v5066_v60  ;;  %3905 = vmatpush1.bf16.msra.mxu1 %v5068_v25  ;;  %v433_v60 = vld [vmem:[%s6239_s30 + $0x3f8] sm:$0xff]  ;;  %v5122_v25 = vcombine.low %v420_v13, %v424_v14  ;;  %v480_v13 = vld [vmem:[%s6239_s30 + $0x570] sm:$0xff] }
 0x1ab   : > { %3750 = vmatprep.subr.bf16.mxu0 %v5075_v26  ;;  %3906 = vmatprep.subr.bf16.mxu1 %v5077_v27  ;;  %v5124_v26 = vcombine.low %v421_v15, %v425_v16  ;;  %v5131_v27 = vcombine.high %v428_v21, %v432_v22  ;;  %v5133_v28 = vcombine.high %v429_v23, %v433_v60  ;;  %v477_v14 = vld [vmem:[%s6239_s30 + $0x558] sm:$0xff] }
 0x1ac   : > { %v481_v15 = vld [vmem:[%s6239_s30 + $0x578] sm:$0xff]  ;;  %v5170_v16 = vcombine.low %v468_v3, %v472_v5 }
 0x1ae   : > { %3751 = vmatpush1.bf16.msra.mxu0 %v5074_v34  ;;  %3907 = vmatpush1.bf16.msra.mxu1 %v5076_v35  ;;  %v441_v34 = vld [vmem:[%s6239_s30 + $0x438] sm:$0xff]  ;;  %v5130_v35 = vcombine.low %v428_v21, %v432_v22  ;;  %v488_v21 = vld [vmem:[%s6239_s30 + $0x5b0] sm:$0xff] }
 0x1af   : > { %3752 = vmatprep.subr.bf16.mxu0 %v5083_v36  ;;  %3908 = vmatprep.subr.bf16.mxu1 %v5085_v37  ;;  %v5132_v36 = vcombine.low %v429_v23, %v433_v60  ;;  %v5139_v37 = vcombine.high %v436_v29, %v440_v31  ;;  %v5141_v39 = vcombine.high %v437_v33, %v441_v34  ;;  %v485_v22 = vld [vmem:[%s6239_s30 + $0x598] sm:$0xff] }
 0x1b0   : > { %v489_v23 = vld [vmem:[%s6239_s30 + $0x5b8] sm:$0xff] }
 0x1b2   : > { %3753 = vmatpush1.bf16.msra.mxu0 %v5082_v43  ;;  %3909 = vmatpush1.bf16.msra.mxu1 %v5084_v44  ;;  %v449_v43 = vld [vmem:[%s6239_s30 + $0x478] sm:$0xff]  ;;  %v5138_v44 = vcombine.low %v436_v29, %v440_v31  ;;  %v496_v29 = vld [vmem:[%s6239_s30 + $0x5f0] sm:$0xff] }
 0x1b3   : > { %3754 = vmatprep.subr.bf16.mxu0 %v5091_v46  ;;  %3910 = vmatprep.subr.bf16.mxu1 %v5093_v47  ;;  %v5140_v46 = vcombine.low %v437_v33, %v441_v34  ;;  %v5147_v47 = vcombine.high %v444_v40, %v448_v41  ;;  %v5149_v49 = vcombine.high %v445_v42, %v449_v43  ;;  %v493_v31 = vld [vmem:[%s6239_s30 + $0x5d8] sm:$0xff] }
 0x1b4   : > { %v497_v33 = vld [vmem:[%s6239_s30 + $0x5f8] sm:$0xff] }
 0x1b6   : > { %3755 = vmatpush1.bf16.msra.mxu0 %v5090_v4  ;;  %3911 = vmatpush1.bf16.msra.mxu1 %v5092_v53  ;;  %v457_v4 = vld [vmem:[%s6239_s30 + $0x4b8] sm:$0xff]  ;;  %v5146_v53 = vcombine.low %v444_v40, %v448_v41  ;;  %v504_v40 = vld [vmem:[%s6239_s30 + $0x630] sm:$0xff] }
 0x1b7   : > { %3756 = vmatprep.subr.bf16.mxu0 %v5099_v55  ;;  %3912 = vmatprep.subr.bf16.mxu1 %v5101_v56  ;;  %v5148_v55 = vcombine.low %v445_v42, %v449_v43  ;;  %v5155_v56 = vcombine.high %v452_v50, %v456_v51  ;;  %v5157_v57 = vcombine.high %v453_v52, %v457_v4  ;;  %v501_v41 = vld [vmem:[%s6239_s30 + $0x618] sm:$0xff] }
 0x1b8   : > { %v505_v42 = vld [vmem:[%s6239_s30 + $0x638] sm:$0xff] }
 0x1ba   : > { %3757 = vmatpush1.bf16.msra.mxu0 %v5098_v30  ;;  %3913 = vmatpush1.bf16.msra.mxu1 %v5100_v63  ;;  %v465_v30 = vld [vmem:[%s6239_s30 + $0x4f8] sm:$0xff]  ;;  %v5156_v63 = vcombine.low %v453_v52, %v457_v4 }
 0x1bb   : > { %3758 = vmatprep.subr.bf16.mxu0 %v5107_v1  ;;  %3914 = vmatprep.subr.bf16.mxu1 %v5109_v2  ;;  %v5163_v1 = vcombine.high %v460_v58, %v464_v59  ;;  %v5165_v2 = vcombine.high %v461_v61, %v465_v30  ;;  %v513_v52 = vld [vmem:[%s6239_s30 + $0x678] sm:$0xff] }
 0x1be   : > { %3759 = vmatpush1.bf16.msra.mxu0 %v5106_v9  ;;  %3915 = vmatpush1.bf16.msra.mxu1 %v5108_v10  ;;  %v5162_v9 = vcombine.low %v460_v58, %v464_v59  ;;  %v5171_v10 = vcombine.high %v468_v3, %v472_v5  ;;  %v520_v58 = vld [vmem:[%s6239_s30 + $0x6b0] sm:$0xff]  ;;  %v517_v59 = vld [vmem:[%s6239_s30 + $0x698] sm:$0xff] }
 0x1bf   : > { %3760 = vmatprep.subr.bf16.mxu0 %v5115_v11  ;;  %3916 = vmatprep.subr.bf16.mxu1 %v5117_v12  ;;  %v5173_v11 = vcombine.high %v469_v6, %v473_v7  ;;  %v476_v12 = vld [vmem:[%s6239_s30 + $0x550] sm:$0xff]  ;;  %v525_v5 = vld [vmem:[%s6239_s30 + $0x6d8] sm:$0xff] }
 0x1c0   : > { %v5178_v60 = vcombine.low %v476_v12, %v480_v13  ;;  %v528_v3 = vld [vmem:[%s6239_s30 + $0x6f0] sm:$0xff] }
 0x1c2   : > { %3761 = vmatpush1.bf16.msra.mxu0 %v5114_v17  ;;  %3917 = vmatpush1.bf16.msra.mxu1 %v5116_v18  ;;  %v5172_v17 = vcombine.low %v469_v6, %v473_v7  ;;  %v5179_v18 = vcombine.high %v476_v12, %v480_v13  ;;  %v529_v6 = vld [vmem:[%s6239_s30 + $0x6f8] sm:$0xff]  ;;  %v536_v12 = vld [vmem:[%s6239_s30 + $0x730] sm:$0xff] }
 0x1c3   : > { %3762 = vmatprep.subr.bf16.mxu0 %v5123_v19  ;;  %3918 = vmatprep.subr.bf16.mxu1 %v5125_v20  ;;  %v5181_v19 = vcombine.high %v477_v14, %v481_v15  ;;  %v484_v20 = vld [vmem:[%s6239_s30 + $0x590] sm:$0xff]  ;;  %v533_v13 = vld [vmem:[%s6239_s30 + $0x718] sm:$0xff] }
 0x1c4   : > { %v5186_v34 = vcombine.low %v484_v20, %v488_v21 }
 0x1c6   : > { %3763 = vmatpush1.bf16.msra.mxu0 %v5122_v25  ;;  %3919 = vmatpush1.bf16.msra.mxu1 %v5124_v26  ;;  %v5180_v25 = vcombine.low %v477_v14, %v481_v15  ;;  %v5187_v26 = vcombine.high %v484_v20, %v488_v21  ;;  %v537_v14 = vld [vmem:[%s6239_s30 + $0x738] sm:$0xff]  ;;  %v544_v20 = vld [vmem:[%s6239_s30 + $0x770] sm:$0xff] }
 0x1c7   : > { %3764 = vmatprep.subr.bf16.mxu0 %v5131_v27  ;;  %3920 = vmatprep.subr.bf16.mxu1 %v5133_v28  ;;  %v5189_v27 = vcombine.high %v485_v22, %v489_v23  ;;  %v492_v28 = vld [vmem:[%s6239_s30 + $0x5d0] sm:$0xff]  ;;  %v541_v21 = vld [vmem:[%s6239_s30 + $0x758] sm:$0xff] }
 0x1c8   : > { %v5194_v43 = vcombine.low %v492_v28, %v496_v29 }
 0x1ca   : > { %3765 = vmatpush1.bf16.msra.mxu0 %v5130_v35  ;;  %3921 = vmatpush1.bf16.msra.mxu1 %v5132_v36  ;;  %v5188_v35 = vcombine.low %v485_v22, %v489_v23  ;;  %v5195_v36 = vcombine.high %v492_v28, %v496_v29  ;;  %v545_v22 = vld [vmem:[%s6239_s30 + $0x778] sm:$0xff]  ;;  %v552_v28 = vld [vmem:[%s6239_s30 + $0x7b0] sm:$0xff] }
 0x1cb   : > { %3773 = vmatprep.subr.bf16.mxu0 %v5139_v37  ;;  %3929 = vmatprep.subr.bf16.mxu1 %v5141_v39  ;;  %v5197_v37 = vcombine.high %v493_v31, %v497_v33  ;;  %v500_v39 = vld [vmem:[%s6239_s30 + $0x610] sm:$0xff]  ;;  %v549_v29 = vld [vmem:[%s6239_s30 + $0x798] sm:$0xff] }
 0x1cc   : > { %v5202_v4 = vcombine.low %v500_v39, %v504_v40 }
 0x1cd   : > { %3767 = vmatmul.mubr.f32.vlgmr.msra.gmra.mrb[2].mxu0 %v6301_v0  ;;  %3923 = vmatmul.mubr.f32.vlgmr.msra.gmra.mrb[2].mxu1 %v6301_v0  ;;  %v5154_v0 = vcombine.low %v452_v50, %v456_v51  ;;  %v512_v50 = vld [vmem:[%s6239_s30 + $0x670] sm:$0xff]  ;;  %v509_v51 = vld [vmem:[%s6239_s30 + $0x658] sm:$0xff] }
 0x1ce   : > { %3774 = vmatpush1.bf16.msra.mxu0 %v5138_v44  ;;  %3930 = vmatpush1.bf16.msra.mxu1 %v5140_v46  ;;  %v5196_v44 = vcombine.low %v493_v31, %v497_v33  ;;  %v5203_v46 = vcombine.high %v500_v39, %v504_v40  ;;  %v553_v31 = vld [vmem:[%s6239_s30 + $0x7b8] sm:$0xff]  ;;  %v560_v39 = vld [vmem:[%s6239_s30 + $0x7f0] sm:$0xff] }
 0x1cf   : > { %3775 = vmatprep.subr.bf16.mxu0 %v5147_v47  ;;  %3931 = vmatprep.subr.bf16.mxu1 %v5149_v49  ;;  %v5205_v47 = vcombine.high %v501_v41, %v505_v42  ;;  %v508_v49 = vld [vmem:[%s6239_s30 + $0x650] sm:$0xff]  ;;  %v557_v40 = vld [vmem:[%s6239_s30 + $0x7d8] sm:$0xff] }
 0x1d0   : > { %3805 = vmatprep.mubr.f32.mxu0 %v6360_v32  ;;  %3961 = vmatprep.mubr.f32.mxu1 %v6360_v32  ;;  %v5164_v32 = vcombine.low %v461_v61, %v465_v30  ;;  %v521_v61 = vld [vmem:[%s6239_s30 + $0x6b8] sm:$0xff]  ;;  %v5210_v30 = vcombine.low %v508_v49, %v512_v50 }
 0x1d2   : > { %3776 = vmatpush1.bf16.msra.mxu0 %v5146_v53  ;;  %3932 = vmatpush1.bf16.msra.mxu1 %v5148_v55  ;;  %v5204_v53 = vcombine.low %v501_v41, %v505_v42  ;;  %v5211_v55 = vcombine.high %v508_v49, %v512_v50  ;;  %v561_v41 = vld [vmem:[%s6239_s30 + $0x7f8] sm:$0xff]  ;;  %v568_v49 = vld [vmem:[%s6239_s30 + $0x830] sm:$0xff] }
 0x1d3   : > { %3777 = vmatprep.subr.bf16.mxu0 %v5155_v56  ;;  %3933 = vmatprep.subr.bf16.mxu1 %v5157_v57  ;;  %v5213_v56 = vcombine.high %v509_v51, %v513_v52  ;;  %v516_v57 = vld [vmem:[%s6239_s30 + $0x690] sm:$0xff]  ;;  %v565_v50 = vld [vmem:[%s6239_s30 + $0x818] sm:$0xff] }
 0x1d4   : > { %v5218_v7 = vcombine.low %v516_v57, %v520_v58 }
 0x1d6   : > { %3778 = vmatpush1.bf16.msra.mxu0 %v5154_v0  ;;  %3934 = vmatpush1.bf16.msra.mxu1 %v5156_v63  ;;  %v5212_v0 = vcombine.low %v509_v51, %v513_v52  ;;  %v5219_v63 = vcombine.high %v516_v57, %v520_v58  ;;  %v569_v51 = vld [vmem:[%s6239_s30 + $0x838] sm:$0xff]  ;;  %v576_v57 = vld [vmem:[%s6239_s30 + $0x870] sm:$0xff] }
 0x1d7   : > { %3779 = vmatprep.subr.bf16.mxu0 %v5163_v1  ;;  %3935 = vmatprep.subr.bf16.mxu1 %v5165_v2  ;;  %v5221_v1 = vcombine.high %v517_v59, %v521_v61  ;;  %v524_v2 = vld [vmem:[%s6239_s30 + $0x6d0] sm:$0xff]  ;;  %v573_v58 = vld [vmem:[%s6239_s30 + $0x858] sm:$0xff] }
 0x1d8   : > { %v5226_v15 = vcombine.low %v524_v2, %v528_v3 }
 0x1da   : > { %3780 = vmatpush1.bf16.msra.mxu0 %v5162_v9  ;;  %3936 = vmatpush1.bf16.msra.mxu1 %v5164_v32  ;;  %v5220_v9 = vcombine.low %v517_v59, %v521_v61  ;;  %v5227_v32 = vcombine.high %v524_v2, %v528_v3  ;;  %v577_v59 = vld [vmem:[%s6239_s30 + $0x878] sm:$0xff]  ;;  %v584_v2 = vld [vmem:[%s6239_s30 + $0x8b0] sm:$0xff] }
 0x1db   : > { %3781 = vmatprep.subr.bf16.mxu0 %v5171_v10  ;;  %3937 = vmatprep.subr.bf16.mxu1 %v5173_v11  ;;  %v5229_v10 = vcombine.high %v525_v5, %v529_v6  ;;  %v532_v11 = vld [vmem:[%s6239_s30 + $0x710] sm:$0xff]  ;;  %v581_v3 = vld [vmem:[%s6239_s30 + $0x898] sm:$0xff] }
 0x1dc   : > { %v5234_v23 = vcombine.low %v532_v11, %v536_v12 }
 0x1de   : > { %3782 = vmatpush1.bf16.msra.mxu0 %v5170_v16  ;;  %3938 = vmatpush1.bf16.msra.mxu1 %v5172_v17  ;;  %v5228_v16 = vcombine.low %v525_v5, %v529_v6  ;;  %v5235_v17 = vcombine.high %v532_v11, %v536_v12  ;;  %v585_v5 = vld [vmem:[%s6239_s30 + $0x8b8] sm:$0xff]  ;;  %v592_v11 = vld [vmem:[%s6239_s30 + $0x8f0] sm:$0xff] }
 0x1df   : > { %3783 = vmatprep.subr.bf16.mxu0 %v5179_v18  ;;  %3939 = vmatprep.subr.bf16.mxu1 %v5181_v19  ;;  %v5237_v18 = vcombine.high %v533_v13, %v537_v14  ;;  %v540_v19 = vld [vmem:[%s6239_s30 + $0x750] sm:$0xff]  ;;  %v589_v12 = vld [vmem:[%s6239_s30 + $0x8d8] sm:$0xff] }
 0x1e0   : > { %v5242_v33 = vcombine.low %v540_v19, %v544_v20 }
 0x1e2   : > { %3784 = vmatpush1.bf16.msra.mxu0 %v5178_v60  ;;  %3940 = vmatpush1.bf16.msra.mxu1 %v5180_v25  ;;  %v5236_v60 = vcombine.low %v533_v13, %v537_v14  ;;  %v5243_v25 = vcombine.high %v540_v19, %v544_v20  ;;  %v593_v13 = vld [vmem:[%s6239_s30 + $0x8f8] sm:$0xff]  ;;  %v5284_v14 = vcombine.low %v581_v3, %v585_v5 }
 0x1e3   : > { %3785 = vmatprep.subr.bf16.mxu0 %v5187_v26  ;;  %3941 = vmatprep.subr.bf16.mxu1 %v5189_v27  ;;  %v5245_v26 = vcombine.high %v541_v21, %v545_v22  ;;  %v548_v27 = vld [vmem:[%s6239_s30 + $0x790] sm:$0xff]  ;;  %v597_v19 = vld [vmem:[%s6239_s30 + $0x918] sm:$0xff] }
 0x1e4   : > { %v5250_v42 = vcombine.low %v548_v27, %v552_v28  ;;  %v601_v20 = vld [vmem:[%s6239_s30 + $0x938] sm:$0xff] }
 0x1e6   : > { %3786 = vmatpush1.bf16.msra.mxu0 %v5186_v34  ;;  %3942 = vmatpush1.bf16.msra.mxu1 %v5188_v35  ;;  %v5244_v34 = vcombine.low %v541_v21, %v545_v22  ;;  %v5251_v35 = vcombine.high %v548_v27, %v552_v28  ;;  %v609_v27 = vld [vmem:[%s6239_s30 + $0x978] sm:$0xff] }
 0x1e7   : > { %3787 = vmatprep.subr.bf16.mxu0 %v5195_v36  ;;  %3943 = vmatprep.subr.bf16.mxu1 %v5197_v37  ;;  %v5253_v36 = vcombine.high %v549_v29, %v553_v31  ;;  %v556_v37 = vld [vmem:[%s6239_s30 + $0x7d0] sm:$0xff] }
 0x1e8   : > { %v5258_v52 = vcombine.low %v556_v37, %v560_v39 }
 0x1ea   : > { %3788 = vmatpush1.bf16.msra.mxu0 %v5194_v43  ;;  %3944 = vmatpush1.bf16.msra.mxu1 %v5196_v44  ;;  %v5252_v43 = vcombine.low %v549_v29, %v553_v31  ;;  %v5259_v44 = vcombine.high %v556_v37, %v560_v39  ;;  %v5300_v29 = vcombine.low %v597_v19, %v601_v20  ;;  %v617_v37 = vld [vmem:[%s6239_s30 + $0x9b8] sm:$0xff] }
 0x1eb   : > { %3789 = vmatprep.subr.bf16.mxu0 %v5203_v46  ;;  %3945 = vmatprep.subr.bf16.mxu1 %v5205_v47  ;;  %v5261_v46 = vcombine.high %v557_v40, %v561_v41  ;;  %v564_v47 = vld [vmem:[%s6239_s30 + $0x810] sm:$0xff] }
 0x1ec   : > { %v5266_v61 = vcombine.low %v564_v47, %v568_v49 }
 0x1ee   : > { %3790 = vmatpush1.bf16.msra.mxu0 %v5202_v4  ;;  %3946 = vmatpush1.bf16.msra.mxu1 %v5204_v53  ;;  %v5260_v4 = vcombine.low %v557_v40, %v561_v41  ;;  %v5267_v53 = vcombine.high %v564_v47, %v568_v49  ;;  %v625_v47 = vld [vmem:[%s6239_s30 + $0x9f8] sm:$0xff] }
 0x1ef   : > { %3791 = vmatprep.subr.bf16.mxu0 %v5211_v55  ;;  %3947 = vmatprep.subr.bf16.mxu1 %v5213_v56  ;;  %v5269_v55 = vcombine.high %v565_v50, %v569_v51  ;;  %v572_v56 = vld [vmem:[%s6239_s30 + $0x850] sm:$0xff] }
 0x1f0   : > { %v5274_v6 = vcombine.low %v572_v56, %v576_v57 }
 0x1f2   : > { %3792 = vmatpush1.bf16.msra.mxu0 %v5210_v30  ;;  %3948 = vmatpush1.bf16.msra.mxu1 %v5212_v0  ;;  %v5268_v30 = vcombine.low %v565_v50, %v569_v51  ;;  %v5275_v0 = vcombine.high %v572_v56, %v576_v57  ;;  %v633_v56 = vld [vmem:[%s6239_s30 + $0xa38] sm:$0xff] }
 0x1f3   : > { %3793 = vmatprep.subr.bf16.mxu0 %v5219_v63  ;;  %3949 = vmatprep.subr.bf16.mxu1 %v5221_v1  ;;  %v5277_v63 = vcombine.high %v573_v58, %v577_v59  ;;  %v580_v1 = vld [vmem:[%s6239_s30 + $0x890] sm:$0xff] }
 0x1f6   : > { %3794 = vmatpush1.bf16.msra.mxu0 %v5218_v7  ;;  %3950 = vmatpush1.bf16.msra.mxu1 %v5220_v9  ;;  %v5276_v7 = vcombine.low %v573_v58, %v577_v59  ;;  %v5283_v9 = vcombine.high %v580_v1, %v584_v2 }
 0x1f7   : > { %3795 = vmatprep.subr.bf16.mxu0 %v5227_v32  ;;  %3951 = vmatprep.subr.bf16.mxu1 %v5229_v10  ;;  %v5285_v32 = vcombine.high %v581_v3, %v585_v5  ;;  %v588_v10 = vld [vmem:[%s6239_s30 + $0x8d0] sm:$0xff] }
 0x1f8   : > { %v5290_v21 = vcombine.low %v588_v10, %v592_v11 }
 0x1fa   : > { %3796 = vmatpush1.bf16.msra.mxu0 %v5226_v15  ;;  %3952 = vmatpush1.bf16.msra.mxu1 %v5228_v16  ;;  %v5291_v15 = vcombine.high %v588_v10, %v592_v11  ;;  %v5293_v16 = vcombine.high %v589_v12, %v593_v13  ;;  %v649_v10 = vld [vmem:[%s6239_s30 + $0xab8] sm:$0xff] }
 0x1fb   : > { %3797 = vmatprep.subr.bf16.mxu0 %v5235_v17  ;;  %3953 = vmatprep.subr.bf16.mxu1 %v5237_v18  ;;  %v596_v17 = vld [vmem:[%s6239_s30 + $0x910] sm:$0xff] }
 0x1fc   : > { %v600_v18 = vld [vmem:[%s6239_s30 + $0x930] sm:$0xff] }
 0x1fd   : > { %v5299_v22 = vcombine.high %v596_v17, %v600_v18  ;;  %v5298_v28 = vcombine.low %v596_v17, %v600_v18  ;;  %v657_v17 = vld [vmem:[%s6239_s30 + $0xaf8] sm:$0xff] }
 0x1fe   : > { %3798 = vmatpush1.bf16.msra.mxu0 %v5234_v23  ;;  %3954 = vmatpush1.bf16.msra.mxu1 %v5236_v60  ;;  %v5301_v23 = vcombine.high %v597_v19, %v601_v20  ;;  %v604_v60 = vld [vmem:[%s6239_s30 + $0x950] sm:$0xff] }
 0x1ff   : > { %3799 = vmatprep.subr.bf16.mxu0 %v5243_v25  ;;  %3955 = vmatprep.subr.bf16.mxu1 %v5245_v26  ;;  %v608_v25 = vld [vmem:[%s6239_s30 + $0x970] sm:$0xff]  ;;  %v605_v26 = vld [vmem:[%s6239_s30 + $0x958] sm:$0xff] }
 0x200   : > { %v5307_v31 = vcombine.high %v604_v60, %v608_v25  ;;  %v5306_v39 = vcombine.low %v604_v60, %v608_v25  ;;  %v5308_v40 = vcombine.low %v605_v26, %v609_v27  ;;  %v665_v60 = vld [vmem:[%s6239_s30 + $0xb38] sm:$0xff] }
 0x202   : > { %3800 = vmatpush1.bf16.msra.mxu0 %v5242_v33  ;;  %3956 = vmatpush1.bf16.msra.mxu1 %v5244_v34  ;;  %v5309_v33 = vcombine.high %v605_v26, %v609_v27  ;;  %v612_v34 = vld [vmem:[%s6239_s30 + $0x990] sm:$0xff] }
 0x203   : > { %3801 = vmatprep.subr.bf16.mxu0 %v5251_v35  ;;  %3957 = vmatprep.subr.bf16.mxu1 %v5253_v36  ;;  %v616_v35 = vld [vmem:[%s6239_s30 + $0x9b0] sm:$0xff]  ;;  %v613_v36 = vld [vmem:[%s6239_s30 + $0x998] sm:$0xff] }
 0x204   : > { %v5315_v41 = vcombine.high %v612_v34, %v616_v35  ;;  %v5314_v49 = vcombine.low %v612_v34, %v616_v35  ;;  %v5316_v50 = vcombine.low %v613_v36, %v617_v37  ;;  %v673_v34 = vld [vmem:[%s6239_s30 + $0xb78] sm:$0xff] }
 0x206   : > { %3802 = vmatpush1.bf16.msra.mxu0 %v5250_v42  ;;  %3958 = vmatpush1.bf16.msra.mxu1 %v5252_v43  ;;  %v5317_v42 = vcombine.high %v613_v36, %v617_v37  ;;  %v620_v43 = vld [vmem:[%s6239_s30 + $0x9d0] sm:$0xff] }
 0x207   : > { %3803 = vmatprep.subr.bf16.mxu0 %v5259_v44  ;;  %3959 = vmatprep.subr.bf16.mxu1 %v5261_v46  ;;  %v624_v44 = vld [vmem:[%s6239_s30 + $0x9f0] sm:$0xff]  ;;  %v621_v46 = vld [vmem:[%s6239_s30 + $0x9d8] sm:$0xff] }
 0x208   : > { %v5323_v51 = vcombine.high %v620_v43, %v624_v44  ;;  %v5322_v57 = vcombine.low %v620_v43, %v624_v44  ;;  %v5324_v58 = vcombine.low %v621_v46, %v625_v47  ;;  %v681_v43 = vld [vmem:[%s6239_s30 + $0xbb8] sm:$0xff] }
 0x20a   : > { %3804 = vmatpush1.bf16.msra.mxu0 %v5258_v52  ;;  %3960 = vmatpush1.bf16.msra.mxu1 %v5260_v4  ;;  %v5325_v52 = vcombine.high %v621_v46, %v625_v47  ;;  %v628_v4 = vld [vmem:[%s6239_s30 + $0xa10] sm:$0xff] }
 0x20b   : > { %3812 = vmatprep.subr.bf16.mxu0 %v5267_v53  ;;  %3968 = vmatprep.subr.bf16.mxu1 %v5269_v55  ;;  %v632_v53 = vld [vmem:[%s6239_s30 + $0xa30] sm:$0xff]  ;;  %v629_v55 = vld [vmem:[%s6239_s30 + $0xa18] sm:$0xff] }
 0x20c   : > { %v5331_v59 = vcombine.high %v628_v4, %v632_v53  ;;  %v5332_v3 = vcombine.low %v629_v55, %v633_v56 }
 0x20d   : > { %3806 = vmatmul.mubr.f32.vlgmr.msra.gmra.mrb[2].mxu0 %v6352_v24  ;;  %3962 = vmatmul.mubr.f32.vlgmr.msra.gmra.mrb[2].mxu1 %v6352_v24  ;;  %v5282_v24 = vcombine.low %v580_v1, %v584_v2  ;;  %v641_v1 = vld [vmem:[%s6239_s30 + $0xa78] sm:$0xff]  ;;  %v5330_v2 = vcombine.low %v628_v4, %v632_v53 }
 0x20e   : > { %3813 = vmatpush1.bf16.msra.mxu0 %v5266_v61  ;;  %3969 = vmatpush1.bf16.msra.mxu1 %v5268_v30  ;;  %v5333_v61 = vcombine.high %v629_v55, %v633_v56  ;;  %v636_v30 = vld [vmem:[%s6239_s30 + $0xa50] sm:$0xff]  ;;  %v689_v4 = vld [vmem:[%s6239_s30 + $0xbf8] sm:$0xff] }
 0x20f   : > { %3814 = vmatprep.subr.bf16.mxu0 %v5275_v0  ;;  %3970 = vmatprep.subr.bf16.mxu1 %v5277_v63  ;;  %v640_v0 = vld [vmem:[%s6239_s30 + $0xa70] sm:$0xff]  ;;  %v637_v63 = vld [vmem:[%s6239_s30 + $0xa58] sm:$0xff] }
 0x210   : > { %3844 = vmatprep.mubr.f32.mxu0 %v6439_v48  ;;  %4000 = vmatprep.mubr.f32.mxu1 %v6439_v48  ;;  %v5292_v48 = vcombine.low %v589_v12, %v593_v13  ;;  %v5339_v5 = vcombine.high %v636_v30, %v640_v0  ;;  %v5338_v11 = vcombine.low %v636_v30, %v640_v0  ;;  %v697_v30 = vld [vmem:[%s6239_s30 + $0xc38] sm:$0xff] }
 0x211   : > { %v5340_v12 = vcombine.low %v637_v63, %v641_v1 }
 0x212   : > { %3815 = vmatpush1.bf16.msra.mxu0 %v5274_v6  ;;  %3971 = vmatpush1.bf16.msra.mxu1 %v5276_v7  ;;  %v5341_v6 = vcombine.high %v637_v63, %v641_v1  ;;  %v644_v7 = vld [vmem:[%s6239_s30 + $0xa90] sm:$0xff] }
 0x213   : > { %3816 = vmatprep.subr.bf16.mxu0 %v5283_v9  ;;  %3972 = vmatprep.subr.bf16.mxu1 %v5285_v32  ;;  %v648_v9 = vld [vmem:[%s6239_s30 + $0xab0] sm:$0xff]  ;;  %v645_v32 = vld [vmem:[%s6239_s30 + $0xa98] sm:$0xff] }
 0x214   : > { %v5347_v13 = vcombine.high %v644_v7, %v648_v9  ;;  %v5346_v18 = vcombine.low %v644_v7, %v648_v9  ;;  %v5348_v19 = vcombine.low %v645_v32, %v649_v10  ;;  %v705_v7 = vld [vmem:[%s6239_s30 + $0xc78] sm:$0xff] }
 0x216   : > { %3817 = vmatpush1.bf16.msra.mxu0 %v5282_v24  ;;  %3973 = vmatpush1.bf16.msra.mxu1 %v5284_v14  ;;  %v5349_v24 = vcombine.high %v645_v32, %v649_v10  ;;  %v652_v14 = vld [vmem:[%s6239_s30 + $0xad0] sm:$0xff] }
 0x217   : > { %3818 = vmatprep.subr.bf16.mxu0 %v5291_v15  ;;  %3974 = vmatprep.subr.bf16.mxu1 %v5293_v16  ;;  %v656_v15 = vld [vmem:[%s6239_s30 + $0xaf0] sm:$0xff]  ;;  %v653_v16 = vld [vmem:[%s6239_s30 + $0xad8] sm:$0xff] }
 0x218   : > { %v5355_v20 = vcombine.high %v652_v14, %v656_v15  ;;  %v5354_v25 = vcombine.low %v652_v14, %v656_v15  ;;  %v5356_v26 = vcombine.low %v653_v16, %v657_v17  ;;  %v713_v14 = vld [vmem:[%s6239_s30 + $0xcb8] sm:$0xff] }
 0x21a   : > { %3819 = vmatpush1.bf16.msra.mxu0 %v5290_v21  ;;  %3975 = vmatpush1.bf16.msra.mxu1 %v5292_v48  ;;  %v5357_v21 = vcombine.high %v653_v16, %v657_v17  ;;  %v660_v48 = vld [vmem:[%s6239_s30 + $0xb10] sm:$0xff] }
 0x21b   : > { %3820 = vmatprep.subr.bf16.mxu0 %v5299_v22  ;;  %3976 = vmatprep.subr.bf16.mxu1 %v5301_v23  ;;  %v664_v22 = vld [vmem:[%s6239_s30 + $0xb30] sm:$0xff]  ;;  %v661_v23 = vld [vmem:[%s6239_s30 + $0xb18] sm:$0xff] }
 0x21c   : > { %v5363_v27 = vcombine.high %v660_v48, %v664_v22  ;;  %v5362_v35 = vcombine.low %v660_v48, %v664_v22  ;;  %v5364_v36 = vcombine.low %v661_v23, %v665_v60  ;;  %v721_v48 = vld [vmem:[%s6239_s30 + $0xcf8] sm:$0xff] }
 0x21e   : > { %3821 = vmatpush1.bf16.msra.mxu0 %v5298_v28  ;;  %3977 = vmatpush1.bf16.msra.mxu1 %v5300_v29  ;;  %v5365_v28 = vcombine.high %v661_v23, %v665_v60  ;;  %v668_v29 = vld [vmem:[%s6239_s30 + $0xb50] sm:$0xff] }
 0x21f   : > { %3822 = vmatprep.subr.bf16.mxu0 %v5307_v31  ;;  %3978 = vmatprep.subr.bf16.mxu1 %v5309_v33  ;;  %v672_v31 = vld [vmem:[%s6239_s30 + $0xb70] sm:$0xff]  ;;  %v669_v33 = vld [vmem:[%s6239_s30 + $0xb58] sm:$0xff] }
 0x220   : > { %v5371_v37 = vcombine.high %v668_v29, %v672_v31  ;;  %v5370_v44 = vcombine.low %v668_v29, %v672_v31  ;;  %v5372_v46 = vcombine.low %v669_v33, %v673_v34 }
 0x222   : > { %3823 = vmatpush1.bf16.msra.mxu0 %v5306_v39  ;;  %3979 = vmatpush1.bf16.msra.mxu1 %v5308_v40  ;;  %v5373_v39 = vcombine.high %v669_v33, %v673_v34  ;;  %v676_v40 = vld [vmem:[%s6239_s30 + $0xb90] sm:$0xff] }
 0x223   : > { %3824 = vmatprep.subr.bf16.mxu0 %v5315_v41  ;;  %3980 = vmatprep.subr.bf16.mxu1 %v5317_v42  ;;  %v680_v41 = vld [vmem:[%s6239_s30 + $0xbb0] sm:$0xff]  ;;  %v677_v42 = vld [vmem:[%s6239_s30 + $0xb98] sm:$0xff] }
 0x224   : > { %v5379_v47 = vcombine.high %v676_v40, %v680_v41  ;;  %v5378_v53 = vcombine.low %v676_v40, %v680_v41  ;;  %v5380_v55 = vcombine.low %v677_v42, %v681_v43  ;;  %v732_v34 = vld [vmem:[%s6239_s30 + $0xd50] sm:$0xff] }
 0x226   : > { %3825 = vmatpush1.bf16.msra.mxu0 %v5314_v49  ;;  %3981 = vmatpush1.bf16.msra.mxu1 %v5316_v50  ;;  %v5381_v49 = vcombine.high %v677_v42, %v681_v43  ;;  %v684_v50 = vld [vmem:[%s6239_s30 + $0xbd0] sm:$0xff] }
 0x227   : > { %3826 = vmatprep.subr.bf16.mxu0 %v5323_v51  ;;  %3982 = vmatprep.subr.bf16.mxu1 %v5325_v52  ;;  %v688_v51 = vld [vmem:[%s6239_s30 + $0xbf0] sm:$0xff]  ;;  %v685_v52 = vld [vmem:[%s6239_s30 + $0xbd8] sm:$0xff] }
 0x228   : > { %v5387_v56 = vcombine.high %v684_v50, %v688_v51  ;;  %v5386_v0 = vcombine.low %v684_v50, %v688_v51  ;;  %v5388_v63 = vcombine.low %v685_v52, %v689_v4  ;;  %v740_v43 = vld [vmem:[%s6239_s30 + $0xd90] sm:$0xff] }
 0x22a   : > { %3827 = vmatpush1.bf16.msra.mxu0 %v5322_v57  ;;  %3983 = vmatpush1.bf16.msra.mxu1 %v5324_v58  ;;  %v5389_v57 = vcombine.high %v685_v52, %v689_v4  ;;  %v692_v58 = vld [vmem:[%s6239_s30 + $0xc10] sm:$0xff] }
 0x22b   : > { %3828 = vmatprep.subr.bf16.mxu0 %v5331_v59  ;;  %3984 = vmatprep.subr.bf16.mxu1 %v5333_v61  ;;  %v696_v59 = vld [vmem:[%s6239_s30 + $0xc30] sm:$0xff]  ;;  %v693_v61 = vld [vmem:[%s6239_s30 + $0xc18] sm:$0xff] }
 0x22c   : > { %v5395_v1 = vcombine.high %v692_v58, %v696_v59  ;;  %v5394_v9 = vcombine.low %v692_v58, %v696_v59  ;;  %v5396_v32 = vcombine.low %v693_v61, %v697_v30  ;;  %v749_v58 = vld [vmem:[%s6239_s30 + $0xdd8] sm:$0xff] }
 0x22d   : > { %v753_v59 = vld [vmem:[%s6239_s30 + $0xdf8] sm:$0xff] }
 0x22e   : > { %3829 = vmatpush1.bf16.msra.mxu0 %v5330_v2  ;;  %3985 = vmatpush1.bf16.msra.mxu1 %v5332_v3  ;;  %v5397_v2 = vcombine.high %v693_v61, %v697_v30  ;;  %v700_v3 = vld [vmem:[%s6239_s30 + $0xc50] sm:$0xff] }
 0x22f   : > { %3830 = vmatprep.subr.bf16.mxu0 %v5339_v5  ;;  %3986 = vmatprep.subr.bf16.mxu1 %v5341_v6  ;;  %v704_v5 = vld [vmem:[%s6239_s30 + $0xc70] sm:$0xff]  ;;  %v701_v6 = vld [vmem:[%s6239_s30 + $0xc58] sm:$0xff] }
 0x230   : > { %v5403_v10 = vcombine.high %v700_v3, %v704_v5  ;;  %v5402_v15 = vcombine.low %v700_v3, %v704_v5  ;;  %v5404_v16 = vcombine.low %v701_v6, %v705_v7  ;;  %v5453_v5 = vcombine.high %v749_v58, %v753_v59 }
 0x232   : > { %3831 = vmatpush1.bf16.msra.mxu0 %v5338_v11  ;;  %3987 = vmatpush1.bf16.msra.mxu1 %v5340_v12  ;;  %v5405_v11 = vcombine.high %v701_v6, %v705_v7  ;;  %v708_v12 = vld [vmem:[%s6239_s30 + $0xc90] sm:$0xff] }
 0x233   : > { %3832 = vmatprep.subr.bf16.mxu0 %v5347_v13  ;;  %3988 = vmatprep.subr.bf16.mxu1 %v5349_v24  ;;  %v712_v13 = vld [vmem:[%s6239_s30 + $0xcb0] sm:$0xff]  ;;  %v709_v24 = vld [vmem:[%s6239_s30 + $0xc98] sm:$0xff] }
 0x234   : > { %v5411_v17 = vcombine.high %v708_v12, %v712_v13  ;;  %v5412_v22 = vcombine.low %v709_v24, %v713_v14  ;;  %v756_v6 = vld [vmem:[%s6239_s30 + $0xe10] sm:$0xff] }
 0x235   : > { %v760_v7 = vld [vmem:[%s6239_s30 + $0xe30] sm:$0xff] }
 0x236   : > { %3833 = vmatpush1.bf16.msra.mxu0 %v5346_v18  ;;  %3989 = vmatpush1.bf16.msra.mxu1 %v5348_v19  ;;  %v5413_v18 = vcombine.high %v709_v24, %v713_v14  ;;  %v716_v19 = vld [vmem:[%s6239_s30 + $0xcd0] sm:$0xff]  ;;  %v5452_v24 = vcombine.low %v749_v58, %v753_v59  ;;  %v5459_v14 = vcombine.high %v756_v6, %v760_v7 }
 0x237   : > { %3834 = vmatprep.subr.bf16.mxu0 %v5355_v20  ;;  %3990 = vmatprep.subr.bf16.mxu1 %v5357_v21  ;;  %v720_v20 = vld [vmem:[%s6239_s30 + $0xcf0] sm:$0xff]  ;;  %v717_v21 = vld [vmem:[%s6239_s30 + $0xcd8] sm:$0xff] }
 0x238   : > { %v5419_v23 = vcombine.high %v716_v19, %v720_v20  ;;  %v5421_v60 = vcombine.high %v717_v21, %v721_v48  ;;  %v5418_v29 = vcombine.low %v716_v19, %v720_v20  ;;  %v765_v19 = vld [vmem:[%s6239_s30 + $0xe58] sm:$0xff]  ;;  %v804_v59 = vld [vmem:[%s6239_s30 + $0xf90] sm:$0xff] }
 0x239   : > { %v769_v20 = vld [vmem:[%s6239_s30 + $0xe78] sm:$0xff] }
 0x23a   : > { %3835 = vmatpush1.bf16.msra.mxu0 %v5354_v25  ;;  %3991 = vmatpush1.bf16.msra.mxu1 %v5356_v26  ;;  %v724_v25 = vld [vmem:[%s6239_s30 + $0xd10] sm:$0xff] }
 0x23b   : > { %3836 = vmatprep.subr.bf16.mxu0 %v5363_v27  ;;  %3992 = vmatprep.subr.bf16.mxu1 %v5365_v28  ;;  %v728_v26 = vld [vmem:[%s6239_s30 + $0xd30] sm:$0xff]  ;;  %v725_v27 = vld [vmem:[%s6239_s30 + $0xd18] sm:$0xff] }
 0x23c   : > { %v729_v28 = vld [vmem:[%s6239_s30 + $0xd38] sm:$0xff]  ;;  %v5427_v31 = vcombine.high %v724_v25, %v728_v26 }
 0x23d   : > { %v5429_v33 = vcombine.high %v725_v27, %v729_v28  ;;  %v5428_v40 = vcombine.low %v725_v27, %v729_v28  ;;  %v5468_v28 = vcombine.low %v765_v19, %v769_v20 }
 0x23e   : > { %3837 = vmatpush1.bf16.msra.mxu0 %v5362_v35  ;;  %3993 = vmatpush1.bf16.msra.mxu1 %v5364_v36  ;;  %v736_v35 = vld [vmem:[%s6239_s30 + $0xd70] sm:$0xff]  ;;  %v733_v36 = vld [vmem:[%s6239_s30 + $0xd58] sm:$0xff] }
 0x23f   : > { %3838 = vmatprep.subr.bf16.mxu0 %v5371_v37  ;;  %3994 = vmatprep.subr.bf16.mxu1 %v5373_v39  ;;  %v737_v37 = vld [vmem:[%s6239_s30 + $0xd78] sm:$0xff]  ;;  %v5426_v39 = vcombine.low %v724_v25, %v728_v26  ;;  %v5435_v41 = vcombine.high %v732_v34, %v736_v35 }
 0x240   : > { %v5437_v42 = vcombine.high %v733_v36, %v737_v37  ;;  %v5436_v50 = vcombine.low %v733_v36, %v737_v37  ;;  %v773_v25 = vld [vmem:[%s6239_s30 + $0xe98] sm:$0xff] }
 0x241   : > { %v777_v26 = vld [vmem:[%s6239_s30 + $0xeb8] sm:$0xff] }
 0x242   : > { %3839 = vmatpush1.bf16.msra.mxu0 %v5370_v44  ;;  %3995 = vmatpush1.bf16.msra.mxu1 %v5372_v46  ;;  %v744_v44 = vld [vmem:[%s6239_s30 + $0xdb0] sm:$0xff]  ;;  %v741_v46 = vld [vmem:[%s6239_s30 + $0xd98] sm:$0xff]  ;;  %v5476_v37 = vcombine.low %v773_v25, %v777_v26 }
 0x243   : > { %3840 = vmatprep.subr.bf16.mxu0 %v5379_v47  ;;  %3996 = vmatprep.subr.bf16.mxu1 %v5381_v49  ;;  %v745_v47 = vld [vmem:[%s6239_s30 + $0xdb8] sm:$0xff]  ;;  %v5434_v49 = vcombine.low %v732_v34, %v736_v35  ;;  %v5443_v51 = vcombine.high %v740_v43, %v744_v44 }
 0x244   : > { %v5445_v4 = vcombine.high %v741_v46, %v745_v47  ;;  %v781_v34 = vld [vmem:[%s6239_s30 + $0xed8] sm:$0xff] }
 0x245   : > { %v785_v35 = vld [vmem:[%s6239_s30 + $0xef8] sm:$0xff] }
 0x246   : > { %3841 = vmatpush1.bf16.msra.mxu0 %v5378_v53  ;;  %3997 = vmatpush1.bf16.msra.mxu1 %v5380_v55  ;;  %v748_v53 = vld [vmem:[%s6239_s30 + $0xdd0] sm:$0xff] }
 0x247   : > { %3842 = vmatprep.subr.bf16.mxu0 %v5387_v56  ;;  %3998 = vmatprep.subr.bf16.mxu1 %v5389_v57  ;;  %v752_v55 = vld [vmem:[%s6239_s30 + $0xdf0] sm:$0xff] }
 0x24a   : > { %3843 = vmatpush1.bf16.msra.mxu0 %v5386_v0  ;;  %3999 = vmatpush1.bf16.msra.mxu1 %v5388_v63  ;;  %v5442_v0 = vcombine.low %v740_v43, %v744_v44  ;;  %v789_v43 = vld [vmem:[%s6239_s30 + $0xf18] sm:$0xff] }
 0x24b   : > { %3851 = vmatprep.subr.bf16.mxu0 %v5395_v1  ;;  %4007 = vmatprep.subr.bf16.mxu1 %v5397_v2  ;;  %v5444_v1 = vcombine.low %v741_v46, %v745_v47  ;;  %v5451_v2 = vcombine.high %v748_v53, %v752_v55  ;;  %v793_v44 = vld [vmem:[%s6239_s30 + $0xf38] sm:$0xff]  ;;  %v5484_v47 = vcombine.low %v781_v34, %v785_v35 }
 0x24d   : > { %3845 = vmatmul.mubr.f32.vlgmr.msra.gmra.mrb[2].mxu0 %v6431_v38  ;;  %4001 = vmatmul.mubr.f32.vlgmr.msra.gmra.mrb[2].mxu1 %v6431_v38  ;;  %v5410_v38 = vcombine.low %v708_v12, %v712_v13  ;;  %v5450_v12 = vcombine.low %v748_v53, %v752_v55  ;;  %v801_v53 = vld [vmem:[%s6239_s30 + $0xf78] sm:$0xff] }
 0x24e   : > { %3852 = vmatpush1.bf16.msra.mxu0 %v5394_v9  ;;  %4008 = vmatpush1.bf16.msra.mxu1 %v5396_v32  ;;  %v757_v32 = vld [vmem:[%s6239_s30 + $0xe18] sm:$0xff] }
 0x24f   : > { %3853 = vmatprep.subr.bf16.mxu0 %v5403_v10  ;;  %4009 = vmatprep.subr.bf16.mxu1 %v5405_v11  ;;  %v761_v10 = vld [vmem:[%s6239_s30 + $0xe38] sm:$0xff]  ;;  %v302_v11 = vld [vmem:[#allocation2] sm:$0xff] }
 0x250   : > { %3883 = vmatprep.mubr.f32.mxu0 %v6516_v8  ;;  %4039 = vmatprep.mubr.f32.mxu1 %v6516_v8  ;;  %v5420_v8 = vcombine.low %v717_v21, %v721_v48  ;;  %v5458_v21 = vcombine.low %v756_v6, %v760_v7  ;;  %v5460_v48 = vcombine.low %v757_v32, %v761_v10  ;;  %v816_v6 = vld [vmem:[%s6239_s30 + $0xff0] sm:$0xff]  ;;  %v813_v7 = vld [vmem:[%s6239_s30 + $0xfd8] sm:$0xff] }
 0x252   : > { %3854 = vmatpush1.bf16.msra.mxu0 %v5402_v15  ;;  %4010 = vmatpush1.bf16.msra.mxu1 %v5404_v16  ;;  %v5461_v15 = vcombine.high %v757_v32, %v761_v10  ;;  %v764_v16 = vld [vmem:[%s6239_s30 + $0xe50] sm:$0xff] }
 0x253   : > { %3855 = vmatprep.subr.bf16.mxu0 %v5411_v17  ;;  %4011 = vmatprep.subr.bf16.mxu1 %v5413_v18  ;;  %v768_v17 = vld [vmem:[%s6239_s30 + $0xe70] sm:$0xff] }
 0x254   : > { %v5466_v27 = vcombine.low %v764_v16, %v768_v17 }
 0x256   : > { %3856 = vmatpush1.bf16.msra.mxu0 %v5410_v38  ;;  %4012 = vmatpush1.bf16.msra.mxu1 %v5412_v22  ;;  %v5467_v38 = vcombine.high %v764_v16, %v768_v17  ;;  %v5469_v22 = vcombine.high %v765_v19, %v769_v20 }
 0x257   : > { %3857 = vmatprep.subr.bf16.mxu0 %v5419_v23  ;;  %4013 = vmatprep.subr.bf16.mxu1 %v5421_v60  ;;  %v772_v23 = vld [vmem:[%s6239_s30 + $0xe90] sm:$0xff] }
 0x258   : > { %v776_v60 = vld [vmem:[%s6239_s30 + $0xeb0] sm:$0xff] }
 0x259   : > { %v5474_v36 = vcombine.low %v772_v23, %v776_v60 }
 0x25a   : > { %3858 = vmatpush1.bf16.msra.mxu0 %v5418_v29  ;;  %4014 = vmatpush1.bf16.msra.mxu1 %v5420_v8  ;;  %v5475_v29 = vcombine.high %v772_v23, %v776_v60  ;;  %v5477_v8 = vcombine.high %v773_v25, %v777_v26  ;;  %v5775_v23 = vld [vmem:[#allocation8 + $0x40] sm:$0xff] (!%p5518_p1)   ;;  %v5779_v26 = vld [vmem:[#allocation8 + $0x48] sm:$0xff] (!%p5518_p1)  }
 0x25b   : > { %3859 = vmatprep.subr.bf16.mxu0 %v5427_v31  ;;  %4015 = vmatprep.subr.bf16.mxu1 %v5429_v33  ;;  %v780_v31 = vld [vmem:[%s6239_s30 + $0xed0] sm:$0xff]  ;;  %v5776_v60 = vld [vmem:[#allocation8] sm:$0xff] (!%p5518_p1)  }
 0x25c   : > { %v784_v33 = vld [vmem:[%s6239_s30 + $0xef0] sm:$0xff]  ;;  %v5778_v25 = vld [vmem:[#allocation8 + $0x80] sm:$0xff] (!%p5518_p1)  }
 0x25d   : > { %v5482_v46 = vcombine.low %v780_v31, %v784_v33 }
 0x25e   : > { %3860 = vmatpush1.bf16.msra.mxu0 %v5426_v39  ;;  %4016 = vmatpush1.bf16.msra.mxu1 %v5428_v40  ;;  %v5483_v39 = vcombine.high %v780_v31, %v784_v33  ;;  %v5485_v40 = vcombine.high %v781_v34, %v785_v35  ;;  %v5784_v31 = vld [vmem:[#allocation8 + $0x10] sm:$0xff] (!%p5518_p1)   ;;  %v5787_v35 = vld [vmem:[#allocation8 + $0x58] sm:$0xff] (!%p5518_p1)  }
 0x25f   : > { %3861 = vmatprep.subr.bf16.mxu0 %v5435_v41  ;;  %4017 = vmatprep.subr.bf16.mxu1 %v5437_v42  ;;  %v788_v41 = vld [vmem:[%s6239_s30 + $0xf10] sm:$0xff]  ;;  %v5785_v33 = vld [vmem:[#allocation8 + $0xd0] sm:$0xff] (!%p5518_p1)  }
 0x260   : > { %v3573_v52 = vpop.f32.mrb[0].mxu0  ;;  %v3729_v56 = vpop.f32.mrb[0].mxu1  ;;  %v792_v42 = vld [vmem:[%s6239_s30 + $0xf30] sm:$0xff]  ;;  %v5786_v34 = vld [vmem:[#allocation8 + $0x90] sm:$0xff] (!%p5518_p1)  }
 0x261   : > { %v3575_v57 = vpop.f32.mrb[1].mxu0  ;;  %v3731_v30 = vpop.f32.mrb[1].mxu1  ;;  %v5490_v55 = vcombine.low %v788_v41, %v792_v42 }
 0x262   : > { %v4054_v61 = vcombine.low %v3573_v52, %v3575_v57  ;;  %3862 = vmatpush1.bf16.msra.mxu0 %v5434_v49  ;;  %v4055_v63 = vcombine.low %v3729_v56, %v3731_v30  ;;  %4018 = vmatpush1.bf16.msra.mxu1 %v5436_v50  ;;  %v5491_v49 = vcombine.high %v788_v41, %v792_v42  ;;  %v800_v52 = vld [vmem:[%s6239_s30 + $0xf70] sm:$0xff]  ;;  %v805_v30 = vld [vmem:[%s6239_s30 + $0xf98] sm:$0xff]  ;;  %v5792_v41 = vld [vmem:[#allocation8 + $0x20] sm:$0xff] (!%p5518_p1)  }
 0x263   : > { %3863 = vmatprep.subr.bf16.mxu0 %v5443_v51  ;;  %4019 = vmatprep.subr.bf16.mxu1 %v5445_v4  ;;  %v5493_v50 = vcombine.high %v789_v43, %v793_v44  ;;  %v796_v51 = vld [vmem:[%s6239_s30 + $0xf50] sm:$0xff]  ;;  %v797_v4 = vld [vmem:[%s6239_s30 + $0xf58] sm:$0xff]  ;;  %v5492_v56 = vcombine.low %v789_v43, %v793_v44  ;;  %v5793_v42 = vld [vmem:[#allocation8 + $0xe0] sm:$0xff] (!%p5518_p1)  }
 0x264   : > { %v4062_v3 = vrot.slane %v4054_v61, %v6290_v54  ;;  %v4069_v9 = vrot.slane %v4055_v63, %v6290_v54  ;;  %v5499_v57 = vcombine.high %v796_v51, %v800_v52  ;;  %v5501_v58 = vcombine.high %v797_v4, %v801_v53  ;;  %v808_v61 = vld [vmem:[%s6239_s30 + $0xfb0] sm:$0xff]  ;;  %v5794_v43 = vld [vmem:[#allocation8 + $0xa0] sm:$0xff] (!%p5518_p1)  }
 0x265   : > { %v5498_v63 = vcombine.low %v796_v51, %v800_v52  ;;  %v5506_v32 = vcombine.low %v804_v59, %v808_v61  ;;  %v5795_v44 = vld [vmem:[#allocation8 + $0x68] sm:$0xff] (!%p5518_p1)   ;;  %v5800_v51 = vld [vmem:[#allocation8 + $0x30] sm:$0xff] (!%p5518_p1)  }
 0x266   : > { %3864 = vmatpush1.bf16.msra.mxu0 %v5442_v0  ;;  %v4070_v13 = vcombine.low %v4062_v3, %v4069_v9  ;;  %4020 = vmatpush1.bf16.msra.mxu1 %v5444_v1  ;;  %v809_v0 = vld [vmem:[%s6239_s30 + $0xfb8] sm:$0xff]  ;;  %v5500_v1 = vcombine.low %v797_v4, %v801_v53  ;;  %v4104_v4 = vsub.s32 (!%p5518_p1), 0, %v6283_v45 }
 0x267   : > { %3865 = vmatprep.subr.bf16.mxu0 %v5451_v2  ;;  %4021 = vmatprep.subr.bf16.mxu1 %v5453_v5  ;;  %v5507_v2 = vcombine.high %v804_v59, %v808_v61  ;;  %v5509_v3 = vcombine.high %v805_v30, %v809_v0  ;;  %v812_v5 = vld [vmem:[%s6239_s30 + $0xfd0] sm:$0xff]  ;;  %v817_v9 = vld [vmem:[%s6239_s30 + $0xff8] sm:$0xff]  ;;  %v5508_v10 = vcombine.low %v805_v30, %v809_v0  ;;  %v4116_v59 = vsub.s32 (!%p5518_p1), 3, %v6283_v45  ;;  %v5805_v61 = vld [vmem:[#allocation8 + $0xf8] sm:$0xff] (!%p5518_p1)  }
 0x268   : > { %v4090_v18 = vadd.f32 %v4070_v13, %v302_v11  ;;  %v5515_v11 = vcombine.high %v812_v5, %v816_v6  ;;  %v5514_v13 = vcombine.low %v812_v5, %v816_v6  ;;  %v5801_v52 = vld [vmem:[#allocation8 + $0xf0] sm:$0xff] (!%p5518_p1)   ;;  %v5806_v30 = vld [vmem:[#allocation8 + $0xb8] sm:$0xff] (!%p5518_p1)   ;;  %v5807_v5 = vld [vmem:[#allocation8 + $0x140] sm:$0xff] (!%p5518_p1)  }
 0x269   : > { %v5802_v53 = vld [vmem:[#allocation8 + $0xb0] sm:$0xff] (!%p5518_p1)   ;;  %v4100_v0 = vld [vmem:[#allocation6] sm:$0xff] (!%p5518_p1) }
 0x26a   : > { %3866 = vmatpush1.bf16.msra.mxu0 %v5450_v12  ;;  %4092 = vst [vmem:[#allocation2] sm:$0xff] %v4090_v18  ;;  %4022 = vmatpush1.bf16.msra.mxu1 %v5452_v24  ;;  %v5517_v12 = vcombine.high %v813_v7, %v817_v9  ;;  %v5516_v24 = vcombine.low %v813_v7, %v817_v9  ;;  %v5809_v9 = vld [vmem:[#allocation8 + $0x1c0] sm:$0xff] (!%p5518_p1)  }
 0x26b   : > { %3867 = vmatprep.subr.bf16.mxu0 %v5459_v14  ;;  %4023 = vmatprep.subr.bf16.mxu1 %v5461_v15 }
 0x26e   : > { %3868 = vmatpush1.bf16.msra.mxu0 %v5458_v21  ;;  %4024 = vmatpush1.bf16.msra.mxu1 %v5460_v48  ;;  %v303_v48 = vld [vmem:[#allocation2 + $0x8] sm:$0xff] }
 0x26f   : > { %3869 = vmatprep.subr.bf16.mxu0 %v5467_v38  ;;  %4025 = vmatprep.subr.bf16.mxu1 %v5469_v22 }
 0x272   : > { %3870 = vmatpush1.bf16.msra.mxu0 %v5466_v27  ;;  %4026 = vmatpush1.bf16.msra.mxu1 %v5468_v28  ;;  %v5780_v27 = vld [vmem:[#allocation8 + $0x8] sm:$0xff] (!%p5518_p1)  }
 0x273   : > { %3871 = vmatprep.subr.bf16.mxu0 %v5475_v29  ;;  %4027 = vmatprep.subr.bf16.mxu1 %v5477_v8  ;;  %v5781_v28 = vld [vmem:[#allocation8 + $0xc8] sm:$0xff] (!%p5518_p1)   ;;  %v5783_v8 = vld [vmem:[#allocation8 + $0x50] sm:$0xff] (!%p5518_p1)  }
 0x274   : > { %v5782_v29 = vld [vmem:[#allocation8 + $0x88] sm:$0xff] (!%p5518_p1)  }
 0x276   : > { %3872 = vmatpush1.bf16.msra.mxu0 %v5474_v36  ;;  %4028 = vmatpush1.bf16.msra.mxu1 %v5476_v37  ;;  %v5788_v36 = vld [vmem:[#allocation8 + $0x18] sm:$0xff] (!%p5518_p1)  }
 0x277   : > { %3873 = vmatprep.subr.bf16.mxu0 %v5483_v39  ;;  %4029 = vmatprep.subr.bf16.mxu1 %v5485_v40  ;;  %v5789_v37 = vld [vmem:[#allocation8 + $0xd8] sm:$0xff] (!%p5518_p1)   ;;  %v5791_v40 = vld [vmem:[#allocation8 + $0x60] sm:$0xff] (!%p5518_p1)  }
 0x278   : > { %v5790_v39 = vld [vmem:[#allocation8 + $0x98] sm:$0xff] (!%p5518_p1)  }
 0x27a   : > { %3874 = vmatpush1.bf16.msra.mxu0 %v5482_v46  ;;  %4030 = vmatpush1.bf16.msra.mxu1 %v5484_v47  ;;  %v5796_v46 = vld [vmem:[#allocation8 + $0x28] sm:$0xff] (!%p5518_p1)  }
 0x27b   : > { %3875 = vmatprep.subr.bf16.mxu0 %v5491_v49  ;;  %4031 = vmatprep.subr.bf16.mxu1 %v5493_v50  ;;  %v5797_v47 = vld [vmem:[#allocation8 + $0xe8] sm:$0xff] (!%p5518_p1)   ;;  %v5799_v50 = vld [vmem:[#allocation8 + $0x70] sm:$0xff] (!%p5518_p1)  }
 0x27c   : > { %v5798_v49 = vld [vmem:[#allocation8 + $0xa8] sm:$0xff] (!%p5518_p1)  }
 0x27e   : > { %3876 = vmatpush1.bf16.msra.mxu0 %v5490_v55  ;;  %4032 = vmatpush1.bf16.msra.mxu1 %v5492_v56  ;;  %v4108_v55 = vsub.s32 (!%p5518_p1), 1, %v6283_v45  ;;  %v5803_v56 = vld [vmem:[#allocation8 + $0x78] sm:$0xff] (!%p5518_p1)  }
 0x27f   : > { %3877 = vmatprep.subr.bf16.mxu0 %v5499_v57  ;;  %4033 = vmatprep.subr.bf16.mxu1 %v5501_v58  ;;  %v4112_v57 = vsub.s32 (!%p5518_p1), 2, %v6283_v45  ;;  %v5804_v58 = vld [vmem:[#allocation8 + $0x38] sm:$0xff] (!%p5518_p1)  }
 0x282   : > { %3878 = vmatpush1.bf16.msra.mxu0 %v5498_v63  ;;  %4034 = vmatpush1.bf16.msra.mxu1 %v5500_v1  ;;  %v4105_v63 = vrot.slane (!%p5518_p1), %v4100_v0, %v4104_v4  ;;  %v4109_v1 = vrot.slane (!%p5518_p1), %v4100_v0, %v4108_v55  ;;  %v5829_v4 = vld [vmem:[#allocation8 + $0x1e8] sm:$0xff] (!%p5518_p1)  }
 0x283   : > { %3879 = vmatprep.subr.bf16.mxu0 %v5507_v2  ;;  %4035 = vmatprep.subr.bf16.mxu1 %v5509_v3  ;;  %v4113_v2 = vrot.slane (!%p5518_p1), %v4100_v0, %v4112_v57  ;;  %v4117_v3 = vrot.slane (!%p5518_p1), %v4100_v0, %v4116_v59  ;;  %v5830_v57 = vld [vmem:[#allocation8 + $0x1a8] sm:$0xff] (!%p5518_p1)  }
 0x284   : > { %v4134_v6 = vcombine.low (!%p5518_p1), %v4105_v63, %v4109_v1  ;;  %v5835_v1 = vld [vmem:[#allocation8 + $0x178] sm:$0xff] (!%p5518_p1)  }
 0x285   : > { %v4135_v7 = vcombine.low (!%p5518_p1), %v4113_v2, %v4117_v3  ;;  %v5834_v2 = vld [vmem:[#allocation8 + $0x1b0] sm:$0xff] (!%p5518_p1)  }
 0x286   : > { %3880 = vmatpush1.bf16.msra.mxu0 %v5506_v32  ;;  %4036 = vmatpush1.bf16.msra.mxu1 %v5508_v10  ;;  %v4142_v32 = vrot.slane (!%p5518_p1), %v4134_v6, %v6290_v54  ;;  %v5836_v6 = vld [vmem:[#allocation8 + $0x138] sm:$0xff] (!%p5518_p1)  }
 0x287   : > { %3881 = vmatprep.subr.bf16.mxu0 %v5515_v11  ;;  %4037 = vmatprep.subr.bf16.mxu1 %v5517_v12  ;;  %v4149_v10 = vrot.slane (!%p5518_p1), %v4135_v7, %v6290_v54  ;;  %v4098_v11 = vld [vmem:[#allocation2] sm:$0xff] (!%p5518_p1)  ;;  %v5838_v7 = vld [vmem:[#allocation8 + $0x1b8] sm:$0xff] (!%p5518_p1)  }
 0x289   : > { %v4150_v12 = vcombine.low (!%p5518_p1), %v4142_v32, %v4149_v10 }
 0x28a   : > { %3882 = vmatpush1.bf16.msra.mxu0 %v5514_v13  ;;  %4038 = vmatpush1.bf16.msra.mxu1 %v5516_v24 }
 0x28b   : > { %5590 = vmatprep.subr.bf16.mxu0 (!%p5518_p1), %v5775_v23  ;;  %v4170_v13 = vadd.f32 (!%p5518_p1), %v4150_v12, %v4098_v11 }
 0x28d   : > { %3884 = vmatmul.mubr.f32.vlgmr.msra.gmra.mrb[2].mxu0 %v6508_v62  ;;  %4040 = vmatmul.mubr.f32.vlgmr.msra.gmra.mrb[2].mxu1 %v6508_v62  ;;  %v5777_v62 = vld [vmem:[#allocation8 + $0xc0] sm:$0xff] (!%p5518_p1)   ;;  %v4172_v24 = vmax.f32 (!%p5518_p1), %v4170_v13, 0.0 }
 0x28e   : > { %5591 = vmatpush3.bf16.msra.mxu0 (!%p5518_p1), %v5776_v60  ;;  %5609 = vmatprep.subr.bf16.mxu1 (!%p5518_p1), %v5777_v62  ;;  %v5810_v60 = vld [vmem:[#allocation8 + $0x180] sm:$0xff] (!%p5518_p1)  }
 0x28f   : > { %5610 = vmatpush3.bf16.msra.mxu1 (!%p5518_p1), %v5778_v25  ;;  %5592 = vmatprep.subr.bf16.mxu0 (!%p5518_p1), %v5779_v26 }
 0x290   : > { %5611 = vmatprep.subr.bf16.mxu1 (!%p5518_p1), %v5781_v28  ;;  %v5812_v28 = vld [vmem:[#allocation8 + $0x108] sm:$0xff] (!%p5518_p1)  }
 0x292   : > { %5593 = vmatpush3.bf16.msra.mxu0 (!%p5518_p1), %v5780_v27  ;;  %v5813_v27 = vld [vmem:[#allocation8 + $0x1c8] sm:$0xff] (!%p5518_p1)  }
 0x293   : > { %5612 = vmatpush3.bf16.msra.mxu1 (!%p5518_p1), %v5782_v29  ;;  %5594 = vmatprep.subr.bf16.mxu0 (!%p5518_p1), %v5783_v8  ;;  %v5814_v29 = vld [vmem:[#allocation8 + $0x188] sm:$0xff] (!%p5518_p1)  }
 0x294   : > { %5613 = vmatprep.subr.bf16.mxu1 (!%p5518_p1), %v5785_v33  ;;  %v5817_v33 = vld [vmem:[#allocation8 + $0x1d0] sm:$0xff] (!%p5518_p1)  }
 0x296   : > { %5595 = vmatpush3.bf16.msra.mxu0 (!%p5518_p1), %v5784_v31 }
 0x297   : > { %5614 = vmatpush3.bf16.msra.mxu1 (!%p5518_p1), %v5786_v34  ;;  %5596 = vmatprep.subr.bf16.mxu0 (!%p5518_p1), %v5787_v35  ;;  %v5816_v34 = vld [vmem:[#allocation8 + $0x110] sm:$0xff] (!%p5518_p1)   ;;  %v5819_v35 = vld [vmem:[#allocation8 + $0x158] sm:$0xff] (!%p5518_p1)  }
 0x298   : > { %5615 = vmatprep.subr.bf16.mxu1 (!%p5518_p1), %v5789_v37 }
 0x29a   : > { %5597 = vmatpush3.bf16.msra.mxu0 (!%p5518_p1), %v5788_v36  ;;  %v5818_v36 = vld [vmem:[#allocation8 + $0x190] sm:$0xff] (!%p5518_p1)  }
 0x29b   : > { %5616 = vmatpush3.bf16.msra.mxu1 (!%p5518_p1), %v5790_v39  ;;  %5598 = vmatprep.subr.bf16.mxu0 (!%p5518_p1), %v5791_v40  ;;  %v5821_v40 = vld [vmem:[#allocation8 + $0x1d8] sm:$0xff] (!%p5518_p1)  }
 0x29c   : > { %5617 = vmatprep.subr.bf16.mxu1 (!%p5518_p1), %v5793_v42  ;;  %v5823_v42 = vld [vmem:[#allocation8 + $0x160] sm:$0xff] (!%p5518_p1)  }
 0x29e   : > { %5599 = vmatpush3.bf16.msra.mxu0 (!%p5518_p1), %v5792_v41  ;;  %v5820_v41 = vld [vmem:[#allocation8 + $0x118] sm:$0xff] (!%p5518_p1)  }
 0x29f   : > { %5618 = vmatpush3.bf16.msra.mxu1 (!%p5518_p1), %v5794_v43  ;;  %5600 = vmatprep.subr.bf16.mxu0 (!%p5518_p1), %v5795_v44  ;;  %v5822_v43 = vld [vmem:[#allocation8 + $0x198] sm:$0xff] (!%p5518_p1)  }
 0x2a0   : > { %5619 = vmatprep.subr.bf16.mxu1 (!%p5518_p1), %v5797_v47  ;;  %v5824_v47 = vld [vmem:[#allocation8 + $0x120] sm:$0xff] (!%p5518_p1)  }
 0x2a2   : > { %5601 = vmatpush3.bf16.msra.mxu0 (!%p5518_p1), %v5796_v46  ;;  %v5825_v46 = vld [vmem:[#allocation8 + $0x1e0] sm:$0xff] (!%p5518_p1)  }
 0x2a3   : > { %5620 = vmatpush3.bf16.msra.mxu1 (!%p5518_p1), %v5798_v49  ;;  %5602 = vmatprep.subr.bf16.mxu0 (!%p5518_p1), %v5799_v50  ;;  %v5827_v49 = vld [vmem:[#allocation8 + $0x168] sm:$0xff] (!%p5518_p1)  }
 0x2a4   : > { %5621 = vmatprep.subr.bf16.mxu1 (!%p5518_p1), %v5801_v52 }
 0x2a6   : > { %5603 = vmatpush3.bf16.msra.mxu0 (!%p5518_p1), %v5800_v51  ;;  %v5826_v51 = vld [vmem:[#allocation8 + $0x1a0] sm:$0xff] (!%p5518_p1)  }
 0x2a7   : > { %5622 = vmatpush3.bf16.msra.mxu1 (!%p5518_p1), %v5802_v53  ;;  %5604 = vmatprep.subr.bf16.mxu0 (!%p5518_p1), %v5803_v56  ;;  %v5828_v53 = vld [vmem:[#allocation8 + $0x128] sm:$0xff] (!%p5518_p1)   ;;  %v5831_v56 = vld [vmem:[#allocation8 + $0x170] sm:$0xff] (!%p5518_p1)  }
 0x2a8   : > { %5623 = vmatprep.subr.bf16.mxu1 (!%p5518_p1), %v5805_v61  ;;  %v5833_v61 = vld [vmem:[#allocation8 + $0x1f0] sm:$0xff] (!%p5518_p1)  }
 0x2aa   : > { %5605 = vmatpush3.bf16.msra.mxu0 (!%p5518_p1), %v5804_v58 }
 0x2ab   : > { %5624 = vmatpush3.bf16.msra.mxu1 (!%p5518_p1), %v5806_v30  ;;  %5628 = vmatprep.subr.bf16.mxu0 (!%p5518_p1), %v5807_v5  ;;  %v5832_v30 = vld [vmem:[#allocation8 + $0x130] sm:$0xff] (!%p5518_p1)   ;;  %v5837_v5 = vld [vmem:[#allocation8 + $0x1f8] sm:$0xff] (!%p5518_p1)  }
 0x2ac   : > { %5647 = vmatprep.subr.bf16.mxu1 (!%p5518_p1), %v5809_v9  ;;  %v5519_v9 = vld [vmem:[#allocation9] ss:$0 sm:$0xff] (!%p5518_p1) }
 0x360   : > { %v3885_v14 = vpop.f32.mrb[2].mxu0  ;;  %v4041_v15 = vpop.f32.mrb[2].mxu1 }
 0x361   : > { %v3887_v16 = vpop.f32.mrb[3].mxu0  ;;  %v4043_v18 = vpop.f32.mrb[3].mxu1 }
 0x362   : > { %v4071_v17 = vcombine.low %v3885_v14, %v3887_v16  ;;  %v4072_v19 = vcombine.low %v4041_v15, %v4043_v18  ;;  %v4120_v14 = vsub.s32 (!%p5518_p1), 4, %v6283_v45  ;;  %v4124_v15 = vsub.s32 (!%p5518_p1), 5, %v6283_v45 }
 0x363   : > { %v4318_v16 = vrot.slane (!%p5518_p1), %v4172_v24, %v6290_v54  ;;  %v4128_v18 = vsub.s32 (!%p5518_p1), 6, %v6283_v45 }
 0x364   : > { %v4079_v20 = vrot.slane %v4071_v17, %v6290_v54  ;;  %v4086_v21 = vrot.slane %v4072_v19, %v6290_v54  ;;  %4097 = sbr.rel (%p5518_p1) target bundleno = 1125 (0x465), region = 64  ;;  %v4311_v17 = vcombine.high (!%p5518_p1), %v4172_v24, %v4172_v24  ;;  %v4132_v19 = vsub.s32 (!%p5518_p1), 7, %v6283_v45  ;;  %v5815_v45 = vld [vmem:[#allocation8 + $0x150] sm:$0xff] (!%p5518_p1)  }
 0x365   : > { %v4125_v62 = vrot.slane (!%p5518_p1), %v4100_v0, %v4124_v15  ;;  %v4129_v25 = vrot.slane (!%p5518_p1), %v4100_v0, %v4128_v18 }
 0x366   : > { %v4087_v38 = vcombine.low %v4079_v20, %v4086_v21  ;;  %v4326_v20 = vcombine.high (!%p5518_p1), %v4318_v16, %v4318_v16  ;;  %v4325_v21 = vrot.slane (!%p5518_p1), %v4311_v17, %v6290_v54  ;;  %v4133_v26 = vrot.slane (!%p5518_p1), %v4100_v0, %v4132_v19 }
 0x368   : > { %v4091_v22 = vadd.f32 %v4087_v38, %v303_v48  ;;  %v5808_v48 = vld [vmem:[#allocation8 + $0x100] sm:$0xff] (!%p5518_p1)   ;;  %v5811_v38 = vld [vmem:[#allocation8 + $0x148] sm:$0xff] (!%p5518_p1)   ;;  %4769 = vmatprep.mubr.f32.mxu0 (!%p5518_p1), %v4326_v20  ;;  %v4327_v23 = vcombine.high (!%p5518_p1), %v4325_v21, %v4325_v21  ;;  %v4152_v31 = vcombine.low (!%p5518_p1), %v4129_v25, %v4133_v26 }
 0x369   : > { %4770 = vmatmul.mubr.f32.vlgmr.msra.gmra.mrb[0].mxu0 (!%p5518_p1), %v4318_v16 }
 0x36a   : > { %4093 = vst [vmem:[#allocation2 + $0x8] sm:$0xff] %v4091_v22  ;;  %v4121_v22 = vrot.slane (!%p5518_p1), %v4100_v0, %v4120_v14  ;;  %4807 = vmatprep.mubr.f32.mxu1 (!%p5518_p1), %v4327_v23  ;;  %5629 = vmatpush3.bf16.msra.mxu0 (!%p5518_p1), %v5808_v48  ;;  %v4166_v39 = vrot.slane (!%p5518_p1), %v4152_v31, %v6290_v54 }
 0x36b   : > { %4808 = vmatmul.mubr.f32.vlgmr.msra.gmra.mrb[0].mxu1 %v4325_v21  ;;  %5630 = vmatprep.subr.bf16.mxu0 %v5811_v38 }
 0x36c   : > { %5648 = vmatpush3.bf16.msra.mxu1 %v5810_v60  ;;  %v4151_v8 = vcombine.low %v4121_v22, %v4125_v62 }
 0x36d   : > { %5649 = vmatprep.subr.bf16.mxu1 %v5813_v27 }
 0x36e   : > { %5631 = vmatpush3.bf16.msra.mxu0 %v5812_v28  ;;  %v4159_v37 = vrot.slane %v4151_v8, %v6290_v54 }
 0x36f   : > { %5632 = vmatprep.subr.bf16.mxu0 %v5815_v45 }
 0x370   : > { %5650 = vmatpush3.bf16.msra.mxu1 %v5814_v29  ;;  %v4167_v44 = vcombine.low %v4159_v37, %v4166_v39 }
 0x371   : > { %5651 = vmatprep.subr.bf16.mxu1 %v5817_v33  ;;  %v4099_v50 = vld [vmem:[#allocation2 + $0x8] sm:$0xff] }
 0x372   : > { %5633 = vmatpush3.bf16.msra.mxu0 %v5816_v34  ;;  %v4171_v52 = vadd.f32 %v4167_v44, %v4099_v50 }
 0x373   : > { %5634 = vmatprep.subr.bf16.mxu0 %v5819_v35 }
 0x374   : > { %5652 = vmatpush3.bf16.msra.mxu1 %v5818_v36  ;;  %v4173_v55 = vmax.f32 %v4171_v52, 0.0 }
 0x375   : > { %5653 = vmatprep.subr.bf16.mxu1 %v5821_v40 }
 0x376   : > { %5635 = vmatpush3.bf16.msra.mxu0 %v5820_v41  ;;  %v4335_v58 = vrot.slane %v4173_v55, %v6290_v54  ;;  %v4328_v59 = vcombine.high %v4173_v55, %v4173_v55 }
 0x377   : > { %5636 = vmatprep.subr.bf16.mxu0 %v5823_v42 }
 0x378   : > { %5654 = vmatpush3.bf16.msra.mxu1 %v5822_v43  ;;  %v4343_v0 = vcombine.high %v4335_v58, %v4335_v58  ;;  %v4342_v63 = vrot.slane %v4328_v59, %v6290_v54 }
 0x379   : > { %5655 = vmatprep.subr.bf16.mxu1 %v5825_v46 }
 0x37a   : > { %5637 = vmatpush3.bf16.msra.mxu0 %v5824_v47  ;;  %4845 = vmatprep.mubr.f32.mxu0 %v4343_v0  ;;  %v4344_v3 = vcombine.high %v4342_v63, %v4342_v63 }
 0x37b   : > { %5638 = vmatprep.subr.bf16.mxu0 %v5827_v49 }
 0x37c   : > { %5656 = vmatpush3.bf16.msra.mxu1 %v5826_v51  ;;  %4883 = vmatprep.mubr.f32.mxu1 %v4344_v3 }
 0x37d   : > { %5657 = vmatprep.subr.bf16.mxu1 %v5829_v4 }
 0x37e   : > { %5639 = vmatpush3.bf16.msra.mxu0 %v5828_v53 }
 0x37f   : > { %5640 = vmatprep.subr.bf16.mxu0 %v5831_v56 }
 0x380   : > { %5658 = vmatpush3.bf16.msra.mxu1 %v5830_v57 }
 0x381   : > { %5659 = vmatprep.subr.bf16.mxu1 %v5833_v61 }
 0x382   : > { %5641 = vmatpush3.bf16.msra.mxu0 %v5832_v30 }
 0x383   : > { %5642 = vmatprep.subr.bf16.mxu0 %v5835_v1 }
 0x384   : > { %5660 = vmatpush3.bf16.msra.mxu1 %v5834_v2 }
 0x385   : > { %5661 = vmatprep.subr.bf16.mxu1 %v5837_v5 }
 0x386   : > { %5643 = vmatpush3.bf16.msra.mxu0 %v5836_v6 }
 0x388   : > { %5662 = vmatpush3.bf16.msra.mxu1 %v5838_v7 }
 0x389   : > { %4846 = vmatmul.mubr.f32.vlgmr.msra.gmra.mrb[2].mxu0 %v4335_v58 }
 0x38b   : > { %4884 = vmatmul.mubr.f32.vlgmr.msra.gmra.mrb[2].mxu1 %v4342_v63 }
 0x43c   : > { %v5606_v54 = vpop.f32.mrb[0].mxu0 }
 0x43d   : > { %v5607_v32 = vpop.f32.mrb[1].mxu0 }
 0x43e   : > { %v5608_v10 = vadd.f32 %v5607_v32, %v5606_v54  ;;  %v5625_v11 = vpop.f32.mrb[0].mxu1 }
 0x43f   : > { %v5626_v12 = vpop.f32.mrb[1].mxu1 }
 0x440   : > { %v4772_v13 = vadd.f32 %v5608_v10, %v5519_v9  ;;  %v5627_v24 = vadd.f32 %v5626_v12, %v5625_v11 }
 0x442   : > { %v4810_v14 = vadd.f32 %v5627_v24, %v4772_v13 }
 0x45c   : > { %v5644_v15 = vpop.f32.mrb[2].mxu0 }
 0x45d   : > { %v5645_v16 = vpop.f32.mrb[3].mxu0 }
 0x45e   : > { %v5646_v17 = vadd.f32 %v5645_v16, %v5644_v15  ;;  %v5663_v18 = vpop.f32.mrb[2].mxu1 }
 0x45f   : > { %v5664_v19 = vpop.f32.mrb[3].mxu1 }
 0x460   : > { %v4848_v20 = vadd.f32 %v5646_v17, %v4810_v14  ;;  %v5665_v21 = vadd.f32 %v5664_v19, %v5663_v18 }
 0x462   : > { %v4886_v48 = vadd.f32 %v5665_v21, %v4848_v20 }
 0x464   : > { %4889 = vst [vmem:[#allocation11] sm:$0x3] %v4886_v48 }
 0x465 PF: > { %p5729_p4 = scmp.eq.s32.totalorder %s6087_s22, 1  ;;  %s6037_s21 = smov [#allocation11]  }
 0x466   : > { %s4897_s7 = sshll.u32 %s6037_s21, 4  ;;  %s4898_s7 = int_to_ptr.vmem [resolvable:$true] %s4897_s7 }
 0x467   : > { %s5953_s28 = scalar_lea.vmem %s4898_s7, 32  ;;  %p5960_p2 = scmp.lt.s32.totalorder %s4898_s7, %s4898_s7 }
 0x468   : > { %p5954_p5 = scmp.ne.s32.totalorder %s4898_s7, %s5953_s28  ;;  %p5961_p6 = scmp.lt.s32.totalorder %s5953_s28, %s5953_s28 }
 0x46a   : > { %p5955_p12 = pnand %p5954_p5, %p5729_p4  ;;  %p5962_p13 = por %p5961_p6, %p5960_p2 }
 0x46c   : > { %p5956_p0 = pneg %p5955_p12 }
 0x46e   : > { %p5963_p3 = pnand %p5962_p13, %p5956_p0 }
 0x470   : > { %5966 = shalt.err (!%p5963_p3)
}
 0x471   : > { %s5967_s26 = scalar_lea.hbm %s6912_s5, 32 }
 0x472   : > { %p5968_p8 = scmp.ne.s32.totalorder %s6912_s5, %s5967_s26  ;;  %p5973_p9 = scmp.lt.u32.totalorder %s5967_s26, %s6912_s5 }
 0x474   : > { %p5969_p7 = pnand %p5968_p8, %p5729_p4 }
 0x476   : > { %p5970_p10 = pneg %p5969_p7 }
 0x478   : > { %p5975_p11 = pnand %p5973_p9, %p5970_p10 }
 0x47a   : > { %5978 = shalt.err (!%p5975_p11)
}
 0x47b   : > { %5705 = dma.vmem_to_hbm [thread:$0]  (%p5729_p4), %s4898_s7, 32, %s6912_s5, [#allocation5]  }
 0x47c   : > { %6008 = dma.done.wait (%p5729_p4), [#allocation5], 32  }
 0x47d   : > { %6010 = vsyncadd (%p5729_p4), [#allocation5], 4294967264 }
 0x47e PF: > { %p18_p1 = scmp.ge.s32.totalorder %s6183_s12, 4   ;;  %s6928_s18 = smov %s6017_s19 }
 0x47f   : > { %s6929_s19 = smov %s6021_s20  ;;  %s6930_s20 = smov %s6193_s29 }
 0x480   : > { %s6931_s21 = smov %s6183_s12  ;;  %20 = sbr.rel (!%p18_p1) target bundleno = 6 (0x6), region = 100 }
 0x487   :  { %4910 = vsyncpa [#allocation4], 1 }
 0x488   :  { %4912 = vsyncpa [#allocation4 + $0x1], 1 }
 0x489   :  { %4913 = vsyncpa [#allocation7], 1 }
 0x48a   :  { %4914 = vsyncpa [#allocation10], 1 }
 0x48b   :  { %4915 = vsyncpa [#allocation5], 1 }
 0x48c   :  { %4917 = vsyncpa [#allocation5 + $0x1], 1 }

</bundles_post_ra>
